<compile_context>
chip_gen: v7x
topology: tpu7x:2x2x1
jax: 0.10.0
libtpu: 0.0.40
codegen_flags: <defaults>
</compile_context>

<pallas_src>
import functools

import jax
import jax.numpy as jnp
from jax.experimental import pallas as pl
from jax.experimental.pallas import tpu as pltpu

EPS = 1e-5
LANE = 128


def _round_up(n, m):
    return ((n + m - 1) // m) * m


def _clf_kernel(x_ref, y_ref,
                w1_ref, b1_ref,
                w2_ref, b2_ref,
                w3_ref, b3_ref,
                out_ref, loss_ref,
                *, batch, n_cols, block_b):
    # ---- 3 matmuls: bf16 operands on the MXU, f32 accumulation, f32 bias add ----
    x = x_ref[...].astype(jnp.bfloat16)                                   # (bb, 32)

    # Linear(32, 1024) with BatchNorm1d(1024) pre-folded into w1/b1; Dropout = identity (eval).
    h1 = jnp.dot(x, w1_ref[...], preferred_element_type=jnp.float32) + b1_ref[...]

    # Linear(1024, 2048) with BatchNorm1d(2048) pre-folded into w2/b2; Dropout = identity (eval).
    h2 = jnp.dot(h1.astype(jnp.bfloat16), w2_ref[...],
                 preferred_element_type=jnp.float32) + b2_ref[...]

    # Linear(2048, Cp) -- C is zero-padded up to a lane-dense multiple of 128 in the wrapper.
    z = jnp.dot(h2.astype(jnp.bfloat16), w3_ref[...],
                preferred_element_type=jnp.float32) + b3_ref[...]

    # ---- epilogue stays f32 (v5e VPU/EUP have no bf16 path) ----
    out = jax.nn.sigmoid(z)                                               # (bb, Cp) f32
    out_ref[...] = out                                                    # lane-dense store

    # BCEWithLogitsLoss applied to the *sigmoid* output (matches the PyTorch module exactly).
    # out = sigmoid(z) is in (0,1), so max(out,0)==out and |out|==out; drop the redundant ops.
    y = y_ref[...]
    bce = out - out * y + jnp.log1p(jnp.exp(-out))

    # Mask batch-padding rows and feature-padding columns out of the loss.
    row = pl.program_id(0) * block_b + jax.lax.broadcasted_iota(jnp.int32, bce.shape, 0)
    col = jax.lax.broadcasted_iota(jnp.int32, bce.shape, 1)
    bce = jnp.where((row < batch) & (col < n_cols), bce, 0.0)

    # Per-tile partial sum -> SMEM scalar; wrapper finishes the mean.
    loss_ref[0, 0] = jnp.sum(bce)


@functools.partial(jax.jit, static_argnames=("block_b",))
def linear_classifier_forward(x, y, params, *, block_b=256):
    """x: (B, 32) f32, y: (B, C) f32, params: folded/bf16 dict. Returns (out (B, C), loss scalar)."""
    B = x.shape[0]
    K1, H1 = params["w1"].shape          # (32, 1024)
    H2 = params["w2"].shape[1]           # 2048
    C = params["w3"].shape[1]            # out_features

    # --- batch tiling -------------------------------------------------------------------------
    # bf16 packs 16 rows per sublane group -> round the tile to a multiple of 16; cap at block_b.
    bb = min(block_b, _round_up(B, 16))
    # Prefer >= 2 grid steps so the "parallel" batch axis shards across both TCs on v7x.
    if _round_up(B, bb) // bb == 1 and bb > 16:
        bb = _round_up((bb + 1) // 2, 16)
    Bp = _round_up(B, bb)
    n_tiles = Bp // bb

    # --- pad the output-feature dim up to a lane-dense multiple of 128 -------------------------
    Cp = _round_up(C, LANE)
    w3, b3 = params["w3"], params["b3"]
    if Cp != C:
        w3 = jnp.pad(w3, ((0, 0), (0, Cp - C)))
        b3 = jnp.pad(b3, ((0, 0), (0, Cp - C)))
        y = jnp.pad(y, ((0, 0), (0, Cp - C)))
    if Bp != B:
        x = jnp.pad(x, ((0, Bp - B), (0, 0)))
        y = jnp.pad(y, ((0, Bp - B), (0, 0)))

    kernel = functools.partial(_clf_kernel, batch=B, n_cols=C, block_b=bb)

    # Weights/biases have constant index_maps -> fetched once; single-buffer them to save VMEM.
    resident = pl.Buffered(1)

    out_p, loss_parts = pl.pallas_call(
        kernel,
        out_shape=(
            jax.ShapeDtypeStruct((Bp, Cp), jnp.float32),
            jax.ShapeDtypeStruct((n_tiles, 1), jnp.float32),
        ),
        grid=(n_tiles,),
        in_specs=[
            pl.BlockSpec((bb, K1), lambda i: (i, 0)),                               # x  (tiled)
            pl.BlockSpec((bb, Cp), lambda i: (i, 0)),                               # y  (tiled)
            pl.BlockSpec((K1, H1), lambda i: (0, 0), pipeline_mode=resident),       # w1 bf16
            pl.BlockSpec((1, H1), lambda i: (0, 0), pipeline_mode=resident),        # b1 f32
            pl.BlockSpec((H1, H2), lambda i: (0, 0), pipeline_mode=resident),       # w2 bf16
            pl.BlockSpec((1, H2), lambda i: (0, 0), pipeline_mode=resident),        # b2 f32
            pl.BlockSpec((H2, Cp), lambda i: (0, 0), pipeline_mode=resident),       # w3 bf16
            pl.BlockSpec((1, Cp), lambda i: (0, 0), pipeline_mode=resident),        # b3 f32
        ],
        out_specs=(
            pl.BlockSpec((bb, Cp), lambda i: (i, 0)),                                    # out
            pl.BlockSpec((1, 1), lambda i: (i, 0), memory_space=pltpu.MemorySpace.SMEM), # loss part
        ),
        compiler_params=pltpu.CompilerParams(
            dimension_semantics=("parallel",),            # batch tiles are independent
            vmem_limit_bytes=32 * 1024 * 1024,            # honest limit; fits 64 MiB v7x VMEM
        ),
    )(
        x, y,
        params["w1"], params["b1"],
        params["w2"], params["b2"],
        w3, b3,
    )

    out = out_p[:B, :C]
    loss = jnp.sum(loss_parts) / (B * C)   # BCEWithLogitsLoss default reduction='mean'
    return out, loss


def init_params(key, out_features):
    """PyTorch-default init: Linear weights/bias ~ U(-1/sqrt(fan_in), +), BN gamma=1, beta=0."""
    ks = jax.random.split(key, 6)

    def lin(kw, kb, fan_in, fan_out):
        bound = 1.0 / jnp.sqrt(fan_in)
        w = jax.random.uniform(kw, (fan_in, fan_out), jnp.float32, -bound, bound)
        b = jax.random.uniform(kb, (1, fan_out), jnp.float32, -bound, bound)
        return w, b

    w1, b1 = lin(ks[0], ks[1], 32, 1024)
    w2, b2 = lin(ks[2], ks[3], 1024, 2048)
    w3, b3 = lin(ks[4], ks[5], 2048, out_features)
    return dict(
        w1=w1, b1=b1, g1=jnp.ones((1, 1024), jnp.float32), be1=jnp.zeros((1, 1024), jnp.float32),
        w2=w2, b2=b2, g2=jnp.ones((1, 2048), jnp.float32), be2=jnp.zeros((1, 2048), jnp.float32),
        w3=w3, b3=b3,
    )


def fold_params(params):
    """Fold eval-mode BatchNorm (running_mean=0, running_var=1, learned gamma/beta) into the
    preceding Linear layers, and cast the weight matrices (the DMA-dominant bytes) to bf16."""
    inv_std = 1.0 / jnp.sqrt(jnp.float32(1.0 + EPS))
    s1 = params["g1"] * inv_std                          # (1, 1024)
    s2 = params["g2"] * inv_std                          # (1, 2048)
    return dict(
        w1=(params["w1"] * s1).astype(jnp.bfloat16),
        b1=(params["b1"] * s1 + params["be1"]).astype(jnp.float32),
        w2=(params["w2"] * s2).astype(jnp.bfloat16),
        b2=(params["b2"] * s2 + params["be2"]).astype(jnp.float32),
        w3=params["w3"].astype(jnp.bfloat16),
        b3=params["b3"].astype(jnp.float32),
    )


def _reference(x, y, kp):
    """Pure-JAX reference using the same folded (bf16) weights, f32 math throughout."""
    h1 = x @ kp["w1"].astype(jnp.float32) + kp["b1"]
    h2 = h1 @ kp["w2"].astype(jnp.float32) + kp["b2"]
    z = h2 @ kp["w3"].astype(jnp.float32) + kp["b3"]
    out = jax.nn.sigmoid(z)
    bce = jnp.maximum(out, 0.0) - out * y + jnp.log1p(jnp.exp(-jnp.abs(out)))
    return out, jnp.mean(bce)


if __name__ == "__main__":
    key = jax.random.PRNGKey(0)
    k_x, k_y, k_p = jax.random.split(key, 3)

    B, IN_FEATURES, OUT_FEATURES = 8, 32, 16
    x = jax.random.normal(k_x, (B, IN_FEATURES), jnp.float32)
    y = jax.random.bernoulli(k_y, 0.5, (B, OUT_FEATURES)).astype(jnp.float32)

    params = init_params(k_p, OUT_FEATURES)
    kparams = fold_params(params)

    out, loss = linear_classifier_forward(x, y, kparams)
    jax.block_until_ready((out, loss))

    assert out.shape == (B, OUT_FEATURES)
    assert jnp.all(jnp.isfinite(out)) and jnp.isfinite(loss)

    # Loose numerical check vs. pure-JAX reference (bf16 intermediates in the kernel).
    ref_out, ref_loss = _reference(x, y, kparams)
    assert jnp.max(jnp.abs(out - ref_out)) < 5e-2
    assert jnp.abs(loss - ref_loss) < 5e-2

    print("KERNEL_OK")
</pallas_src>

<mosaic_0001>
module attributes {stable_mosaic.version = 11 : i64} {
  func.func @_clf_kernel(%arg0: i32, %arg1: memref<16x32xf32, #tpu.memory_space<vmem>>, %arg2: memref<16x128xf32, #tpu.memory_space<vmem>>, %arg3: memref<32x1024xbf16, #tpu.memory_space<vmem>>, %arg4: memref<1x1024xf32, #tpu.memory_space<vmem>>, %arg5: memref<1024x2048xbf16, #tpu.memory_space<vmem>>, %arg6: memref<1x2048xf32, #tpu.memory_space<vmem>>, %arg7: memref<2048x128xbf16, #tpu.memory_space<vmem>>, %arg8: memref<1x128xf32, #tpu.memory_space<vmem>>, %arg9: memref<16x128xf32, #tpu.memory_space<vmem>>, %arg10: memref<1x1xf32, #tpu.memory_space<smem>>) attributes {dimension_semantics = [#tpu.dimension_semantics<parallel>], iteration_bounds = array<i64: 1>, scalar_prefetch = 0 : i64, scratch_operands = 0 : i64, tpu.core_type = #tpu.core_type<tc>, window_params = [{transform_indices = @transform_0, window_bounds = array<i64: 16, 32>}, {transform_indices = @transform_1, window_bounds = array<i64: 16, 128>}, {pipeline_mode = #tpu.pipeline_mode<synchronous>, transform_indices = @transform_2, window_bounds = array<i64: 32, 1024>}, {pipeline_mode = #tpu.pipeline_mode<synchronous>, transform_indices = @transform_3, window_bounds = array<i64: 1, 1024>}, {pipeline_mode = #tpu.pipeline_mode<synchronous>, transform_indices = @transform_4, window_bounds = array<i64: 1024, 2048>}, {pipeline_mode = #tpu.pipeline_mode<synchronous>, transform_indices = @transform_5, window_bounds = array<i64: 1, 2048>}, {pipeline_mode = #tpu.pipeline_mode<synchronous>, transform_indices = @transform_6, window_bounds = array<i64: 2048, 128>}, {pipeline_mode = #tpu.pipeline_mode<synchronous>, transform_indices = @transform_7, window_bounds = array<i64: 1, 128>}, {transform_indices = @transform_8, window_bounds = array<i64: 16, 128>}, {transform_indices = @transform_9, window_bounds = array<i64: 1, 1>}]} {
    %c0 = arith.constant 0 : index
    %c0_0 = arith.constant 0 : index
    %0 = vector.load %arg1[%c0, %c0_0] : memref<16x32xf32, #tpu.memory_space<vmem>>, vector<16x32xf32>
    %1 = arith.truncf %0 : vector<16x32xf32> to vector<16x32xbf16>
    %c0_1 = arith.constant 0 : index
    %c0_2 = arith.constant 0 : index
    %2 = vector.load %arg3[%c0_1, %c0_2] : memref<32x1024xbf16, #tpu.memory_space<vmem>>, vector<32x1024xbf16>
    %cst = arith.constant dense<0.000000e+00> : vector<16x1024xf32>
    %3 = tpu.matmul %1, %2, %cst {dimension_numbers = #tpu.dot_dimension_numbers<[1], [0], [0], [1], [0, 0, 1, 1], [], []>} : vector<16x32xbf16>, vector<32x1024xbf16>, vector<16x1024xf32> -> vector<16x1024xf32>
    %c0_3 = arith.constant 0 : index
    %c0_4 = arith.constant 0 : index
    %4 = vector.load %arg4[%c0_3, %c0_4] : memref<1x1024xf32, #tpu.memory_space<vmem>>, vector<1x1024xf32>
    %5 = vector.broadcast %4 : vector<1x1024xf32> to vector<16x1024xf32>
    %6 = arith.addf %3, %5 : vector<16x1024xf32>
    %7 = arith.truncf %6 : vector<16x1024xf32> to vector<16x1024xbf16>
    %c0_5 = arith.constant 0 : index
    %c0_6 = arith.constant 0 : index
    %8 = vector.load %arg5[%c0_5, %c0_6] : memref<1024x2048xbf16, #tpu.memory_space<vmem>>, vector<1024x2048xbf16>
    %cst_7 = arith.constant dense<0.000000e+00> : vector<16x2048xf32>
    %9 = tpu.matmul %7, %8, %cst_7 {dimension_numbers = #tpu.dot_dimension_numbers<[1], [0], [0], [1], [0, 0, 1, 1], [], []>} : vector<16x1024xbf16>, vector<1024x2048xbf16>, vector<16x2048xf32> -> vector<16x2048xf32>
    %c0_8 = arith.constant 0 : index
    %c0_9 = arith.constant 0 : index
    %10 = vector.load %arg6[%c0_8, %c0_9] : memref<1x2048xf32, #tpu.memory_space<vmem>>, vector<1x2048xf32>
    %11 = vector.broadcast %10 : vector<1x2048xf32> to vector<16x2048xf32>
    %12 = arith.addf %9, %11 : vector<16x2048xf32>
    %13 = arith.truncf %12 : vector<16x2048xf32> to vector<16x2048xbf16>
    %c0_10 = arith.constant 0 : index
    %c0_11 = arith.constant 0 : index
    %14 = vector.load %arg7[%c0_10, %c0_11] : memref<2048x128xbf16, #tpu.memory_space<vmem>>, vector<2048x128xbf16>
    %cst_12 = arith.constant dense<0.000000e+00> : vector<16x128xf32>
    %15 = tpu.matmul %13, %14, %cst_12 {dimension_numbers = #tpu.dot_dimension_numbers<[1], [0], [0], [1], [0, 0, 1, 1], [], []>} : vector<16x2048xbf16>, vector<2048x128xbf16>, vector<16x128xf32> -> vector<16x128xf32>
    %c0_13 = arith.constant 0 : index
    %c0_14 = arith.constant 0 : index
    %16 = vector.load %arg8[%c0_13, %c0_14] : memref<1x128xf32, #tpu.memory_space<vmem>>, vector<1x128xf32>
    %17 = vector.broadcast %16 : vector<1x128xf32> to vector<16x128xf32>
    %18 = arith.addf %15, %17 : vector<16x128xf32>
    %19 = arith.negf %18 : vector<16x128xf32>
    %20 = math.exp %19 : vector<16x128xf32>
    %cst_15 = arith.constant 1.000000e+00 : f32
    %21 = vector.broadcast %cst_15 : f32 to vector<16x128xf32>
    %22 = arith.addf %21, %20 : vector<16x128xf32>
    %23 = arith.divf %21, %22 : vector<16x128xf32>
    %c0_16 = arith.constant 0 : index
    %c0_17 = arith.constant 0 : index
    %24 = vector.load %arg9[%c0_16, %c0_17] : memref<16x128xf32, #tpu.memory_space<vmem>>, vector<16x128xf32>
    tpu.vector_store %arg9[%c0_16, %c0_17], %23 {strides = array<i32>} : memref<16x128xf32, #tpu.memory_space<vmem>>, vector<16x128xf32>,
    %c0_18 = arith.constant 0 : index
    %c0_19 = arith.constant 0 : index
    %25 = vector.load %arg2[%c0_18, %c0_19] : memref<16x128xf32, #tpu.memory_space<vmem>>, vector<16x128xf32>
    %26 = arith.mulf %23, %25 : vector<16x128xf32>
    %27 = arith.subf %23, %26 : vector<16x128xf32>
    %cst_20 = arith.constant 0.000000e+00 : f32
    %28 = vector.broadcast %cst_20 : f32 to vector<16x128xf32>
    %29 = arith.subf %28, %23 : vector<16x128xf32>
    %30 = math.exp %29 : vector<16x128xf32>
    %31 = math.log1p %30 : vector<16x128xf32>
    %32 = arith.addf %27, %31 : vector<16x128xf32>
    %c16_i32 = arith.constant 16 : i32
    %33 = arith.muli %arg0, %c16_i32 : i32
    %34 = tpu.iota {dimensions = array<i32: 0>} : vector<16x128xi32>
    %35 = vector.broadcast %33 : i32 to vector<16x128xi32>
    %36 = arith.addi %35, %34 : vector<16x128xi32>
    %37 = tpu.iota {dimensions = array<i32: 1>} : vector<16x128xi32>
    %c8_i32 = arith.constant 8 : i32
    %38 = vector.broadcast %c8_i32 : i32 to vector<16x128xi32>
    %39 = arith.cmpi slt, %36, %38 : vector<16x128xi32>
    %c16_i32_21 = arith.constant 16 : i32
    %40 = vector.broadcast %c16_i32_21 : i32 to vector<16x128xi32>
    %41 = arith.cmpi slt, %37, %40 : vector<16x128xi32>
    %42 = arith.andi %39, %41 : vector<16x128xi1>
    %cst_22 = arith.constant 0.000000e+00 : f32
    %43 = vector.broadcast %cst_22 : f32 to vector<16x128xf32>
    %44 = arith.select %42, %32, %43 : vector<16x128xi1>, vector<16x128xf32>
    %45 = vector.shape_cast %44 : vector<16x128xf32> to vector<1x16x128xf32>
    %cst_23 = arith.constant dense<0.000000e+00> : vector<1xf32>
    %46 = vector.multi_reduction <add>, %45, %cst_23 [1, 2] : vector<1x16x128xf32> to vector<1xf32>
    %47 = vector.shape_cast %46 : vector<1xf32> to vector<1x1x1xf32>
    %48 = vector.extract %47[0, 0, 0] : f32 from vector<1x1x1xf32>
    %c0_24 = arith.constant 0 : index
    %c0_25 = arith.constant 0 : index
    %49 = memref.load %arg10[%c0_24, %c0_25] : memref<1x1xf32, #tpu.memory_space<smem>>
    memref.store %48, %arg10[%c0_24, %c0_25] : memref<1x1xf32, #tpu.memory_space<smem>>
    return
  }
  func.func @transform_0(%arg0: i32) -> (i32, i32) {
    %c0_i32 = arith.constant 0 : i32
    %c0_i32_0 = arith.constant 0 : i32
    return %arg0, %c0_i32 : i32, i32
  }
  func.func @transform_1(%arg0: i32) -> (i32, i32) {
    %c0_i32 = arith.constant 0 : i32
    %c0_i32_0 = arith.constant 0 : i32
    return %arg0, %c0_i32 : i32, i32
  }
  func.func @transform_2(%arg0: i32) -> (i32, i32) {
    %c0_i32 = arith.constant 0 : i32
    %c0_i32_0 = arith.constant 0 : i32
    %c0_i32_1 = arith.constant 0 : i32
    return %c0_i32, %c0_i32_0 : i32, i32
  }
  func.func @transform_3(%arg0: i32) -> (i32, i32) {
    %c0_i32 = arith.constant 0 : i32
    %c0_i32_0 = arith.constant 0 : i32
    %c0_i32_1 = arith.constant 0 : i32
    return %c0_i32, %c0_i32_0 : i32, i32
  }
  func.func @transform_4(%arg0: i32) -> (i32, i32) {
    %c0_i32 = arith.constant 0 : i32
    %c0_i32_0 = arith.constant 0 : i32
    %c0_i32_1 = arith.constant 0 : i32
    return %c0_i32, %c0_i32_0 : i32, i32
  }
  func.func @transform_5(%arg0: i32) -> (i32, i32) {
    %c0_i32 = arith.constant 0 : i32
    %c0_i32_0 = arith.constant 0 : i32
    %c0_i32_1 = arith.constant 0 : i32
    return %c0_i32, %c0_i32_0 : i32, i32
  }
  func.func @transform_6(%arg0: i32) -> (i32, i32) {
    %c0_i32 = arith.constant 0 : i32
    %c0_i32_0 = arith.constant 0 : i32
    %c0_i32_1 = arith.constant 0 : i32
    return %c0_i32, %c0_i32_0 : i32, i32
  }
  func.func @transform_7(%arg0: i32) -> (i32, i32) {
    %c0_i32 = arith.constant 0 : i32
    %c0_i32_0 = arith.constant 0 : i32
    %c0_i32_1 = arith.constant 0 : i32
    return %c0_i32, %c0_i32_0 : i32, i32
  }
  func.func @transform_8(%arg0: i32) -> (i32, i32) {
    %c0_i32 = arith.constant 0 : i32
    %c0_i32_0 = arith.constant 0 : i32
    return %arg0, %c0_i32 : i32, i32
  }
  func.func @transform_9(%arg0: i32) -> (i32, i32) {
    %c0_i32 = arith.constant 0 : i32
    %c0_i32_0 = arith.constant 0 : i32
    return %arg0, %c0_i32 : i32, i32
  }
}

</mosaic_0001>

<bundles_post_ra>
// kernel: linear_classifier_forward.1
= control target key start
LH: loop header
LB: loop body
LE: loop exit
PB: predicated region body
PF: predicated region fallthrough
CT: control target
= control target key end

     0   :  { %15 = vsyncpa [#allocation3], 0  ;;  %s12017_s0 = inlined_call_operand.vmem [shape: f32[16,32], index: 0, kind: input, shape index: {}]   ;;  %s12018_s1 = inlined_call_operand.vmem [shape: f32[16,128], index: 1, kind: input, shape index: {}]   ;;  %s12019_s2 = inlined_call_operand.hbm [shape: bf16[32,1024], index: 2, kind: input, shape index: {}]   ;;  %s12020_s3 = inlined_call_operand.hbm [shape: f32[1,1024], index: 3, kind: input, shape index: {}]   ;;  %s12021_s4 = inlined_call_operand.hbm [shape: bf16[1024,2048], index: 4, kind: input, shape index: {}]   ;;  %s12022_s5 = inlined_call_operand.hbm [shape: f32[1,2048], index: 5, kind: input, shape index: {}]   ;;  %s12023_s6 = inlined_call_operand.vmem [shape: bf16[2048,128], index: 6, kind: input, shape index: {}]   ;;  %s12024_s7 = inlined_call_operand.vmem [shape: f32[1,128], index: 7, kind: input, shape index: {}]   ;;  %s12025_s8 = inlined_call_operand.vmem [shape: f32[16,128], index: 8, kind: output, shape index: {0}]   ;;  %s12026_s9 = inlined_call_operand.hbm [shape: f32[1,1], index: 9, kind: output, shape index: {1}]  }
   0x1   :  { %16 = vsyncpa [#allocation6], 0 }
   0x2   :  { %17 = vsyncpa [#allocation9], 0 }
   0x3   :  { %18 = vsyncpa [#allocation4], 0  ;;  %s11220_s30 = smov [#allocation5]   ;;  %s11221_s11 = smov [#allocation2]  }
   0x4   :  { %s41_s10 = sshll.u32 %s11220_s30, 4  ;;  %s28_s12 = sshll.u32 %s11221_s11, 4  ;;  %s42_s10 = int_to_ptr.vmem [resolvable:$true] %s41_s10  ;;  %s11280_s12 = int_to_ptr.vmem [resolvable:$true] %s28_s12 }
   0x5   :  { %s11114_s15 = scalar_lea.hbm %s12020_s3, 128 }
   0x6   :  { %p11115_p0 = scmp.ne.s32.totalorder %s12020_s3, %s11114_s15  ;;  %p11118_p1 = scmp.lt.u32.totalorder %s11114_s15, %s12020_s3 }
   0x8   :  { %p11120_p2 = pnand %p11118_p1, %p11115_p0 }
   0xa   :  { %11123 = shalt.err (!%p11120_p2)
}
   0xb   :  { %s11124_s20 = scalar_lea.vmem %s42_s10, 128  ;;  %p11129_p4 = scmp.lt.s32.totalorder %s42_s10, %s42_s10 }
   0xc   :  { %p11125_p3 = scmp.ne.s32.totalorder %s42_s10, %s11124_s20  ;;  %p11130_p5 = scmp.lt.s32.totalorder %s11124_s20, %s11124_s20 }
   0xe   :  { %p11131_p6 = por %p11130_p5, %p11129_p4 }
  0x10   :  { %p11132_p7 = pnand %p11131_p6, %p11125_p3 }
  0x12   :  { %11135 = shalt.err (!%p11132_p7)
}
  0x13   :  { %44 = dma.hbm_to_vmem [thread:$0]  %s12020_s3, 128, %s42_s10, [#allocation6]  }
  0x14   :  { %s11136_s25 = scalar_lea.hbm %s12019_s2, 2048 }
  0x15   :  { %p11137_p8 = scmp.ne.s32.totalorder %s12019_s2, %s11136_s25  ;;  %p11140_p9 = scmp.lt.u32.totalorder %s11136_s25, %s12019_s2 }
  0x17   :  { %p11142_p10 = pnand %p11140_p9, %p11137_p8 }
  0x19   :  { %11145 = shalt.err (!%p11142_p10)
}
  0x1a   :  { %s11146_s30 = scalar_lea.vmem %s11280_s12, 2048  ;;  %p11151_p12 = scmp.lt.s32.totalorder %s11280_s12, %s11280_s12 }
  0x1b   :  { %p11147_p11 = scmp.ne.s32.totalorder %s11280_s12, %s11146_s30  ;;  %p11152_p13 = scmp.lt.s32.totalorder %s11146_s30, %s11146_s30 }
  0x1d   :  { %p11153_p0 = por %p11152_p13, %p11151_p12 }
  0x1f   :  { %p11154_p1 = pnand %p11153_p0, %p11147_p11 }
  0x21   :  { %11157 = shalt.err (!%p11154_p1)
}
  0x22   :  { %s11222_s3 = smov 512   ;;  %s11223_s10 = smov 32  }
  0x23   :  { %34 = dma.hbm_to_vmem [thread:$0]  %s12019_s2, 2048, %s11280_s12, [#allocation3], %s11222_s3, %s11222_s3, %s11223_s10  }
  0x24   :  { %s11224_s14 = smov [#allocation7]   ;;  %s11158_s18 = scalar_lea.hbm %s12021_s4, 131072 }
  0x25   :  { %s50_s15 = sshll.u32 %s11224_s14, 4  ;;  %p11159_p2 = scmp.ne.s32.totalorder %s12021_s4, %s11158_s18  ;;  %s51_s15 = int_to_ptr.vmem [resolvable:$true] %s50_s15 }
  0x26   :  { %p11162_p3 = scmp.lt.u32.totalorder %s11158_s18, %s12021_s4 }
  0x28   :  { %p11164_p4 = pnand %p11162_p3, %p11159_p2 }
  0x2a   :  { %11167 = shalt.err (!%p11164_p4)
}
  0x2b   :  { %s11168_s23 = scalar_lea.vmem %s51_s15, 131072  ;;  %p11173_p6 = scmp.lt.s32.totalorder %s51_s15, %s51_s15 }
  0x2c   :  { %p11169_p5 = scmp.ne.s32.totalorder %s51_s15, %s11168_s23  ;;  %p11174_p7 = scmp.lt.s32.totalorder %s11168_s23, %s11168_s23 }
  0x2e   :  { %p11175_p8 = por %p11174_p7, %p11173_p6 }
  0x30   :  { %p11176_p9 = pnand %p11175_p8, %p11169_p5 }
  0x32   :  { %11179 = shalt.err (!%p11176_p9)
}
  0x33   :  { %s11225_s2 = smov 1024   ;;  %s11226_s12 = smov 64  }
  0x34   :  { %56 = dma.hbm_to_vmem [thread:$0]  %s12021_s4, 131072, %s51_s15, [#allocation6], %s11225_s2, %s11225_s2, %s11226_s12  }
  0x35   :  { %s11227_s26 = smov [#allocation8]   ;;  %s11180_s30 = scalar_lea.hbm %s12022_s5, 256 }
  0x36   :  { %s63_s27 = sshll.u32 %s11227_s26, 4  ;;  %p11181_p10 = scmp.ne.s32.totalorder %s12022_s5, %s11180_s30  ;;  %s64_s27 = int_to_ptr.vmem [resolvable:$true] %s63_s27 }
  0x37   :  { %p11184_p11 = scmp.lt.u32.totalorder %s11180_s30, %s12022_s5 }
  0x39   :  { %p11186_p12 = pnand %p11184_p11, %p11181_p10 }
  0x3b   :  { %11189 = shalt.err (!%p11186_p12)
}
  0x3c   :  { %s11190_s14 = scalar_lea.vmem %s64_s27, 256  ;;  %p11195_p0 = scmp.lt.s32.totalorder %s64_s27, %s64_s27 }
  0x3d   :  { %p11191_p13 = scmp.ne.s32.totalorder %s64_s27, %s11190_s14  ;;  %p11196_p1 = scmp.lt.s32.totalorder %s11190_s14, %s11190_s14 }
  0x3f   :  { %p11197_p2 = por %p11196_p1, %p11195_p0 }
  0x41   :  { %p11198_p3 = pnand %p11197_p2, %p11191_p13 }
  0x43   :  { %11201 = shalt.err (!%p11198_p3)
}
  0x44   :  { %66 = dma.hbm_to_vmem [thread:$0]  %s12022_s5, 256, %s64_s27, [#allocation9]  }
  0x45   :  { %11212 = dma.done.wait [#allocation3], 2048  }
  0x46   :  { %11213 = vsyncadd [#allocation3], 4294965248 }
  0x47   :  { %11214 = dma.done.wait [#allocation6], 131200  }
  0x48   :  { %11215 = vsyncadd [#allocation6], 4294836096 }
  0x49   :  { %11216 = dma.done.wait [#allocation9], 256  }
  0x4a   :  { %11217 = vsyncadd [#allocation9], 4294967040  ;;  %v11228_v0 = vmov 0   ;;  %v87_v1 = vld [vmem:[#allocation2] sm:$0xff]  ;;  %v88_v8 = vld [vmem:[#allocation2 + $0x8] sm:$0xff]  ;;  %vm225_vm0 = vcmask 261120  }
  0x4b   :  { %261 = vmatprep.mubr.bf16.mxu0 %v11228_v0  ;;  %304 = vmatprep.mubr.bf16.mxu1 %v11228_v0  ;;  %v91_v2 = vld [vmem:[#allocation2 + $0x20] sm:$0xff]  ;;  %v92_v9 = vld [vmem:[#allocation2 + $0x28] sm:$0xff]  ;;  %v89_v14 = vld [vmem:[#allocation2 + $0x10] sm:$0xff]  ;;  %s11202_s21 = scalar_lea.hbm %s12026_s9, 16 }
  0x4c   :  { %v95_v3 = vld [vmem:[#allocation2 + $0x40] sm:$0xff]  ;;  %v9483_v4 = vcombine.high %v87_v1, %v91_v2  ;;  %v9482_v5 = vcombine.low %v87_v1, %v91_v2  ;;  %v96_v10 = vld [vmem:[#allocation2 + $0x48] sm:$0xff]  ;;  %v9485_v11 = vcombine.high %v88_v8, %v92_v9  ;;  %v9484_v12 = vcombine.low %v88_v8, %v92_v9  ;;  %v93_v15 = vld [vmem:[#allocation2 + $0x30] sm:$0xff]  ;;  %p11203_p4 = scmp.ne.s32.totalorder %s12026_s9, %s11202_s21  ;;  %p11206_p5 = scmp.lt.u32.totalorder %s11202_s21, %s12026_s9 }
  0x4d   :  { %v99_v6 = vld [vmem:[#allocation2 + $0x60] sm:$0xff]  ;;  %v100_v13 = vld [vmem:[#allocation2 + $0x68] sm:$0xff]  ;;  %v90_v20 = vld [vmem:[#allocation2 + $0x18] sm:$0xff]  ;;  %v9487_v21 = vcombine.high %v89_v14, %v93_v15  ;;  %v9486_v28 = vcombine.low %v89_v14, %v93_v15 }
  0x4e   :  { %v9491_v7 = vcombine.high %v95_v3, %v99_v6  ;;  %229 = vmatprep.subr.bf16.mxu0 %v9483_v4  ;;  %v9490_v16 = vcombine.low %v95_v3, %v99_v6  ;;  %v84_v17 = vld [vmem:[%s12017_s0] sm:$0xff]  ;;  %v85_v18 = vld [vmem:[%s12017_s0 + $0x8] sm:$0xff]  ;;  %v9493_v19 = vcombine.high %v96_v10, %v100_v13  ;;  %272 = vmatprep.subr.bf16.mxu1 %v9485_v11  ;;  %v94_v22 = vld [vmem:[#allocation2 + $0x38] sm:$0xff]  ;;  %p11208_p6 = pnand %p11206_p5, %p11203_p4 }
  0x4f   :  { %230 = vmatpush1.bf16.msra.mxu0 %v9482_v5  ;;  %273 = vmatpush1.bf16.msra.mxu1 %v9484_v12  ;;  %v9492_v23 = vcombine.low %v96_v10, %v100_v13  ;;  %v97_v24 = vld [vmem:[#allocation2 + $0x50] sm:$0xff]  ;;  %v86_v26 = vpack.c.bf16 %v85_v18, %v84_v17  ;;  %v9489_v27 = vcombine.high %v90_v20, %v94_v22  ;;  %v98_v29 = vld [vmem:[#allocation2 + $0x58] sm:$0xff]  ;;  %v409_v33 = vld [vmem:[#allocation7] sm:$0xff] }
  0x50   :  { %231 = vmatprep.subr.bf16.mxu0 %v9491_v7  ;;  %v101_v25 = vld [vmem:[#allocation2 + $0x70] sm:$0xff]  ;;  %274 = vmatprep.subr.bf16.mxu1 %v9493_v19  ;;  %v102_v30 = vld [vmem:[#allocation2 + $0x78] sm:$0xff]  ;;  %v9488_v32 = vcombine.low %v90_v20, %v94_v22  ;;  %v417_v34 = vld [vmem:[#allocation7 + $0x40] sm:$0xff] }
  0x51   :  { %v9495_v31 = vcombine.high %v97_v24, %v101_v25  ;;  %v9497_v35 = vcombine.high %v98_v29, %v102_v30  ;;  %v9494_v36 = vcombine.low %v97_v24, %v101_v25  ;;  %v410_v37 = vld [vmem:[#allocation7 + $0x8] sm:$0xff]  ;;  %v9503_v39 = vcombine.high %v409_v33, %v417_v34  ;;  %v425_v41 = vld [vmem:[#allocation7 + $0x80] sm:$0xff] }
  0x52   :  { %v418_v38 = vld [vmem:[#allocation7 + $0x48] sm:$0xff]  ;;  %v9496_v40 = vcombine.low %v98_v29, %v102_v30  ;;  %v433_v42 = vld [vmem:[#allocation7 + $0xc0] sm:$0xff]  ;;  %v9502_v44 = vcombine.low %v409_v33, %v417_v34 }
  0x53   :  { %232 = vmatpush1.bf16.msra.mxu0 %v9490_v16  ;;  %275 = vmatpush1.bf16.msra.mxu1 %v9492_v23  ;;  %v9505_v43 = vcombine.high %v410_v37, %v418_v38  ;;  %v426_v45 = vld [vmem:[#allocation7 + $0x88] sm:$0xff]  ;;  %v9519_v47 = vcombine.high %v425_v41, %v433_v42  ;;  %v9504_v48 = vcombine.low %v410_v37, %v418_v38  ;;  %v441_v49 = vld [vmem:[#allocation7 + $0x100] sm:$0xff] }
  0x54   :  { %315 = vmatprep.subr.bf16.mxu0 %v9487_v21  ;;  %358 = vmatprep.subr.bf16.mxu1 %v9489_v27  ;;  %v434_v46 = vld [vmem:[#allocation7 + $0xc8] sm:$0xff]  ;;  %v449_v50 = vld [vmem:[#allocation7 + $0x140] sm:$0xff]  ;;  %v9518_v52 = vcombine.low %v425_v41, %v433_v42 }
  0x55   :  { %v9521_v51 = vcombine.high %v426_v45, %v434_v46  ;;  %v442_v53 = vld [vmem:[#allocation7 + $0x108] sm:$0xff]  ;;  %v9535_v55 = vcombine.high %v441_v49, %v449_v50  ;;  %v9520_v56 = vcombine.low %v426_v45, %v434_v46  ;;  %v457_v57 = vld [vmem:[#allocation7 + $0x180] sm:$0xff]  ;;  %v9534_v61 = vcombine.low %v441_v49, %v449_v50 }
  0x56   :  { %9498 = vmatmul.mubr.msk.bf16.vlgmr.msra.gmra.mrb[0].mxu0 %vm225_vm0, %v86_v26  ;;  %9499 = vmatmul.mubr.msk.bf16.vlgmr.msra.gmra.mrb[0].mxu1 %vm225_vm0, %v86_v26  ;;  %v450_v54 = vld [vmem:[#allocation7 + $0x148] sm:$0xff]  ;;  %v465_v58 = vld [vmem:[#allocation7 + $0x1c0] sm:$0xff] }
  0x57   :  { %316 = vmatpush1.bf16.msra.mxu0 %v9486_v28  ;;  %347 = vmatprep.mubr.bf16.mxu0 %v11228_v0  ;;  %v9537_v59 = vcombine.high %v442_v53, %v450_v54  ;;  %v458_v60 = vld [vmem:[#allocation7 + $0x188] sm:$0xff]  ;;  %v473_v63 = vld [vmem:[#allocation7 + $0x200] sm:$0xff]  ;;  %v9551_v1 = vcombine.high %v457_v57, %v465_v58  ;;  %v9536_v2 = vcombine.low %v442_v53, %v450_v54 }
  0x58   :  { %317 = vmatprep.subr.bf16.mxu0 %v9495_v31  ;;  %359 = vmatpush1.bf16.msra.mxu1 %v9488_v32  ;;  %v466_v62 = vld [vmem:[#allocation7 + $0x1c8] sm:$0xff]  ;;  %v9550_v6 = vcombine.low %v457_v57, %v465_v58  ;;  %v489_v7 = vld [vmem:[#allocation7 + $0x280] sm:$0xff] }
  0x59   :  { %390 = vmatprep.mubr.bf16.mxu1 %v11228_v0  ;;  %360 = vmatprep.subr.bf16.mxu1 %v9497_v35  ;;  %v481_v0 = vld [vmem:[#allocation7 + $0x240] sm:$0xff]  ;;  %v474_v3 = vld [vmem:[#allocation7 + $0x208] sm:$0xff]  ;;  %v9553_v5 = vcombine.high %v458_v60, %v466_v62  ;;  %v9552_v10 = vcombine.low %v458_v60, %v466_v62 }
  0x5a   :  { %v482_v4 = vld [vmem:[#allocation7 + $0x248] sm:$0xff]  ;;  %v497_v8 = vld [vmem:[#allocation7 + $0x2c0] sm:$0xff]  ;;  %v9567_v9 = vcombine.high %v473_v63, %v481_v0  ;;  %v9566_v14 = vcombine.low %v473_v63, %v481_v0 }
  0x5b   :  { %318 = vmatpush1.bf16.msra.mxu0 %v9494_v36  ;;  %v490_v11 = vld [vmem:[#allocation7 + $0x288] sm:$0xff]  ;;  %v9569_v13 = vcombine.high %v474_v3, %v482_v4  ;;  %v505_v15 = vld [vmem:[#allocation7 + $0x300] sm:$0xff]  ;;  %v9583_v17 = vcombine.high %v489_v7, %v497_v8  ;;  %v9568_v18 = vcombine.low %v474_v3, %v482_v4  ;;  %v9582_v22 = vcombine.low %v489_v7, %v497_v8 }
  0x5c   :  { %6637 = vmatprep.subr.bf16.mxu0 %v9503_v39  ;;  %361 = vmatpush1.bf16.msra.mxu1 %v9496_v40  ;;  %v498_v12 = vld [vmem:[#allocation7 + $0x2c8] sm:$0xff]  ;;  %v513_v16 = vld [vmem:[#allocation7 + $0x340] sm:$0xff] }
  0x5d   :  { %6809 = vmatprep.subr.bf16.mxu1 %v9505_v43  ;;  %v506_v19 = vld [vmem:[#allocation7 + $0x308] sm:$0xff]  ;;  %v9585_v21 = vcombine.high %v490_v11, %v498_v12  ;;  %v521_v23 = vld [vmem:[#allocation7 + $0x380] sm:$0xff]  ;;  %v9599_v25 = vcombine.high %v505_v15, %v513_v16  ;;  %v9598_v30 = vcombine.low %v505_v15, %v513_v16 }
  0x5e   :  { %9500 = vmatmul.mubr.msk.bf16.vlgmr.msra.gmra.mrb[4].mxu0 %vm225_vm0, %v86_v26  ;;  %v514_v20 = vld [vmem:[#allocation7 + $0x348] sm:$0xff]  ;;  %v529_v24 = vld [vmem:[#allocation7 + $0x3c0] sm:$0xff] }
  0x5f   :  { %6638 = vmatpush1.bf16.msra.mxu0 %v9502_v44  ;;  %9501 = vmatmul.mubr.msk.bf16.vlgmr.msra.gmra.mrb[4].mxu1 %vm225_vm0, %v86_v26  ;;  %v9584_v26 = vcombine.low %v490_v11, %v498_v12  ;;  %v522_v27 = vld [vmem:[#allocation7 + $0x388] sm:$0xff]  ;;  %v9601_v29 = vcombine.high %v506_v19, %v514_v20  ;;  %v537_v31 = vld [vmem:[#allocation7 + $0x400] sm:$0xff]  ;;  %v9615_v33 = vcombine.high %v521_v23, %v529_v24 }
  0x60   :  { %6639 = vmatprep.subr.bf16.mxu0 %v9519_v47  ;;  %6810 = vmatpush1.bf16.msra.mxu1 %v9504_v48  ;;  %v530_v28 = vld [vmem:[#allocation7 + $0x3c8] sm:$0xff]  ;;  %v545_v32 = vld [vmem:[#allocation7 + $0x440] sm:$0xff]  ;;  %v9600_v34 = vcombine.low %v506_v19, %v514_v20  ;;  %v9614_v38 = vcombine.low %v521_v23, %v529_v24 }
  0x61   :  { %6811 = vmatprep.subr.bf16.mxu1 %v9521_v51  ;;  %v538_v35 = vld [vmem:[#allocation7 + $0x408] sm:$0xff]  ;;  %v9617_v37 = vcombine.high %v522_v27, %v530_v28  ;;  %v553_v39 = vld [vmem:[#allocation7 + $0x480] sm:$0xff]  ;;  %v9631_v41 = vcombine.high %v537_v31, %v545_v32  ;;  %v9616_v42 = vcombine.low %v522_v27, %v530_v28  ;;  %v9630_v46 = vcombine.low %v537_v31, %v545_v32 }
  0x62   :  { %v546_v36 = vld [vmem:[#allocation7 + $0x448] sm:$0xff]  ;;  %v561_v40 = vld [vmem:[#allocation7 + $0x4c0] sm:$0xff] }
  0x63   :  { %6640 = vmatpush1.bf16.msra.mxu0 %v9518_v52  ;;  %v554_v43 = vld [vmem:[#allocation7 + $0x488] sm:$0xff]  ;;  %v9633_v45 = vcombine.high %v538_v35, %v546_v36  ;;  %v569_v47 = vld [vmem:[#allocation7 + $0x500] sm:$0xff]  ;;  %v9647_v49 = vcombine.high %v553_v39, %v561_v40  ;;  %v9632_v50 = vcombine.low %v538_v35, %v546_v36  ;;  %v9646_v54 = vcombine.low %v553_v39, %v561_v40 }
  0x64   :  { %6641 = vmatprep.subr.bf16.mxu0 %v9535_v55  ;;  %6812 = vmatpush1.bf16.msra.mxu1 %v9520_v56  ;;  %v562_v44 = vld [vmem:[#allocation7 + $0x4c8] sm:$0xff]  ;;  %v577_v48 = vld [vmem:[#allocation7 + $0x540] sm:$0xff] }
  0x65   :  { %6813 = vmatprep.subr.bf16.mxu1 %v9537_v59  ;;  %v570_v51 = vld [vmem:[#allocation7 + $0x508] sm:$0xff]  ;;  %v9649_v53 = vcombine.high %v554_v43, %v562_v44  ;;  %v585_v55 = vld [vmem:[#allocation7 + $0x580] sm:$0xff]  ;;  %v9663_v57 = vcombine.high %v569_v47, %v577_v48  ;;  %v9648_v58 = vcombine.low %v554_v43, %v562_v44  ;;  %v9662_v62 = vcombine.low %v569_v47, %v577_v48  ;;  %v11358_v48 = vld [vmem:[#allocation5] sm:$0xff] }
  0x66   :  { %v578_v52 = vld [vmem:[#allocation7 + $0x548] sm:$0xff]  ;;  %v593_v56 = vld [vmem:[#allocation7 + $0x5c0] sm:$0xff]  ;;  %v12027_v44 = vlaneseq }
  0x67   :  { %6642 = vmatpush1.bf16.msra.mxu0 %v9534_v61  ;;  %v586_v59 = vld [vmem:[#allocation7 + $0x588] sm:$0xff]  ;;  %v9665_v61 = vcombine.high %v570_v51, %v578_v52  ;;  %v601_v63 = vld [vmem:[#allocation7 + $0x600] sm:$0xff] }
  0x68   :  { %6643 = vmatprep.subr.bf16.mxu0 %v9551_v1  ;;  %6814 = vmatpush1.bf16.msra.mxu1 %v9536_v2  ;;  %v594_v60 = vld [vmem:[#allocation7 + $0x5c8] sm:$0xff]  ;;  %v609_v0 = vld [vmem:[#allocation7 + $0x640] sm:$0xff]  ;;  %v9679_v1 = vcombine.high %v585_v55, %v593_v56  ;;  %v9664_v2 = vcombine.low %v570_v51, %v578_v52 }
  0x69   :  { %6815 = vmatprep.subr.bf16.mxu1 %v9553_v5  ;;  %v602_v3 = vld [vmem:[#allocation7 + $0x608] sm:$0xff]  ;;  %v9681_v5 = vcombine.high %v586_v59, %v594_v60  ;;  %v617_v7 = vld [vmem:[#allocation7 + $0x680] sm:$0xff] }
  0x6a   :  { %v610_v4 = vld [vmem:[#allocation7 + $0x648] sm:$0xff]  ;;  %v625_v8 = vld [vmem:[#allocation7 + $0x6c0] sm:$0xff] }
  0x6b   :  { %6644 = vmatpush1.bf16.msra.mxu0 %v9550_v6  ;;  %v9678_v6 = vcombine.low %v585_v55, %v593_v56  ;;  %v618_v11 = vld [vmem:[#allocation7 + $0x688] sm:$0xff]  ;;  %v9711_v15 = vcombine.high %v617_v7, %v625_v8  ;;  %v9696_v16 = vcombine.low %v602_v3, %v610_v4  ;;  %v633_v20 = vld [vmem:[#allocation7 + $0x700] sm:$0xff] }
  0x6c   :  { %6645 = vmatprep.subr.bf16.mxu0 %v9567_v9  ;;  %6816 = vmatpush1.bf16.msra.mxu1 %v9552_v10  ;;  %v9695_v9 = vcombine.high %v601_v63, %v609_v0  ;;  %v9680_v10 = vcombine.low %v586_v59, %v594_v60  ;;  %v626_v12 = vld [vmem:[#allocation7 + $0x6c8] sm:$0xff]  ;;  %v649_v28 = vld [vmem:[#allocation7 + $0x780] sm:$0xff] }
  0x6d   :  { %6817 = vmatprep.subr.bf16.mxu1 %v9569_v13  ;;  %v9697_v13 = vcombine.high %v602_v3, %v610_v4  ;;  %v9712_v19 = vcombine.low %v618_v11, %v626_v12  ;;  %v642_v24 = vld [vmem:[#allocation7 + $0x748] sm:$0xff]  ;;  %v11345_v36 = vld [vmem:[#allocation7 + $0x800] sm:$0xff] }
  0x6e   :  { %v658_v32 = vld [vmem:[#allocation7 + $0x7c8] sm:$0xff] }
  0x6f   :  { %6646 = vmatpush1.bf16.msra.mxu0 %v9566_v14  ;;  %v9694_v14 = vcombine.low %v601_v63, %v609_v0  ;;  %v674_v40 = vld [vmem:[#allocation7 + $0x848] sm:$0xff]  ;;  %v681_v0 = vld [vmem:[#allocation7 + $0x880] sm:$0xff] }
  0x70   :  { %6647 = vmatprep.subr.bf16.mxu0 %v9583_v17  ;;  %6818 = vmatpush1.bf16.msra.mxu1 %v9568_v18  ;;  %v9713_v17 = vcombine.high %v618_v11, %v626_v12  ;;  %v9710_v18 = vcombine.low %v617_v7, %v625_v8  ;;  %v690_v7 = vld [vmem:[#allocation7 + $0x8c8] sm:$0xff] }
  0x71   :  { %6819 = vmatprep.subr.bf16.mxu1 %v9585_v21  ;;  %v641_v21 = vld [vmem:[#allocation7 + $0x740] sm:$0xff] }
  0x72   :  { %v9727_v23 = vcombine.high %v633_v20, %v641_v21 }
  0x73   :  { %6648 = vmatpush1.bf16.msra.mxu0 %v9582_v22  ;;  %v634_v22 = vld [vmem:[#allocation7 + $0x708] sm:$0xff] }
  0x74   :  { %6649 = vmatprep.subr.bf16.mxu0 %v9599_v25  ;;  %6820 = vmatpush1.bf16.msra.mxu1 %v9584_v26  ;;  %v9726_v25 = vcombine.low %v633_v20, %v641_v21  ;;  %v9728_v26 = vcombine.low %v634_v22, %v642_v24  ;;  %v9729_v27 = vcombine.high %v634_v22, %v642_v24  ;;  %v705_v21 = vld [vmem:[#allocation7 + $0x940] sm:$0xff]  ;;  %v698_v22 = vld [vmem:[#allocation7 + $0x908] sm:$0xff] }
  0x75   :  { %6821 = vmatprep.subr.bf16.mxu1 %v9601_v29  ;;  %v657_v29 = vld [vmem:[#allocation7 + $0x7c0] sm:$0xff] }
  0x76   :  { %v9743_v31 = vcombine.high %v649_v28, %v657_v29 }
  0x77   :  { %6650 = vmatpush1.bf16.msra.mxu0 %v9598_v30  ;;  %v650_v30 = vld [vmem:[#allocation7 + $0x788] sm:$0xff] }
  0x78   :  { %6651 = vmatprep.subr.bf16.mxu0 %v9615_v33  ;;  %6822 = vmatpush1.bf16.msra.mxu1 %v9600_v34  ;;  %v9742_v33 = vcombine.low %v649_v28, %v657_v29  ;;  %v9744_v34 = vcombine.low %v650_v30, %v658_v32  ;;  %v9745_v35 = vcombine.high %v650_v30, %v658_v32 }
  0x79   :  { %6823 = vmatprep.subr.bf16.mxu1 %v9617_v37  ;;  %v673_v37 = vld [vmem:[#allocation7 + $0x840] sm:$0xff] }
  0x7a   :  { %v9759_v39 = vcombine.high %v11345_v36, %v673_v37 }
  0x7b   :  { %6652 = vmatpush1.bf16.msra.mxu0 %v9614_v38  ;;  %v666_v38 = vld [vmem:[#allocation7 + $0x808] sm:$0xff] }
  0x7c   :  { %6653 = vmatprep.subr.bf16.mxu0 %v9631_v41  ;;  %6824 = vmatpush1.bf16.msra.mxu1 %v9616_v42  ;;  %v9758_v41 = vcombine.low %v11345_v36, %v673_v37  ;;  %v9760_v42 = vcombine.low %v666_v38, %v674_v40  ;;  %v9761_v43 = vcombine.high %v666_v38, %v674_v40  ;;  %v721_v37 = vld [vmem:[#allocation7 + $0x9c0] sm:$0xff]  ;;  %v714_v38 = vld [vmem:[#allocation7 + $0x988] sm:$0xff] }
  0x7d   :  { %6825 = vmatprep.subr.bf16.mxu1 %v9633_v45  ;;  %v11350_v45 = vshrl.u32 %v12027_v44, 7 }
  0x7f   :  { %6654 = vmatpush1.bf16.msra.mxu0 %v9630_v46  ;;  %v11353_v46 = vsub.s32 0, %v11350_v45  ;;  %v11356_v47 = vsub.s32 2, %v11350_v45  ;;  %v11378_v60 = vsub.s32 5, %v11350_v45 }
  0x80   :  { %6655 = vmatprep.subr.bf16.mxu0 %v9647_v49  ;;  %6826 = vmatpush1.bf16.msra.mxu1 %v9632_v50  ;;  %v11361_v49 = vsub.s32 1, %v11350_v45  ;;  %v11364_v50 = vsub.s32 3, %v11350_v45 }
  0x81   :  { %6827 = vmatprep.subr.bf16.mxu1 %v9649_v53  ;;  %v108_v51 = vrot.slane %v11358_v48, %v11353_v46  ;;  %v116_v52 = vrot.slane %v11358_v48, %v11356_v47 }
  0x82   :  { %v120_v55 = vrot.slane %v11358_v48, %v11364_v50 }
  0x83   :  { %6656 = vmatpush1.bf16.msra.mxu0 %v9646_v54  ;;  %v112_v54 = vrot.slane %v11358_v48, %v11361_v49 }
  0x84   :  { %6657 = vmatprep.subr.bf16.mxu0 %v9663_v57  ;;  %6828 = vmatpush1.bf16.msra.mxu1 %v9648_v58  ;;  %v11375_v57 = vsub.s32 4, %v11350_v45 }
  0x85   :  { %6829 = vmatprep.subr.bf16.mxu1 %v9665_v61 }
  0x87   :  { %6658 = vmatpush1.bf16.msra.mxu0 %v9662_v62 }
  0x88   :  { %6659 = vmatprep.subr.bf16.mxu0 %v9679_v1  ;;  %6830 = vmatpush1.bf16.msra.mxu1 %v9664_v2 }
  0x89   :  { %6831 = vmatprep.subr.bf16.mxu1 %v9681_v5  ;;  %v689_v5 = vld [vmem:[#allocation7 + $0x8c0] sm:$0xff] }
  0x8a   :  { %v9774_v28 = vcombine.low %v681_v0, %v689_v5 }
  0x8b   :  { %6660 = vmatpush1.bf16.msra.mxu0 %v9678_v6  ;;  %v682_v6 = vld [vmem:[#allocation7 + $0x888] sm:$0xff] }
  0x8c   :  { %6661 = vmatprep.subr.bf16.mxu0 %v9695_v9  ;;  %6832 = vmatpush1.bf16.msra.mxu1 %v9680_v10  ;;  %v9776_v29 = vcombine.low %v682_v6, %v690_v7 }
  0x8d   :  { %6833 = vmatprep.subr.bf16.mxu1 %v9697_v13  ;;  %v124_v13 = vrot.slane %v11358_v48, %v11375_v57 }
  0x8f   :  { %6662 = vmatpush1.bf16.msra.mxu0 %v9694_v14 }
  0x90   :  { %6663 = vmatprep.subr.bf16.mxu0 %v9711_v15  ;;  %6834 = vmatpush1.bf16.msra.mxu1 %v9696_v16  ;;  %v128_v16 = vrot.slane %v11358_v48, %v11378_v60 }
  0x91   :  { %6835 = vmatprep.subr.bf16.mxu1 %v9713_v17  ;;  %v9775_v17 = vcombine.high %v681_v0, %v689_v5  ;;  %v745_v0 = vld [vmem:[#allocation7 + $0xa80] sm:$0xff] }
  0x93   :  { %6664 = vmatpush1.bf16.msra.mxu0 %v9710_v18  ;;  %v9777_v18 = vcombine.high %v682_v6, %v690_v7 }
  0x94   :  { %6836 = vmatpush1.bf16.msra.mxu1 %v9712_v19  ;;  %6665 = vmatprep.subr.bf16.mxu0 %v9727_v23  ;;  %v697_v19 = vld [vmem:[#allocation7 + $0x900] sm:$0xff]  ;;  %v706_v23 = vld [vmem:[#allocation7 + $0x948] sm:$0xff] }
  0x95   :  { %6837 = vmatprep.subr.bf16.mxu1 %v9729_v27  ;;  %v9791_v32 = vcombine.high %v697_v19, %v705_v21 }
  0x97   :  { %6666 = vmatpush1.bf16.msra.mxu0 %v9726_v25 }
  0x98   :  { %6838 = vmatpush1.bf16.msra.mxu1 %v9728_v26  ;;  %6667 = vmatprep.subr.bf16.mxu0 %v9743_v31 }
  0x99   :  { %6839 = vmatprep.subr.bf16.mxu1 %v9745_v35 }
  0x9b   :  { %6668 = vmatpush1.bf16.msra.mxu0 %v9742_v33  ;;  %v9793_v33 = vcombine.high %v698_v22, %v706_v23 }
  0x9c   :  { %6840 = vmatpush1.bf16.msra.mxu1 %v9744_v34  ;;  %6680 = vmatprep.subr.bf16.mxu0 %v9759_v39  ;;  %v713_v34 = vld [vmem:[#allocation7 + $0x980] sm:$0xff]  ;;  %v722_v39 = vld [vmem:[#allocation7 + $0x9c8] sm:$0xff] }
  0x9d   :  { %6852 = vmatprep.subr.bf16.mxu1 %v9761_v43  ;;  %v9792_v43 = vcombine.low %v698_v22, %v706_v23  ;;  %v777_v22 = vld [vmem:[#allocation7 + $0xb80] sm:$0xff] }
 0x129   :  { %v263_v53 = vpop.f32.mrb[0].mxu0  ;;  %v306_v59 = vpop.f32.mrb[0].mxu1 }
 0x12a   :  { %v265_v56 = vpop.f32.mrb[1].mxu0  ;;  %v264_v61 = vadd.f32 %v263_v53, %v108_v51  ;;  %v307_v1 = vadd.f32 %v306_v59, %v116_v52  ;;  %v308_v2 = vpop.f32.mrb[1].mxu1  ;;  %v9809_v53 = vcombine.high %v714_v38, %v722_v39  ;;  %v9806_v59 = vcombine.low %v713_v34, %v721_v37 }
 0x12b   :  { %v267_v58 = vpop.f32.mrb[2].mxu0  ;;  %v266_v3 = vadd.f32 %v265_v56, %v112_v54  ;;  %v309_v8 = vadd.f32 %v308_v2, %v120_v55  ;;  %v310_v9 = vpop.f32.mrb[2].mxu1  ;;  %v730_v56 = vld [vmem:[#allocation7 + $0xa08] sm:$0xff] }
 0x12c   :  { %v268_v62 = vadd.f32 %v267_v58, %v108_v51  ;;  %v269_v63 = vpop.f32.mrb[3].mxu0  ;;  %v311_v11 = vadd.f32 %v310_v9, %v116_v52  ;;  %v312_v12 = vpop.f32.mrb[3].mxu1  ;;  %v9807_v52 = vcombine.high %v713_v34, %v721_v37  ;;  %v738_v58 = vld [vmem:[#allocation7 + $0xa48] sm:$0xff]  ;;  %v769_v9 = vld [vmem:[#allocation7 + $0xb40] sm:$0xff] }
 0x12d   :  { %v270_v4 = vadd.f32 %v269_v63, %v112_v54  ;;  %v313_v15 = vadd.f32 %v312_v12, %v120_v55  ;;  %v729_v54 = vld [vmem:[#allocation7 + $0xa00] sm:$0xff]  ;;  %v9825_v63 = vcombine.high %v730_v56, %v738_v58  ;;  %v746_v2 = vld [vmem:[#allocation7 + $0xa88] sm:$0xff]  ;;  %v9824_v5 = vcombine.low %v730_v56, %v738_v58 }
 0x12e   :  { %v11380_v10 = vpack.c.bf16 %v268_v62, %v264_v61  ;;  %v11388_v20 = vpack.c.bf16 %v311_v11, %v307_v1  ;;  %v737_v55 = vld [vmem:[#allocation7 + $0xa40] sm:$0xff]  ;;  %v9808_v61 = vcombine.low %v714_v38, %v722_v39  ;;  %v762_v11 = vld [vmem:[#allocation7 + $0xb08] sm:$0xff] }
 0x12f   :  { %v11384_v14 = vpack.c.bf16 %v270_v4, %v266_v3  ;;  %v11392_v24 = vpack.c.bf16 %v313_v15, %v309_v8  ;;  %v9823_v62 = vcombine.high %v729_v54, %v737_v55  ;;  %v753_v1 = vld [vmem:[#allocation7 + $0xac0] sm:$0xff]  ;;  %v754_v3 = vld [vmem:[#allocation7 + $0xac8] sm:$0xff]  ;;  %v9822_v4 = vcombine.low %v729_v54, %v737_v55 }
 0x130   :  { %v9839_v6 = vcombine.high %v745_v0, %v753_v1  ;;  %v9841_v7 = vcombine.high %v746_v2, %v754_v3  ;;  %v761_v8 = vld [vmem:[#allocation7 + $0xb00] sm:$0xff]  ;;  %v770_v12 = vld [vmem:[#allocation7 + $0xb48] sm:$0xff]  ;;  %v9840_v15 = vcombine.low %v746_v2, %v754_v3 }
 0x131   :  { %6669 = vmatprep.mubr.bf16.mxu0 %v11384_v14  ;;  %6841 = vmatprep.mubr.bf16.mxu1 %v11384_v14  ;;  %v349_v25 = vpop.f32.mrb[4].mxu0  ;;  %v793_v38 = vld [vmem:[#allocation7 + $0xc00] sm:$0xff] }
 0x132   :  { %6670 = vmatmul.mubr.bf16.vlgmr.msra.gmra.mrb[8].mxu0 %v11380_v10  ;;  %6842 = vmatmul.mubr.bf16.vlgmr.msra.gmra.mrb[8].mxu1 %v11380_v10  ;;  %v350_v26 = vadd.f32 %v349_v25, %v124_v13  ;;  %v351_v27 = vpop.f32.mrb[5].mxu0  ;;  %v785_v25 = vld [vmem:[#allocation7 + $0xbc0] sm:$0xff] }
 0x133   :  { %6681 = vmatpush1.bf16.msra.mxu0 %v9758_v41  ;;  %6853 = vmatpush1.bf16.msra.mxu1 %v9760_v42  ;;  %v352_v30 = vadd.f32 %v351_v27, %v128_v16  ;;  %v353_v31 = vpop.f32.mrb[6].mxu0  ;;  %v9790_v42 = vcombine.low %v697_v19, %v705_v21  ;;  %v9855_v19 = vcombine.high %v761_v8, %v769_v9  ;;  %v786_v27 = vld [vmem:[#allocation7 + $0xbc8] sm:$0xff]  ;;  %v809_v58 = vld [vmem:[#allocation7 + $0xc80] sm:$0xff] }
 0x134   :  { %6682 = vmatprep.subr.bf16.mxu0 %v9775_v17  ;;  %6854 = vmatprep.subr.bf16.mxu1 %v9777_v18  ;;  %v354_v35 = vadd.f32 %v353_v31, %v124_v13  ;;  %v355_v36 = vpop.f32.mrb[7].mxu0  ;;  %v9838_v13 = vcombine.low %v745_v0, %v753_v1  ;;  %v392_v17 = vpop.f32.mrb[4].mxu1  ;;  %v11406_v18 = vsub.s32 7, %v11350_v45  ;;  %v9857_v21 = vcombine.high %v762_v11, %v770_v12  ;;  %v825_v3 = vld [vmem:[#allocation7 + $0xd00] sm:$0xff] }
 0x135   :  { %6712 = vmatprep.mubr.bf16.mxu0 %v11392_v24  ;;  %6884 = vmatprep.mubr.bf16.mxu1 %v11392_v24  ;;  %v356_v40 = vadd.f32 %v355_v36, %v128_v16  ;;  %v11403_v16 = vsub.s32 6, %v11350_v45  ;;  %v394_v23 = vpop.f32.mrb[5].mxu1  ;;  %v9854_v31 = vcombine.low %v761_v8, %v769_v9  ;;  %v9871_v36 = vcombine.high %v777_v22, %v785_v25 }
 0x136   :  { %v11398_v41 = vpack.c.bf16 %v354_v35, %v350_v26  ;;  %v778_v26 = vld [vmem:[#allocation7 + $0xb88] sm:$0xff] }
 0x137   :  { %6683 = vmatpush1.bf16.msra.mxu0 %v9774_v28  ;;  %6855 = vmatpush1.bf16.msra.mxu1 %v9776_v29  ;;  %v11400_v51 = vpack.c.bf16 %v356_v40, %v352_v30  ;;  %v132_v28 = vrot.slane %v11358_v48, %v11403_v16  ;;  %v136_v29 = vrot.slane %v11358_v48, %v11406_v18  ;;  %v396_v30 = vpop.f32.mrb[6].mxu1  ;;  %v801_v40 = vld [vmem:[#allocation7 + $0xc40] sm:$0xff] }
 0x138   :  { %6684 = vmatprep.subr.bf16.mxu0 %v9791_v32  ;;  %6856 = vmatprep.subr.bf16.mxu1 %v9793_v33  ;;  %v9856_v32 = vcombine.low %v762_v11, %v770_v12  ;;  %v398_v35 = vpop.f32.mrb[7].mxu1  ;;  %v9873_v37 = vcombine.high %v778_v26, %v786_v27  ;;  %v9872_v54 = vcombine.low %v778_v26, %v786_v27  ;;  %v841_v12 = vld [vmem:[#allocation7 + $0xd80] sm:$0xff]  ;;  %v858_v27 = vld [vmem:[#allocation7 + $0xe08] sm:$0xff] }
 0x139   :  { %v393_v45 = vadd.f32 %v392_v17, %v132_v28  ;;  %v395_v33 = vadd.f32 %v394_v23, %v136_v29  ;;  %v397_v34 = vadd.f32 %v396_v30, %v132_v28  ;;  %v399_v39 = vadd.f32 %v398_v35, %v136_v29  ;;  %v850_v17 = vld [vmem:[#allocation7 + $0xdc8] sm:$0xff]  ;;  %v865_v26 = vld [vmem:[#allocation7 + $0xe40] sm:$0xff] }
 0x13a   :  { %v9887_v55 = vcombine.high %v793_v38, %v801_v40  ;;  %v866_v28 = vld [vmem:[#allocation7 + $0xe48] sm:$0xff] }
 0x13b   :  { %6685 = vmatpush1.bf16.msra.mxu0 %v9790_v42  ;;  %6857 = vmatpush1.bf16.msra.mxu1 %v9792_v43  ;;  %v794_v42 = vld [vmem:[#allocation7 + $0xc08] sm:$0xff]  ;;  %v11414_v48 = vpack.c.bf16 %v399_v39, %v395_v33  ;;  %v881_v33 = vld [vmem:[#allocation7 + $0xec0] sm:$0xff] }
 0x13c   :  { %6686 = vmatprep.subr.bf16.mxu0 %v9807_v52  ;;  %6858 = vmatprep.subr.bf16.mxu1 %v9809_v53  ;;  %v802_v43 = vld [vmem:[#allocation7 + $0xc48] sm:$0xff]  ;;  %v11412_v52 = vpack.c.bf16 %v397_v34, %v393_v45  ;;  %v9870_v53 = vcombine.low %v777_v22, %v785_v25  ;;  %v857_v25 = vld [vmem:[#allocation7 + $0xe00] sm:$0xff] }
 0x13d   :  { %v9889_v56 = vcombine.high %v794_v42, %v802_v43  ;;  %v9888_v0 = vcombine.low %v794_v42, %v802_v43  ;;  %v873_v45 = vld [vmem:[#allocation7 + $0xe80] sm:$0xff]  ;;  %v874_v34 = vld [vmem:[#allocation7 + $0xe88] sm:$0xff] }
 0x13e   :  { %v882_v35 = vld [vmem:[#allocation7 + $0xec8] sm:$0xff]  ;;  %v897_v42 = vld [vmem:[#allocation7 + $0xf40] sm:$0xff] }
 0x13f   :  { %6687 = vmatpush1.bf16.msra.mxu0 %v9806_v59  ;;  %6859 = vmatpush1.bf16.msra.mxu1 %v9808_v61  ;;  %v817_v59 = vld [vmem:[#allocation7 + $0xcc0] sm:$0xff]  ;;  %v810_v61 = vld [vmem:[#allocation7 + $0xc88] sm:$0xff]  ;;  %v9969_v39 = vcombine.high %v874_v34, %v882_v35 }
 0x140   :  { %6688 = vmatprep.subr.bf16.mxu0 %v9823_v62  ;;  %6860 = vmatprep.subr.bf16.mxu1 %v9825_v63  ;;  %v818_v62 = vld [vmem:[#allocation7 + $0xcc8] sm:$0xff]  ;;  %v9886_v63 = vcombine.low %v793_v38, %v801_v40  ;;  %v9903_v1 = vcombine.high %v809_v58, %v817_v59  ;;  %v9967_v38 = vcombine.high %v873_v45, %v881_v33  ;;  %v889_v40 = vld [vmem:[#allocation7 + $0xf00] sm:$0xff] }
 0x141   :  { %v9905_v2 = vcombine.high %v810_v61, %v818_v62  ;;  %v9904_v8 = vcombine.low %v810_v61, %v818_v62  ;;  %v890_v43 = vld [vmem:[#allocation7 + $0xf08] sm:$0xff]  ;;  %v913_v61 = vld [vmem:[#allocation7 + $0xfc0] sm:$0xff] }
 0x142   :  { %v906_v62 = vld [vmem:[#allocation7 + $0xf88] sm:$0xff] }
 0x143   :  { %6689 = vmatpush1.bf16.msra.mxu0 %v9822_v4  ;;  %6861 = vmatpush1.bf16.msra.mxu1 %v9824_v5  ;;  %v833_v4 = vld [vmem:[#allocation7 + $0xd40] sm:$0xff]  ;;  %v826_v5 = vld [vmem:[#allocation7 + $0xd08] sm:$0xff] }
 0x144   :  { %6690 = vmatprep.subr.bf16.mxu0 %v9839_v6  ;;  %6862 = vmatprep.subr.bf16.mxu1 %v9841_v7  ;;  %v834_v6 = vld [vmem:[#allocation7 + $0xd48] sm:$0xff]  ;;  %v9902_v7 = vcombine.low %v809_v58, %v817_v59  ;;  %v9919_v9 = vcombine.high %v825_v3, %v833_v4  ;;  %v905_v59 = vld [vmem:[#allocation7 + $0xf80] sm:$0xff] }
 0x145   :  { %v9921_v11 = vcombine.high %v826_v5, %v834_v6 }
 0x147   :  { %6691 = vmatpush1.bf16.msra.mxu0 %v9838_v13  ;;  %6863 = vmatpush1.bf16.msra.mxu1 %v9840_v15  ;;  %v849_v13 = vld [vmem:[#allocation7 + $0xdc0] sm:$0xff]  ;;  %v842_v15 = vld [vmem:[#allocation7 + $0xd88] sm:$0xff] }
 0x148   :  { %6692 = vmatprep.subr.bf16.mxu0 %v9855_v19  ;;  %6864 = vmatprep.subr.bf16.mxu1 %v9857_v21  ;;  %v9918_v19 = vcombine.low %v825_v3, %v833_v4  ;;  %v9920_v21 = vcombine.low %v826_v5, %v834_v6  ;;  %v9935_v22 = vcombine.high %v841_v12, %v849_v13  ;;  %v921_v4 = vld [vmem:[#allocation7 + $0x1000] sm:$0xff]  ;;  %v922_v6 = vld [vmem:[#allocation7 + $0x1008] sm:$0xff] }
 0x149   :  { %v9937_v23 = vcombine.high %v842_v15, %v850_v17  ;;  %v9934_v29 = vcombine.low %v841_v12, %v849_v13  ;;  %v9936_v30 = vcombine.low %v842_v15, %v850_v17  ;;  %v929_v5 = vld [vmem:[#allocation7 + $0x1040] sm:$0xff]  ;;  %v938_v17 = vld [vmem:[#allocation7 + $0x1088] sm:$0xff] }
 0x14a   :  { %v937_v13 = vld [vmem:[#allocation7 + $0x1080] sm:$0xff] }
 0x14b   :  { %6693 = vmatpush1.bf16.msra.mxu0 %v9854_v31  ;;  %6865 = vmatpush1.bf16.msra.mxu1 %v9856_v32  ;;  %v9951_v31 = vcombine.high %v857_v25, %v865_v26  ;;  %v9953_v32 = vcombine.high %v858_v27, %v866_v28  ;;  %v945_v15 = vld [vmem:[#allocation7 + $0x10c0] sm:$0xff] }
 0x14c   :  { %6694 = vmatprep.subr.bf16.mxu0 %v9871_v36  ;;  %6866 = vmatprep.subr.bf16.mxu1 %v9873_v37  ;;  %v9950_v36 = vcombine.low %v857_v25, %v865_v26  ;;  %v9952_v37 = vcombine.low %v858_v27, %v866_v28  ;;  %v953_v26 = vld [vmem:[#allocation7 + $0x1100] sm:$0xff]  ;;  %v954_v28 = vld [vmem:[#allocation7 + $0x1108] sm:$0xff] }
 0x14d   :  { %v961_v27 = vld [vmem:[#allocation7 + $0x1140] sm:$0xff] }
 0x14f   :  { %6695 = vmatpush1.bf16.msra.mxu0 %v9870_v53  ;;  %6867 = vmatpush1.bf16.msra.mxu1 %v9872_v54  ;;  %v898_v53 = vld [vmem:[#allocation7 + $0xf48] sm:$0xff]  ;;  %v9966_v54 = vcombine.low %v873_v45, %v881_v33  ;;  %v969_v33 = vld [vmem:[#allocation7 + $0x1180] sm:$0xff] }
 0x150   :  { %6696 = vmatprep.subr.bf16.mxu0 %v9887_v55  ;;  %6868 = vmatprep.subr.bf16.mxu1 %v9889_v56  ;;  %v9968_v55 = vcombine.low %v874_v34, %v882_v35  ;;  %v9983_v56 = vcombine.high %v889_v40, %v897_v42  ;;  %v9985_v58 = vcombine.high %v890_v43, %v898_v53  ;;  %v977_v34 = vld [vmem:[#allocation7 + $0x11c0] sm:$0xff]  ;;  %v970_v35 = vld [vmem:[#allocation7 + $0x1188] sm:$0xff] }
 0x153   :  { %6697 = vmatpush1.bf16.msra.mxu0 %v9886_v63  ;;  %6869 = vmatpush1.bf16.msra.mxu1 %v9888_v0  ;;  %v914_v63 = vld [vmem:[#allocation7 + $0xfc8] sm:$0xff]  ;;  %v9982_v0 = vcombine.low %v889_v40, %v897_v42  ;;  %v985_v42 = vld [vmem:[#allocation7 + $0x1200] sm:$0xff] }
 0x154   :  { %6698 = vmatprep.subr.bf16.mxu0 %v9903_v1  ;;  %6870 = vmatprep.subr.bf16.mxu1 %v9905_v2  ;;  %v9984_v1 = vcombine.low %v890_v43, %v898_v53  ;;  %v9999_v2 = vcombine.high %v905_v59, %v913_v61  ;;  %v10001_v3 = vcombine.high %v906_v62, %v914_v63  ;;  %v993_v43 = vld [vmem:[#allocation7 + $0x1240] sm:$0xff]  ;;  %v986_v53 = vld [vmem:[#allocation7 + $0x1208] sm:$0xff] }
 0x157   :  { %6699 = vmatpush1.bf16.msra.mxu0 %v9902_v7  ;;  %6871 = vmatpush1.bf16.msra.mxu1 %v9904_v8  ;;  %v930_v7 = vld [vmem:[#allocation7 + $0x1048] sm:$0xff]  ;;  %v9998_v8 = vcombine.low %v905_v59, %v913_v61  ;;  %v1001_v61 = vld [vmem:[#allocation7 + $0x1280] sm:$0xff] }
 0x158   :  { %6700 = vmatprep.subr.bf16.mxu0 %v9919_v9  ;;  %6872 = vmatprep.subr.bf16.mxu1 %v9921_v11  ;;  %v10000_v9 = vcombine.low %v906_v62, %v914_v63  ;;  %v10015_v11 = vcombine.high %v921_v4, %v929_v5  ;;  %v10017_v12 = vcombine.high %v922_v6, %v930_v7  ;;  %v1009_v62 = vld [vmem:[#allocation7 + $0x12c0] sm:$0xff]  ;;  %v1002_v63 = vld [vmem:[#allocation7 + $0x1288] sm:$0xff] }
 0x15b   :  { %6701 = vmatpush1.bf16.msra.mxu0 %v9918_v19  ;;  %6873 = vmatpush1.bf16.msra.mxu1 %v9920_v21  ;;  %v946_v19 = vld [vmem:[#allocation7 + $0x10c8] sm:$0xff]  ;;  %v10014_v21 = vcombine.low %v921_v4, %v929_v5  ;;  %v1017_v5 = vld [vmem:[#allocation7 + $0x1300] sm:$0xff] }
 0x15c   :  { %6702 = vmatprep.subr.bf16.mxu0 %v9935_v22  ;;  %6874 = vmatprep.subr.bf16.mxu1 %v9937_v23  ;;  %v10016_v22 = vcombine.low %v922_v6, %v930_v7  ;;  %v10031_v23 = vcombine.high %v937_v13, %v945_v15  ;;  %v10033_v25 = vcombine.high %v938_v17, %v946_v19  ;;  %v1025_v6 = vld [vmem:[#allocation7 + $0x1340] sm:$0xff]  ;;  %v1018_v7 = vld [vmem:[#allocation7 + $0x1308] sm:$0xff] }
 0x15f   :  { %6703 = vmatpush1.bf16.msra.mxu0 %v9934_v29  ;;  %6875 = vmatpush1.bf16.msra.mxu1 %v9936_v30  ;;  %v962_v29 = vld [vmem:[#allocation7 + $0x1148] sm:$0xff]  ;;  %v10030_v30 = vcombine.low %v937_v13, %v945_v15  ;;  %v1033_v15 = vld [vmem:[#allocation7 + $0x1380] sm:$0xff] }
 0x160   :  { %6704 = vmatprep.subr.bf16.mxu0 %v9951_v31  ;;  %6876 = vmatprep.subr.bf16.mxu1 %v9953_v32  ;;  %v10032_v31 = vcombine.low %v938_v17, %v946_v19  ;;  %v10047_v32 = vcombine.high %v953_v26, %v961_v27  ;;  %v10049_v45 = vcombine.high %v954_v28, %v962_v29  ;;  %v1041_v17 = vld [vmem:[#allocation7 + $0x13c0] sm:$0xff]  ;;  %v1034_v19 = vld [vmem:[#allocation7 + $0x1388] sm:$0xff] }
 0x163   :  { %6705 = vmatpush1.bf16.msra.mxu0 %v9950_v36  ;;  %6877 = vmatpush1.bf16.msra.mxu1 %v9952_v37  ;;  %v978_v36 = vld [vmem:[#allocation7 + $0x11c8] sm:$0xff]  ;;  %v10046_v37 = vcombine.low %v953_v26, %v961_v27  ;;  %v1049_v27 = vld [vmem:[#allocation7 + $0x1400] sm:$0xff] }
 0x164   :  { %6706 = vmatprep.subr.bf16.mxu0 %v9967_v38  ;;  %6878 = vmatprep.subr.bf16.mxu1 %v9969_v39  ;;  %v10048_v38 = vcombine.low %v954_v28, %v962_v29  ;;  %v10063_v39 = vcombine.high %v969_v33, %v977_v34  ;;  %v10065_v40 = vcombine.high %v970_v35, %v978_v36  ;;  %v1057_v28 = vld [vmem:[#allocation7 + $0x1440] sm:$0xff]  ;;  %v1050_v29 = vld [vmem:[#allocation7 + $0x1408] sm:$0xff] }
 0x167   :  { %6707 = vmatpush1.bf16.msra.mxu0 %v9966_v54  ;;  %6879 = vmatpush1.bf16.msra.mxu1 %v9968_v55  ;;  %v994_v54 = vld [vmem:[#allocation7 + $0x1248] sm:$0xff]  ;;  %v10062_v55 = vcombine.low %v969_v33, %v977_v34  ;;  %v1065_v34 = vld [vmem:[#allocation7 + $0x1480] sm:$0xff] }
 0x168   :  { %6708 = vmatprep.subr.bf16.mxu0 %v9983_v56  ;;  %6880 = vmatprep.subr.bf16.mxu1 %v9985_v58  ;;  %v10064_v56 = vcombine.low %v970_v35, %v978_v36  ;;  %v10079_v58 = vcombine.high %v985_v42, %v993_v43  ;;  %v10081_v59 = vcombine.high %v986_v53, %v994_v54  ;;  %v1073_v35 = vld [vmem:[#allocation7 + $0x14c0] sm:$0xff]  ;;  %v1066_v36 = vld [vmem:[#allocation7 + $0x1488] sm:$0xff] }
 0x16b   :  { %6709 = vmatpush1.bf16.msra.mxu0 %v9982_v0  ;;  %6881 = vmatpush1.bf16.msra.mxu1 %v9984_v1  ;;  %v1010_v0 = vld [vmem:[#allocation7 + $0x12c8] sm:$0xff]  ;;  %v10078_v1 = vcombine.low %v985_v42, %v993_v43  ;;  %v1081_v43 = vld [vmem:[#allocation7 + $0x1500] sm:$0xff] }
 0x16c   :  { %6710 = vmatprep.subr.bf16.mxu0 %v9999_v2  ;;  %6882 = vmatprep.subr.bf16.mxu1 %v10001_v3  ;;  %v10080_v2 = vcombine.low %v986_v53, %v994_v54  ;;  %v10095_v3 = vcombine.high %v1001_v61, %v1009_v62  ;;  %v10097_v4 = vcombine.high %v1002_v63, %v1010_v0  ;;  %v1089_v53 = vld [vmem:[#allocation7 + $0x1540] sm:$0xff]  ;;  %v1082_v54 = vld [vmem:[#allocation7 + $0x1508] sm:$0xff] }
 0x16f   :  { %6711 = vmatpush1.bf16.msra.mxu0 %v9998_v8  ;;  %6883 = vmatpush1.bf16.msra.mxu1 %v10000_v9  ;;  %v1026_v8 = vld [vmem:[#allocation7 + $0x1348] sm:$0xff]  ;;  %v10094_v9 = vcombine.low %v1001_v61, %v1009_v62  ;;  %v1097_v62 = vld [vmem:[#allocation7 + $0x1580] sm:$0xff] }
 0x170   :  { %6723 = vmatprep.subr.bf16.mxu0 %v10015_v11  ;;  %6895 = vmatprep.subr.bf16.mxu1 %v10017_v12  ;;  %v10096_v11 = vcombine.low %v1002_v63, %v1010_v0  ;;  %v10111_v12 = vcombine.high %v1017_v5, %v1025_v6  ;;  %v10113_v13 = vcombine.high %v1018_v7, %v1026_v8  ;;  %v1105_v63 = vld [vmem:[#allocation7 + $0x15c0] sm:$0xff]  ;;  %v1098_v0 = vld [vmem:[#allocation7 + $0x1588] sm:$0xff] }
 0x172   :  { %6713 = vmatmul.mubr.bf16.vlgmr.msra.gmra.mrb[8].mxu0 %v11388_v20  ;;  %6885 = vmatmul.mubr.bf16.vlgmr.msra.gmra.mrb[8].mxu1 %v11388_v20 }
 0x173   :  { %6724 = vmatpush1.bf16.msra.mxu0 %v10014_v21  ;;  %6896 = vmatpush1.bf16.msra.mxu1 %v10016_v22  ;;  %v1042_v21 = vld [vmem:[#allocation7 + $0x13c8] sm:$0xff]  ;;  %v10110_v22 = vcombine.low %v1017_v5, %v1025_v6  ;;  %v1113_v6 = vld [vmem:[#allocation7 + $0x1600] sm:$0xff] }
 0x174   :  { %6725 = vmatprep.subr.bf16.mxu0 %v10031_v23  ;;  %6897 = vmatprep.subr.bf16.mxu1 %v10033_v25  ;;  %v10112_v23 = vcombine.low %v1018_v7, %v1026_v8  ;;  %v10127_v25 = vcombine.high %v1033_v15, %v1041_v17  ;;  %v10129_v26 = vcombine.high %v1034_v19, %v1042_v21  ;;  %v1121_v7 = vld [vmem:[#allocation7 + $0x1640] sm:$0xff]  ;;  %v1114_v8 = vld [vmem:[#allocation7 + $0x1608] sm:$0xff] }
 0x175   :  { %6755 = vmatprep.mubr.bf16.mxu0 %v11400_v51  ;;  %6927 = vmatprep.mubr.bf16.mxu1 %v11400_v51 }
 0x177   :  { %6726 = vmatpush1.bf16.msra.mxu0 %v10030_v30  ;;  %6898 = vmatpush1.bf16.msra.mxu1 %v10032_v31  ;;  %v1058_v30 = vld [vmem:[#allocation7 + $0x1448] sm:$0xff]  ;;  %v10126_v31 = vcombine.low %v1033_v15, %v1041_v17  ;;  %v1129_v17 = vld [vmem:[#allocation7 + $0x1680] sm:$0xff] }
 0x178   :  { %6727 = vmatprep.subr.bf16.mxu0 %v10047_v32  ;;  %6899 = vmatprep.subr.bf16.mxu1 %v10049_v45  ;;  %v10128_v32 = vcombine.low %v1034_v19, %v1042_v21  ;;  %v10143_v45 = vcombine.high %v1049_v27, %v1057_v28  ;;  %v10145_v33 = vcombine.high %v1050_v29, %v1058_v30  ;;  %v1137_v19 = vld [vmem:[#allocation7 + $0x16c0] sm:$0xff]  ;;  %v1130_v21 = vld [vmem:[#allocation7 + $0x1688] sm:$0xff] }
 0x17b   :  { %6728 = vmatpush1.bf16.msra.mxu0 %v10046_v37  ;;  %6900 = vmatpush1.bf16.msra.mxu1 %v10048_v38  ;;  %v1074_v37 = vld [vmem:[#allocation7 + $0x14c8] sm:$0xff]  ;;  %v10142_v38 = vcombine.low %v1049_v27, %v1057_v28  ;;  %v1145_v28 = vld [vmem:[#allocation7 + $0x1700] sm:$0xff] }
 0x17c   :  { %6729 = vmatprep.subr.bf16.mxu0 %v10063_v39  ;;  %6901 = vmatprep.subr.bf16.mxu1 %v10065_v40  ;;  %v10144_v39 = vcombine.low %v1050_v29, %v1058_v30  ;;  %v10159_v40 = vcombine.high %v1065_v34, %v1073_v35  ;;  %v10161_v42 = vcombine.high %v1066_v36, %v1074_v37  ;;  %v1153_v29 = vld [vmem:[#allocation7 + $0x1740] sm:$0xff]  ;;  %v1146_v30 = vld [vmem:[#allocation7 + $0x1708] sm:$0xff] }
 0x17f   :  { %6730 = vmatpush1.bf16.msra.mxu0 %v10062_v55  ;;  %6902 = vmatpush1.bf16.msra.mxu1 %v10064_v56  ;;  %v1090_v55 = vld [vmem:[#allocation7 + $0x1548] sm:$0xff]  ;;  %v10158_v56 = vcombine.low %v1065_v34, %v1073_v35  ;;  %v1161_v35 = vld [vmem:[#allocation7 + $0x1780] sm:$0xff] }
 0x180   :  { %6731 = vmatprep.subr.bf16.mxu0 %v10079_v58  ;;  %6903 = vmatprep.subr.bf16.mxu1 %v10081_v59  ;;  %v10160_v58 = vcombine.low %v1066_v36, %v1074_v37  ;;  %v10175_v59 = vcombine.high %v1081_v43, %v1089_v53  ;;  %v10177_v61 = vcombine.high %v1082_v54, %v1090_v55  ;;  %v1169_v36 = vld [vmem:[#allocation7 + $0x17c0] sm:$0xff]  ;;  %v1162_v37 = vld [vmem:[#allocation7 + $0x1788] sm:$0xff] }
 0x183   :  { %6732 = vmatpush1.bf16.msra.mxu0 %v10078_v1  ;;  %6904 = vmatpush1.bf16.msra.mxu1 %v10080_v2  ;;  %v1106_v1 = vld [vmem:[#allocation7 + $0x15c8] sm:$0xff]  ;;  %v10174_v2 = vcombine.low %v1081_v43, %v1089_v53  ;;  %v1177_v53 = vld [vmem:[#allocation7 + $0x1800] sm:$0xff] }
 0x184   :  { %6733 = vmatprep.subr.bf16.mxu0 %v10095_v3  ;;  %6905 = vmatprep.subr.bf16.mxu1 %v10097_v4  ;;  %v10176_v3 = vcombine.low %v1082_v54, %v1090_v55  ;;  %v10191_v4 = vcombine.high %v1097_v62, %v1105_v63  ;;  %v10193_v5 = vcombine.high %v1098_v0, %v1106_v1  ;;  %v1185_v54 = vld [vmem:[#allocation7 + $0x1840] sm:$0xff]  ;;  %v1178_v55 = vld [vmem:[#allocation7 + $0x1808] sm:$0xff] }
 0x187   :  { %6734 = vmatpush1.bf16.msra.mxu0 %v10094_v9  ;;  %6906 = vmatpush1.bf16.msra.mxu1 %v10096_v11  ;;  %v1122_v9 = vld [vmem:[#allocation7 + $0x1648] sm:$0xff]  ;;  %v10190_v11 = vcombine.low %v1097_v62, %v1105_v63  ;;  %v1193_v63 = vld [vmem:[#allocation7 + $0x1880] sm:$0xff] }
 0x188   :  { %6735 = vmatprep.subr.bf16.mxu0 %v10111_v12  ;;  %6907 = vmatprep.subr.bf16.mxu1 %v10113_v13  ;;  %v10192_v12 = vcombine.low %v1098_v0, %v1106_v1  ;;  %v10207_v13 = vcombine.high %v1113_v6, %v1121_v7  ;;  %v10209_v15 = vcombine.high %v1114_v8, %v1122_v9  ;;  %v1201_v0 = vld [vmem:[#allocation7 + $0x18c0] sm:$0xff]  ;;  %v1194_v1 = vld [vmem:[#allocation7 + $0x1888] sm:$0xff] }
 0x18b   :  { %6736 = vmatpush1.bf16.msra.mxu0 %v10110_v22  ;;  %6908 = vmatpush1.bf16.msra.mxu1 %v10112_v23  ;;  %v1138_v22 = vld [vmem:[#allocation7 + $0x16c8] sm:$0xff]  ;;  %v10206_v23 = vcombine.low %v1113_v6, %v1121_v7  ;;  %v1209_v7 = vld [vmem:[#allocation7 + $0x1900] sm:$0xff] }
 0x18c   :  { %6737 = vmatprep.subr.bf16.mxu0 %v10127_v25  ;;  %6909 = vmatprep.subr.bf16.mxu1 %v10129_v26  ;;  %v10208_v25 = vcombine.low %v1114_v8, %v1122_v9  ;;  %v10223_v26 = vcombine.high %v1129_v17, %v1137_v19  ;;  %v10225_v27 = vcombine.high %v1130_v21, %v1138_v22  ;;  %v1217_v8 = vld [vmem:[#allocation7 + $0x1940] sm:$0xff]  ;;  %v1210_v9 = vld [vmem:[#allocation7 + $0x1908] sm:$0xff] }
 0x18f   :  { %6738 = vmatpush1.bf16.msra.mxu0 %v10126_v31  ;;  %6910 = vmatpush1.bf16.msra.mxu1 %v10128_v32  ;;  %v1154_v31 = vld [vmem:[#allocation7 + $0x1748] sm:$0xff]  ;;  %v10222_v32 = vcombine.low %v1129_v17, %v1137_v19  ;;  %v1225_v19 = vld [vmem:[#allocation7 + $0x1980] sm:$0xff] }
 0x190   :  { %6739 = vmatprep.subr.bf16.mxu0 %v10143_v45  ;;  %6911 = vmatprep.subr.bf16.mxu1 %v10145_v33  ;;  %v10224_v45 = vcombine.low %v1130_v21, %v1138_v22  ;;  %v10239_v33 = vcombine.high %v1145_v28, %v1153_v29  ;;  %v10241_v34 = vcombine.high %v1146_v30, %v1154_v31  ;;  %v1233_v21 = vld [vmem:[#allocation7 + $0x19c0] sm:$0xff]  ;;  %v1226_v22 = vld [vmem:[#allocation7 + $0x1988] sm:$0xff] }
 0x193   :  { %6740 = vmatpush1.bf16.msra.mxu0 %v10142_v38  ;;  %6912 = vmatpush1.bf16.msra.mxu1 %v10144_v39  ;;  %v1170_v38 = vld [vmem:[#allocation7 + $0x17c8] sm:$0xff]  ;;  %v10238_v39 = vcombine.low %v1145_v28, %v1153_v29  ;;  %v1241_v29 = vld [vmem:[#allocation7 + $0x1a00] sm:$0xff] }
 0x194   :  { %6741 = vmatprep.subr.bf16.mxu0 %v10159_v40  ;;  %6913 = vmatprep.subr.bf16.mxu1 %v10161_v42  ;;  %v10240_v40 = vcombine.low %v1146_v30, %v1154_v31  ;;  %v10255_v42 = vcombine.high %v1161_v35, %v1169_v36  ;;  %v10257_v43 = vcombine.high %v1162_v37, %v1170_v38  ;;  %v1249_v30 = vld [vmem:[#allocation7 + $0x1a40] sm:$0xff]  ;;  %v1242_v31 = vld [vmem:[#allocation7 + $0x1a08] sm:$0xff] }
 0x197   :  { %6742 = vmatpush1.bf16.msra.mxu0 %v10158_v56  ;;  %6914 = vmatpush1.bf16.msra.mxu1 %v10160_v58  ;;  %v1186_v56 = vld [vmem:[#allocation7 + $0x1848] sm:$0xff]  ;;  %v10254_v58 = vcombine.low %v1161_v35, %v1169_v36  ;;  %v1257_v36 = vld [vmem:[#allocation7 + $0x1a80] sm:$0xff] }
 0x198   :  { %6743 = vmatprep.subr.bf16.mxu0 %v10175_v59  ;;  %6915 = vmatprep.subr.bf16.mxu1 %v10177_v61  ;;  %v10256_v59 = vcombine.low %v1162_v37, %v1170_v38  ;;  %v10271_v61 = vcombine.high %v1177_v53, %v1185_v54  ;;  %v10273_v62 = vcombine.high %v1178_v55, %v1186_v56  ;;  %v1265_v37 = vld [vmem:[#allocation7 + $0x1ac0] sm:$0xff]  ;;  %v1258_v38 = vld [vmem:[#allocation7 + $0x1a88] sm:$0xff] }
 0x19b   :  { %6744 = vmatpush1.bf16.msra.mxu0 %v10174_v2  ;;  %6916 = vmatpush1.bf16.msra.mxu1 %v10176_v3  ;;  %v1202_v2 = vld [vmem:[#allocation7 + $0x18c8] sm:$0xff]  ;;  %v10270_v3 = vcombine.low %v1177_v53, %v1185_v54  ;;  %v1273_v54 = vld [vmem:[#allocation7 + $0x1b00] sm:$0xff] }
 0x19c   :  { %6745 = vmatprep.subr.bf16.mxu0 %v10191_v4  ;;  %6917 = vmatprep.subr.bf16.mxu1 %v10193_v5  ;;  %v10272_v4 = vcombine.low %v1178_v55, %v1186_v56  ;;  %v10287_v5 = vcombine.high %v1193_v63, %v1201_v0  ;;  %v10289_v6 = vcombine.high %v1194_v1, %v1202_v2  ;;  %v1281_v55 = vld [vmem:[#allocation7 + $0x1b40] sm:$0xff]  ;;  %v1274_v56 = vld [vmem:[#allocation7 + $0x1b08] sm:$0xff] }
 0x19f   :  { %6746 = vmatpush1.bf16.msra.mxu0 %v10190_v11  ;;  %6918 = vmatpush1.bf16.msra.mxu1 %v10192_v12  ;;  %v1218_v11 = vld [vmem:[#allocation7 + $0x1948] sm:$0xff]  ;;  %v10286_v12 = vcombine.low %v1193_v63, %v1201_v0  ;;  %v1289_v0 = vld [vmem:[#allocation7 + $0x1b80] sm:$0xff] }
 0x1a0   :  { %6747 = vmatprep.subr.bf16.mxu0 %v10207_v13  ;;  %6919 = vmatprep.subr.bf16.mxu1 %v10209_v15  ;;  %v10288_v13 = vcombine.low %v1194_v1, %v1202_v2  ;;  %v10303_v15 = vcombine.high %v1209_v7, %v1217_v8  ;;  %v10305_v17 = vcombine.high %v1210_v9, %v1218_v11  ;;  %v1297_v1 = vld [vmem:[#allocation7 + $0x1bc0] sm:$0xff]  ;;  %v1290_v2 = vld [vmem:[#allocation7 + $0x1b88] sm:$0xff] }
 0x1a3   :  { %6748 = vmatpush1.bf16.msra.mxu0 %v10206_v23  ;;  %6920 = vmatpush1.bf16.msra.mxu1 %v10208_v25  ;;  %v1234_v23 = vld [vmem:[#allocation7 + $0x19c8] sm:$0xff]  ;;  %v10302_v25 = vcombine.low %v1209_v7, %v1217_v8  ;;  %v1305_v8 = vld [vmem:[#allocation7 + $0x1c00] sm:$0xff] }
 0x1a4   :  { %6749 = vmatprep.subr.bf16.mxu0 %v10223_v26  ;;  %6921 = vmatprep.subr.bf16.mxu1 %v10225_v27  ;;  %v10304_v26 = vcombine.low %v1210_v9, %v1218_v11  ;;  %v10319_v27 = vcombine.high %v1225_v19, %v1233_v21  ;;  %v10321_v28 = vcombine.high %v1226_v22, %v1234_v23  ;;  %v1313_v9 = vld [vmem:[#allocation7 + $0x1c40] sm:$0xff]  ;;  %v1306_v11 = vld [vmem:[#allocation7 + $0x1c08] sm:$0xff] }
 0x1a7   :  { %6750 = vmatpush1.bf16.msra.mxu0 %v10222_v32  ;;  %6922 = vmatpush1.bf16.msra.mxu1 %v10224_v45  ;;  %v1250_v32 = vld [vmem:[#allocation7 + $0x1a48] sm:$0xff]  ;;  %v10318_v45 = vcombine.low %v1225_v19, %v1233_v21  ;;  %v1321_v21 = vld [vmem:[#allocation7 + $0x1c80] sm:$0xff] }
 0x1a8   :  { %6751 = vmatprep.subr.bf16.mxu0 %v10239_v33  ;;  %6923 = vmatprep.subr.bf16.mxu1 %v10241_v34  ;;  %v10320_v33 = vcombine.low %v1226_v22, %v1234_v23  ;;  %v10335_v34 = vcombine.high %v1241_v29, %v1249_v30  ;;  %v10337_v35 = vcombine.high %v1242_v31, %v1250_v32  ;;  %v1329_v22 = vld [vmem:[#allocation7 + $0x1cc0] sm:$0xff]  ;;  %v1322_v23 = vld [vmem:[#allocation7 + $0x1c88] sm:$0xff] }
 0x1ab   :  { %6752 = vmatpush1.bf16.msra.mxu0 %v10238_v39  ;;  %6924 = vmatpush1.bf16.msra.mxu1 %v10240_v40  ;;  %v1266_v39 = vld [vmem:[#allocation7 + $0x1ac8] sm:$0xff]  ;;  %v10334_v40 = vcombine.low %v1241_v29, %v1249_v30  ;;  %v1337_v30 = vld [vmem:[#allocation7 + $0x1d00] sm:$0xff] }
 0x1ac   :  { %6753 = vmatprep.subr.bf16.mxu0 %v10255_v42  ;;  %6925 = vmatprep.subr.bf16.mxu1 %v10257_v43  ;;  %v10336_v42 = vcombine.low %v1242_v31, %v1250_v32  ;;  %v10351_v43 = vcombine.high %v1257_v36, %v1265_v37  ;;  %v10353_v53 = vcombine.high %v1258_v38, %v1266_v39  ;;  %v1345_v31 = vld [vmem:[#allocation7 + $0x1d40] sm:$0xff]  ;;  %v1338_v32 = vld [vmem:[#allocation7 + $0x1d08] sm:$0xff] }
 0x1af   :  { %6754 = vmatpush1.bf16.msra.mxu0 %v10254_v58  ;;  %6926 = vmatpush1.bf16.msra.mxu1 %v10256_v59  ;;  %v1282_v58 = vld [vmem:[#allocation7 + $0x1b48] sm:$0xff]  ;;  %v10350_v59 = vcombine.low %v1257_v36, %v1265_v37  ;;  %v1353_v37 = vld [vmem:[#allocation7 + $0x1d80] sm:$0xff] }
 0x1b0   :  { %6766 = vmatprep.subr.bf16.mxu0 %v10271_v61  ;;  %6938 = vmatprep.subr.bf16.mxu1 %v10273_v62  ;;  %v10352_v61 = vcombine.low %v1258_v38, %v1266_v39  ;;  %v10367_v62 = vcombine.high %v1273_v54, %v1281_v55  ;;  %v10369_v63 = vcombine.high %v1274_v56, %v1282_v58  ;;  %v1361_v38 = vld [vmem:[#allocation7 + $0x1dc0] sm:$0xff]  ;;  %v1354_v39 = vld [vmem:[#allocation7 + $0x1d88] sm:$0xff] }
 0x1b2   :  { %6756 = vmatmul.mubr.bf16.vlgmr.msra.gmra.mrb[8].mxu0 %v11398_v41  ;;  %6928 = vmatmul.mubr.bf16.vlgmr.msra.gmra.mrb[8].mxu1 %v11398_v41 }
 0x1b3   :  { %6767 = vmatpush1.bf16.msra.mxu0 %v10270_v3  ;;  %6939 = vmatpush1.bf16.msra.mxu1 %v10272_v4  ;;  %v1298_v3 = vld [vmem:[#allocation7 + $0x1bc8] sm:$0xff]  ;;  %v10366_v4 = vcombine.low %v1273_v54, %v1281_v55  ;;  %v1369_v55 = vld [vmem:[#allocation7 + $0x1e00] sm:$0xff] }
 0x1b4   :  { %6768 = vmatprep.subr.bf16.mxu0 %v10287_v5  ;;  %6940 = vmatprep.subr.bf16.mxu1 %v10289_v6  ;;  %v10368_v5 = vcombine.low %v1274_v56, %v1282_v58  ;;  %v10383_v6 = vcombine.high %v1289_v0, %v1297_v1  ;;  %v10385_v7 = vcombine.high %v1290_v2, %v1298_v3  ;;  %v1377_v56 = vld [vmem:[#allocation7 + $0x1e40] sm:$0xff]  ;;  %v1370_v58 = vld [vmem:[#allocation7 + $0x1e08] sm:$0xff] }
 0x1b5   :  { %6798 = vmatprep.mubr.bf16.mxu0 %v11414_v48  ;;  %6970 = vmatprep.mubr.bf16.mxu1 %v11414_v48 }
 0x1b7   :  { %6769 = vmatpush1.bf16.msra.mxu0 %v10286_v12  ;;  %6941 = vmatpush1.bf16.msra.mxu1 %v10288_v13  ;;  %v1314_v12 = vld [vmem:[#allocation7 + $0x1c48] sm:$0xff]  ;;  %v10382_v13 = vcombine.low %v1289_v0, %v1297_v1  ;;  %v1385_v1 = vld [vmem:[#allocation7 + $0x1e80] sm:$0xff] }
 0x1b8   :  { %6770 = vmatprep.subr.bf16.mxu0 %v10303_v15  ;;  %6942 = vmatprep.subr.bf16.mxu1 %v10305_v17  ;;  %v10384_v15 = vcombine.low %v1290_v2, %v1298_v3  ;;  %v10399_v17 = vcombine.high %v1305_v8, %v1313_v9  ;;  %v10401_v19 = vcombine.high %v1306_v11, %v1314_v12  ;;  %v1393_v2 = vld [vmem:[#allocation7 + $0x1ec0] sm:$0xff]  ;;  %v1386_v3 = vld [vmem:[#allocation7 + $0x1e88] sm:$0xff] }
 0x1bb   :  { %6771 = vmatpush1.bf16.msra.mxu0 %v10302_v25  ;;  %6943 = vmatpush1.bf16.msra.mxu1 %v10304_v26  ;;  %v1330_v25 = vld [vmem:[#allocation7 + $0x1cc8] sm:$0xff]  ;;  %v10398_v26 = vcombine.low %v1305_v8, %v1313_v9  ;;  %v1401_v9 = vld [vmem:[#allocation7 + $0x1f00] sm:$0xff] }
 0x1bc   :  { %6772 = vmatprep.subr.bf16.mxu0 %v10319_v27  ;;  %6944 = vmatprep.subr.bf16.mxu1 %v10321_v28  ;;  %v10400_v27 = vcombine.low %v1306_v11, %v1314_v12  ;;  %v10415_v28 = vcombine.high %v1321_v21, %v1329_v22  ;;  %v10417_v29 = vcombine.high %v1322_v23, %v1330_v25  ;;  %v1409_v11 = vld [vmem:[#allocation7 + $0x1f40] sm:$0xff]  ;;  %v1402_v12 = vld [vmem:[#allocation7 + $0x1f08] sm:$0xff] }
 0x1bf   :  { %6773 = vmatpush1.bf16.msra.mxu0 %v10318_v45  ;;  %6945 = vmatpush1.bf16.msra.mxu1 %v10320_v33  ;;  %v1346_v45 = vld [vmem:[#allocation7 + $0x1d48] sm:$0xff]  ;;  %v10414_v33 = vcombine.low %v1321_v21, %v1329_v22  ;;  %v1417_v22 = vld [vmem:[#allocation7 + $0x1f80] sm:$0xff] }
 0x1c0   :  { %6774 = vmatprep.subr.bf16.mxu0 %v10335_v34  ;;  %6946 = vmatprep.subr.bf16.mxu1 %v10337_v35  ;;  %v10416_v34 = vcombine.low %v1322_v23, %v1330_v25  ;;  %v10431_v35 = vcombine.high %v1337_v30, %v1345_v31  ;;  %v10433_v36 = vcombine.high %v1338_v32, %v1346_v45  ;;  %v1425_v23 = vld [vmem:[#allocation7 + $0x1fc0] sm:$0xff]  ;;  %v1418_v25 = vld [vmem:[#allocation7 + $0x1f88] sm:$0xff] }
 0x1c3   :  { %6775 = vmatpush1.bf16.msra.mxu0 %v10334_v40  ;;  %6947 = vmatpush1.bf16.msra.mxu1 %v10336_v42  ;;  %v1362_v40 = vld [vmem:[#allocation7 + $0x1dc8] sm:$0xff]  ;;  %v10430_v42 = vcombine.low %v1337_v30, %v1345_v31  ;;  %v411_v31 = vld [vmem:[#allocation7 + $0x10] sm:$0xff] }
 0x1c4   :  { %6776 = vmatprep.subr.bf16.mxu0 %v10351_v43  ;;  %6948 = vmatprep.subr.bf16.mxu1 %v10353_v53  ;;  %v10432_v43 = vcombine.low %v1338_v32, %v1346_v45  ;;  %v10447_v53 = vcombine.high %v1353_v37, %v1361_v38  ;;  %v10449_v54 = vcombine.high %v1354_v39, %v1362_v40  ;;  %v419_v32 = vld [vmem:[#allocation7 + $0x50] sm:$0xff]  ;;  %v412_v45 = vld [vmem:[#allocation7 + $0x18] sm:$0xff] }
 0x1c7   :  { %6777 = vmatpush1.bf16.msra.mxu0 %v10350_v59  ;;  %6949 = vmatpush1.bf16.msra.mxu1 %v10352_v61  ;;  %v1378_v59 = vld [vmem:[#allocation7 + $0x1e48] sm:$0xff]  ;;  %v10446_v61 = vcombine.low %v1353_v37, %v1361_v38  ;;  %v427_v38 = vld [vmem:[#allocation7 + $0x90] sm:$0xff] }
 0x1c8   :  { %6778 = vmatprep.subr.bf16.mxu0 %v10367_v62  ;;  %6950 = vmatprep.subr.bf16.mxu1 %v10369_v63  ;;  %v10448_v62 = vcombine.low %v1354_v39, %v1362_v40  ;;  %v10463_v63 = vcombine.high %v1369_v55, %v1377_v56  ;;  %v10465_v0 = vcombine.high %v1370_v58, %v1378_v59  ;;  %v435_v39 = vld [vmem:[#allocation7 + $0xd0] sm:$0xff]  ;;  %v428_v40 = vld [vmem:[#allocation7 + $0x98] sm:$0xff] }
 0x1cb   :  { %6779 = vmatpush1.bf16.msra.mxu0 %v10366_v4  ;;  %6951 = vmatpush1.bf16.msra.mxu1 %v10368_v5  ;;  %v1394_v4 = vld [vmem:[#allocation7 + $0x1ec8] sm:$0xff]  ;;  %v10462_v5 = vcombine.low %v1369_v55, %v1377_v56  ;;  %v443_v56 = vld [vmem:[#allocation7 + $0x110] sm:$0xff] }
 0x1cc   :  { %6780 = vmatprep.subr.bf16.mxu0 %v10383_v6  ;;  %6952 = vmatprep.subr.bf16.mxu1 %v10385_v7  ;;  %v10464_v6 = vcombine.low %v1370_v58, %v1378_v59  ;;  %v10479_v7 = vcombine.high %v1385_v1, %v1393_v2  ;;  %v10481_v8 = vcombine.high %v1386_v3, %v1394_v4  ;;  %v451_v58 = vld [vmem:[#allocation7 + $0x150] sm:$0xff]  ;;  %v444_v59 = vld [vmem:[#allocation7 + $0x118] sm:$0xff] }
 0x1cf   :  { %6781 = vmatpush1.bf16.msra.mxu0 %v10382_v13  ;;  %6953 = vmatpush1.bf16.msra.mxu1 %v10384_v15  ;;  %v1410_v13 = vld [vmem:[#allocation7 + $0x1f48] sm:$0xff]  ;;  %v10478_v15 = vcombine.low %v1385_v1, %v1393_v2  ;;  %v459_v2 = vld [vmem:[#allocation7 + $0x190] sm:$0xff] }
 0x1d0   :  { %6782 = vmatprep.subr.bf16.mxu0 %v10399_v17  ;;  %6954 = vmatprep.subr.bf16.mxu1 %v10401_v19  ;;  %v10480_v17 = vcombine.low %v1386_v3, %v1394_v4  ;;  %v10495_v19 = vcombine.high %v1401_v9, %v1409_v11  ;;  %v10497_v21 = vcombine.high %v1402_v12, %v1410_v13  ;;  %v467_v3 = vld [vmem:[#allocation7 + $0x1d0] sm:$0xff]  ;;  %v460_v4 = vld [vmem:[#allocation7 + $0x198] sm:$0xff] }
 0x1d3   :  { %6783 = vmatpush1.bf16.msra.mxu0 %v10398_v26  ;;  %6955 = vmatpush1.bf16.msra.mxu1 %v10400_v27  ;;  %v1426_v26 = vld [vmem:[#allocation7 + $0x1fc8] sm:$0xff]  ;;  %v10494_v27 = vcombine.low %v1401_v9, %v1409_v11  ;;  %v475_v11 = vld [vmem:[#allocation7 + $0x210] sm:$0xff] }
 0x1d4   :  { %6784 = vmatprep.subr.bf16.mxu0 %v10415_v28  ;;  %6956 = vmatprep.subr.bf16.mxu1 %v10417_v29  ;;  %v10496_v28 = vcombine.low %v1402_v12, %v1410_v13  ;;  %v10511_v29 = vcombine.high %v1417_v22, %v1425_v23  ;;  %v10513_v30 = vcombine.high %v1418_v25, %v1426_v26  ;;  %v483_v12 = vld [vmem:[#allocation7 + $0x250] sm:$0xff]  ;;  %v476_v13 = vld [vmem:[#allocation7 + $0x218] sm:$0xff] }
 0x1d7   :  { %6785 = vmatpush1.bf16.msra.mxu0 %v10414_v33  ;;  %6957 = vmatpush1.bf16.msra.mxu1 %v10416_v34  ;;  %v420_v33 = vld [vmem:[#allocation7 + $0x58] sm:$0xff]  ;;  %v10510_v34 = vcombine.low %v1417_v22, %v1425_v23  ;;  %v491_v23 = vld [vmem:[#allocation7 + $0x290] sm:$0xff] }
 0x1d8   :  { %6786 = vmatprep.subr.bf16.mxu0 %v10431_v35  ;;  %6958 = vmatprep.subr.bf16.mxu1 %v10433_v36  ;;  %v10512_v35 = vcombine.low %v1418_v25, %v1426_v26  ;;  %v9507_v36 = vcombine.high %v411_v31, %v419_v32  ;;  %v9509_v37 = vcombine.high %v412_v45, %v420_v33  ;;  %v499_v25 = vld [vmem:[#allocation7 + $0x2d0] sm:$0xff]  ;;  %v492_v26 = vld [vmem:[#allocation7 + $0x298] sm:$0xff] }
 0x1db   :  { %6787 = vmatpush1.bf16.msra.mxu0 %v10430_v42  ;;  %6959 = vmatpush1.bf16.msra.mxu1 %v10432_v43  ;;  %v436_v42 = vld [vmem:[#allocation7 + $0xd8] sm:$0xff]  ;;  %v9506_v43 = vcombine.low %v411_v31, %v419_v32  ;;  %v507_v32 = vld [vmem:[#allocation7 + $0x310] sm:$0xff] }
 0x1dc   :  { %6788 = vmatprep.subr.bf16.mxu0 %v10447_v53  ;;  %6960 = vmatprep.subr.bf16.mxu1 %v10449_v54  ;;  %v9508_v53 = vcombine.low %v412_v45, %v420_v33  ;;  %v9523_v54 = vcombine.high %v427_v38, %v435_v39  ;;  %v9525_v55 = vcombine.high %v428_v40, %v436_v42  ;;  %v515_v45 = vld [vmem:[#allocation7 + $0x350] sm:$0xff]  ;;  %v508_v33 = vld [vmem:[#allocation7 + $0x318] sm:$0xff] }
 0x1df   :  { %6789 = vmatpush1.bf16.msra.mxu0 %v10446_v61  ;;  %6961 = vmatpush1.bf16.msra.mxu1 %v10448_v62  ;;  %v452_v61 = vld [vmem:[#allocation7 + $0x158] sm:$0xff]  ;;  %v9522_v62 = vcombine.low %v427_v38, %v435_v39  ;;  %v523_v39 = vld [vmem:[#allocation7 + $0x390] sm:$0xff] }
 0x1e0   :  { %6790 = vmatprep.subr.bf16.mxu0 %v10463_v63  ;;  %6962 = vmatprep.subr.bf16.mxu1 %v10465_v0  ;;  %v9524_v63 = vcombine.low %v428_v40, %v436_v42  ;;  %v9539_v0 = vcombine.high %v443_v56, %v451_v58  ;;  %v9541_v1 = vcombine.high %v444_v59, %v452_v61  ;;  %v531_v40 = vld [vmem:[#allocation7 + $0x3d0] sm:$0xff]  ;;  %v524_v42 = vld [vmem:[#allocation7 + $0x398] sm:$0xff] }
 0x1e3   :  { %6791 = vmatpush1.bf16.msra.mxu0 %v10462_v5  ;;  %6963 = vmatpush1.bf16.msra.mxu1 %v10464_v6  ;;  %v468_v5 = vld [vmem:[#allocation7 + $0x1d8] sm:$0xff]  ;;  %v9538_v6 = vcombine.low %v443_v56, %v451_v58  ;;  %v539_v58 = vld [vmem:[#allocation7 + $0x410] sm:$0xff] }
 0x1e4   :  { %6792 = vmatprep.subr.bf16.mxu0 %v10479_v7  ;;  %6964 = vmatprep.subr.bf16.mxu1 %v10481_v8  ;;  %v9540_v7 = vcombine.low %v444_v59, %v452_v61  ;;  %v9555_v8 = vcombine.high %v459_v2, %v467_v3  ;;  %v9557_v9 = vcombine.high %v460_v4, %v468_v5  ;;  %v547_v59 = vld [vmem:[#allocation7 + $0x450] sm:$0xff]  ;;  %v540_v61 = vld [vmem:[#allocation7 + $0x418] sm:$0xff] }
 0x1e7   :  { %6793 = vmatpush1.bf16.msra.mxu0 %v10478_v15  ;;  %6965 = vmatpush1.bf16.msra.mxu1 %v10480_v17  ;;  %v484_v15 = vld [vmem:[#allocation7 + $0x258] sm:$0xff]  ;;  %v9554_v17 = vcombine.low %v459_v2, %v467_v3  ;;  %v555_v3 = vld [vmem:[#allocation7 + $0x490] sm:$0xff] }
 0x1e8   :  { %6794 = vmatprep.subr.bf16.mxu0 %v10495_v19  ;;  %6966 = vmatprep.subr.bf16.mxu1 %v10497_v21  ;;  %v9556_v19 = vcombine.low %v460_v4, %v468_v5  ;;  %v9571_v21 = vcombine.high %v475_v11, %v483_v12  ;;  %v9573_v22 = vcombine.high %v476_v13, %v484_v15  ;;  %v563_v4 = vld [vmem:[#allocation7 + $0x4d0] sm:$0xff]  ;;  %v556_v5 = vld [vmem:[#allocation7 + $0x498] sm:$0xff] }
 0x1eb   :  { %6795 = vmatpush1.bf16.msra.mxu0 %v10494_v27  ;;  %6967 = vmatpush1.bf16.msra.mxu1 %v10496_v28  ;;  %v500_v27 = vld [vmem:[#allocation7 + $0x2d8] sm:$0xff]  ;;  %v9570_v28 = vcombine.low %v475_v11, %v483_v12  ;;  %v571_v12 = vld [vmem:[#allocation7 + $0x510] sm:$0xff] }
 0x1ec   :  { %6796 = vmatprep.subr.bf16.mxu0 %v10511_v29  ;;  %6968 = vmatprep.subr.bf16.mxu1 %v10513_v30  ;;  %v9572_v29 = vcombine.low %v476_v13, %v484_v15  ;;  %v9587_v30 = vcombine.high %v491_v23, %v499_v25  ;;  %v9589_v31 = vcombine.high %v492_v26, %v500_v27  ;;  %v579_v13 = vld [vmem:[#allocation7 + $0x550] sm:$0xff]  ;;  %v572_v15 = vld [vmem:[#allocation7 + $0x518] sm:$0xff] }
 0x1ef   :  { %6797 = vmatpush1.bf16.msra.mxu0 %v10510_v34  ;;  %6969 = vmatpush1.bf16.msra.mxu1 %v10512_v35  ;;  %v516_v34 = vld [vmem:[#allocation7 + $0x358] sm:$0xff]  ;;  %v9586_v35 = vcombine.low %v491_v23, %v499_v25  ;;  %v587_v25 = vld [vmem:[#allocation7 + $0x590] sm:$0xff] }
 0x1f0   :  { %6981 = vmatprep.subr.bf16.mxu0 %v9507_v36  ;;  %7153 = vmatprep.subr.bf16.mxu1 %v9509_v37  ;;  %v9588_v36 = vcombine.low %v492_v26, %v500_v27  ;;  %v9603_v37 = vcombine.high %v507_v32, %v515_v45  ;;  %v9605_v38 = vcombine.high %v508_v33, %v516_v34  ;;  %v595_v26 = vld [vmem:[#allocation7 + $0x5d0] sm:$0xff]  ;;  %v588_v27 = vld [vmem:[#allocation7 + $0x598] sm:$0xff] }
 0x1f2   :  { %6799 = vmatmul.mubr.bf16.vlgmr.msra.gmra.mrb[8].mxu0 %v11412_v52  ;;  %6971 = vmatmul.mubr.bf16.vlgmr.msra.gmra.mrb[8].mxu1 %v11412_v52 }
 0x1f3   :  { %6982 = vmatpush1.bf16.msra.mxu0 %v9506_v43  ;;  %7013 = vmatprep.mubr.bf16.mxu0 %v11384_v14  ;;  %v532_v43 = vld [vmem:[#allocation7 + $0x3d8] sm:$0xff] }
 0x1f4   :  { %7154 = vmatpush1.bf16.msra.mxu1 %v9508_v53  ;;  %7185 = vmatprep.mubr.bf16.mxu1 %v11384_v14  ;;  %v9602_v53 = vcombine.low %v507_v32, %v515_v45  ;;  %v9621_v56 = vcombine.high %v524_v42, %v532_v43  ;;  %v603_v45 = vld [vmem:[#allocation7 + $0x610] sm:$0xff] }
 0x1f5   :  { %6983 = vmatprep.subr.bf16.mxu0 %v9523_v54  ;;  %7155 = vmatprep.subr.bf16.mxu1 %v9525_v55  ;;  %v9604_v54 = vcombine.low %v508_v33, %v516_v34  ;;  %v9619_v55 = vcombine.high %v523_v39, %v531_v40  ;;  %v611_v33 = vld [vmem:[#allocation7 + $0x650] sm:$0xff]  ;;  %v604_v34 = vld [vmem:[#allocation7 + $0x618] sm:$0xff] }
 0x1f7   :  { %6984 = vmatpush1.bf16.msra.mxu0 %v9522_v62  ;;  %v548_v62 = vld [vmem:[#allocation7 + $0x458] sm:$0xff] }
 0x1f8   :  { %7156 = vmatpush1.bf16.msra.mxu1 %v9524_v63  ;;  %6985 = vmatprep.subr.bf16.mxu0 %v9539_v0  ;;  %v9618_v63 = vcombine.low %v523_v39, %v531_v40  ;;  %v9620_v0 = vcombine.low %v524_v42, %v532_v43  ;;  %v9637_v2 = vcombine.high %v540_v61, %v548_v62  ;;  %v619_v40 = vld [vmem:[#allocation7 + $0x690] sm:$0xff]  ;;  %v620_v43 = vld [vmem:[#allocation7 + $0x698] sm:$0xff] }
 0x1f9   :  { %7157 = vmatprep.subr.bf16.mxu1 %v9541_v1  ;;  %v9635_v1 = vcombine.high %v539_v58, %v547_v59  ;;  %v627_v42 = vld [vmem:[#allocation7 + $0x6d0] sm:$0xff] }
 0x1fb   :  { %6986 = vmatpush1.bf16.msra.mxu0 %v9538_v6  ;;  %v564_v6 = vld [vmem:[#allocation7 + $0x4d8] sm:$0xff] }
 0x1fc   :  { %7158 = vmatpush1.bf16.msra.mxu1 %v9540_v7  ;;  %6987 = vmatprep.subr.bf16.mxu0 %v9555_v8  ;;  %v9634_v7 = vcombine.low %v539_v58, %v547_v59  ;;  %v9636_v8 = vcombine.low %v540_v61, %v548_v62  ;;  %v9653_v11 = vcombine.high %v556_v5, %v564_v6  ;;  %v635_v59 = vld [vmem:[#allocation7 + $0x710] sm:$0xff]  ;;  %v636_v62 = vld [vmem:[#allocation7 + $0x718] sm:$0xff] }
 0x1fd   :  { %7159 = vmatprep.subr.bf16.mxu1 %v9557_v9  ;;  %v9651_v9 = vcombine.high %v555_v3, %v563_v4  ;;  %v643_v61 = vld [vmem:[#allocation7 + $0x750] sm:$0xff] }
 0x1ff   :  { %6988 = vmatpush1.bf16.msra.mxu0 %v9554_v17  ;;  %v580_v17 = vld [vmem:[#allocation7 + $0x558] sm:$0xff] }
 0x200   :  { %7160 = vmatpush1.bf16.msra.mxu1 %v9556_v19  ;;  %6989 = vmatprep.subr.bf16.mxu0 %v9571_v21  ;;  %v9650_v19 = vcombine.low %v555_v3, %v563_v4  ;;  %v9652_v21 = vcombine.low %v556_v5, %v564_v6  ;;  %v9669_v23 = vcombine.high %v572_v15, %v580_v17  ;;  %v651_v4 = vld [vmem:[#allocation7 + $0x790] sm:$0xff]  ;;  %v652_v6 = vld [vmem:[#allocation7 + $0x798] sm:$0xff] }
 0x201   :  { %7161 = vmatprep.subr.bf16.mxu1 %v9573_v22  ;;  %v9667_v22 = vcombine.high %v571_v12, %v579_v13  ;;  %v659_v5 = vld [vmem:[#allocation7 + $0x7d0] sm:$0xff] }
 0x203   :  { %6990 = vmatpush1.bf16.msra.mxu0 %v9570_v28  ;;  %v596_v28 = vld [vmem:[#allocation7 + $0x5d8] sm:$0xff] }
 0x204   :  { %7162 = vmatpush1.bf16.msra.mxu1 %v9572_v29  ;;  %6991 = vmatprep.subr.bf16.mxu0 %v9587_v30  ;;  %v9666_v29 = vcombine.low %v571_v12, %v579_v13  ;;  %v9668_v30 = vcombine.low %v572_v15, %v580_v17  ;;  %v9685_v32 = vcombine.high %v588_v27, %v596_v28  ;;  %v667_v13 = vld [vmem:[#allocation7 + $0x810] sm:$0xff]  ;;  %v668_v17 = vld [vmem:[#allocation7 + $0x818] sm:$0xff] }
 0x205   :  { %7163 = vmatprep.subr.bf16.mxu1 %v9589_v31  ;;  %v9683_v31 = vcombine.high %v587_v25, %v595_v26  ;;  %v675_v15 = vld [vmem:[#allocation7 + $0x850] sm:$0xff] }
 0x207   :  { %6992 = vmatpush1.bf16.msra.mxu0 %v9586_v35  ;;  %v612_v35 = vld [vmem:[#allocation7 + $0x658] sm:$0xff] }
 0x208   :  { %7164 = vmatpush1.bf16.msra.mxu1 %v9588_v36  ;;  %6993 = vmatprep.subr.bf16.mxu0 %v9603_v37  ;;  %v9682_v36 = vcombine.low %v587_v25, %v595_v26  ;;  %v9684_v37 = vcombine.low %v588_v27, %v596_v28  ;;  %v9701_v39 = vcombine.high %v604_v34, %v612_v35  ;;  %v683_v26 = vld [vmem:[#allocation7 + $0x890] sm:$0xff] }
 0x209   :  { %7165 = vmatprep.subr.bf16.mxu1 %v9605_v38  ;;  %v9699_v38 = vcombine.high %v603_v45, %v611_v33  ;;  %v691_v27 = vld [vmem:[#allocation7 + $0x8d0] sm:$0xff]  ;;  %v9762_v28 = vcombine.low %v667_v13, %v675_v15 }
 0x20b   :  { %6994 = vmatpush1.bf16.msra.mxu0 %v9602_v53  ;;  %v628_v53 = vld [vmem:[#allocation7 + $0x6d8] sm:$0xff] }
 0x20c   :  { %7166 = vmatpush1.bf16.msra.mxu1 %v9604_v54  ;;  %6995 = vmatprep.subr.bf16.mxu0 %v9619_v55  ;;  %v9698_v54 = vcombine.low %v603_v45, %v611_v33  ;;  %v9700_v55 = vcombine.low %v604_v34, %v612_v35  ;;  %v9717_v58 = vcombine.high %v620_v43, %v628_v53  ;;  %v699_v45 = vld [vmem:[#allocation7 + $0x910] sm:$0xff]  ;;  %v700_v35 = vld [vmem:[#allocation7 + $0x918] sm:$0xff] }
 0x20d   :  { %7167 = vmatprep.subr.bf16.mxu1 %v9621_v56  ;;  %v9715_v56 = vcombine.high %v619_v40, %v627_v42  ;;  %v707_v33 = vld [vmem:[#allocation7 + $0x950] sm:$0xff] }
 0x20f   :  { %6996 = vmatpush1.bf16.msra.mxu0 %v9618_v63  ;;  %v644_v63 = vld [vmem:[#allocation7 + $0x758] sm:$0xff] }
 0x210   :  { %7168 = vmatpush1.bf16.msra.mxu1 %v9620_v0  ;;  %6997 = vmatprep.subr.bf16.mxu0 %v9635_v1  ;;  %v9714_v0 = vcombine.low %v619_v40, %v627_v42  ;;  %v9716_v1 = vcombine.low %v620_v43, %v628_v53  ;;  %v9733_v3 = vcombine.high %v636_v62, %v644_v63  ;;  %v715_v42 = vld [vmem:[#allocation7 + $0x990] sm:$0xff]  ;;  %v716_v53 = vld [vmem:[#allocation7 + $0x998] sm:$0xff] }
 0x211   :  { %7169 = vmatprep.subr.bf16.mxu1 %v9637_v2  ;;  %v9731_v2 = vcombine.high %v635_v59, %v643_v61  ;;  %v723_v43 = vld [vmem:[#allocation7 + $0x9d0] sm:$0xff] }
 0x213   :  { %6998 = vmatpush1.bf16.msra.mxu0 %v9634_v7  ;;  %v660_v7 = vld [vmem:[#allocation7 + $0x7d8] sm:$0xff] }
 0x214   :  { %7170 = vmatpush1.bf16.msra.mxu1 %v9636_v8  ;;  %6999 = vmatprep.subr.bf16.mxu0 %v9651_v9  ;;  %v9730_v8 = vcombine.low %v635_v59, %v643_v61  ;;  %v9732_v9 = vcombine.low %v636_v62, %v644_v63  ;;  %v9749_v12 = vcombine.high %v652_v6, %v660_v7  ;;  %v731_v61 = vld [vmem:[#allocation7 + $0xa10] sm:$0xff]  ;;  %v732_v63 = vld [vmem:[#allocation7 + $0xa18] sm:$0xff] }
 0x215   :  { %7171 = vmatprep.subr.bf16.mxu1 %v9653_v11  ;;  %v9747_v11 = vcombine.high %v651_v4, %v659_v5  ;;  %v739_v62 = vld [vmem:[#allocation7 + $0xa50] sm:$0xff] }
 0x217   :  { %7000 = vmatpush1.bf16.msra.mxu0 %v9650_v19  ;;  %v676_v19 = vld [vmem:[#allocation7 + $0x858] sm:$0xff] }
 0x218   :  { %7172 = vmatpush1.bf16.msra.mxu1 %v9652_v21  ;;  %7001 = vmatprep.subr.bf16.mxu0 %v9667_v22  ;;  %v9746_v21 = vcombine.low %v651_v4, %v659_v5  ;;  %v9748_v22 = vcombine.low %v652_v6, %v660_v7  ;;  %v9765_v25 = vcombine.high %v668_v17, %v676_v19  ;;  %v747_v5 = vld [vmem:[#allocation7 + $0xa90] sm:$0xff]  ;;  %v748_v7 = vld [vmem:[#allocation7 + $0xa98] sm:$0xff] }
 0x219   :  { %7173 = vmatprep.subr.bf16.mxu1 %v9669_v23  ;;  %v9763_v23 = vcombine.high %v667_v13, %v675_v15  ;;  %v755_v6 = vld [vmem:[#allocation7 + $0xad0] sm:$0xff] }
 0x21a   :  { %v763_v15 = vld [vmem:[#allocation7 + $0xb10] sm:$0xff] }
 0x21b   :  { %7002 = vmatpush1.bf16.msra.mxu0 %v9666_v29  ;;  %v684_v29 = vld [vmem:[#allocation7 + $0x898] sm:$0xff] }
 0x21c   :  { %7174 = vmatpush1.bf16.msra.mxu1 %v9668_v30  ;;  %7003 = vmatprep.subr.bf16.mxu0 %v9683_v31  ;;  %v692_v30 = vld [vmem:[#allocation7 + $0x8d8] sm:$0xff]  ;;  %v9764_v31 = vcombine.low %v668_v17, %v676_v19  ;;  %v771_v17 = vld [vmem:[#allocation7 + $0xb50] sm:$0xff] }
 0x21d   :  { %7175 = vmatprep.subr.bf16.mxu1 %v9685_v32  ;;  %v9779_v32 = vcombine.high %v683_v26, %v691_v27  ;;  %v9781_v34 = vcombine.high %v684_v29, %v692_v30  ;;  %v764_v19 = vld [vmem:[#allocation7 + $0xb18] sm:$0xff] }
 0x21f   :  { %7004 = vmatpush1.bf16.msra.mxu0 %v9682_v36  ;;  %v708_v36 = vld [vmem:[#allocation7 + $0x958] sm:$0xff] }
 0x220   :  { %7176 = vmatpush1.bf16.msra.mxu1 %v9684_v37  ;;  %7005 = vmatprep.subr.bf16.mxu0 %v9699_v38  ;;  %v9778_v37 = vcombine.low %v683_v26, %v691_v27  ;;  %v9780_v38 = vcombine.low %v684_v29, %v692_v30  ;;  %v9797_v40 = vcombine.high %v700_v35, %v708_v36  ;;  %v779_v27 = vld [vmem:[#allocation7 + $0xb90] sm:$0xff]  ;;  %v780_v29 = vld [vmem:[#allocation7 + $0xb98] sm:$0xff] }
 0x221   :  { %7177 = vmatprep.subr.bf16.mxu1 %v9701_v39  ;;  %v9795_v39 = vcombine.high %v699_v45, %v707_v33  ;;  %v788_v30 = vld [vmem:[#allocation7 + $0xbd8] sm:$0xff] }
 0x223   :  { %7006 = vmatpush1.bf16.msra.mxu0 %v9698_v54  ;;  %v724_v54 = vld [vmem:[#allocation7 + $0x9d8] sm:$0xff] }
 0x224   :  { %7178 = vmatpush1.bf16.msra.mxu1 %v9700_v55  ;;  %7007 = vmatprep.subr.bf16.mxu0 %v9715_v56  ;;  %v9794_v55 = vcombine.low %v699_v45, %v707_v33  ;;  %v9796_v56 = vcombine.low %v700_v35, %v708_v36  ;;  %v9813_v59 = vcombine.high %v716_v53, %v724_v54  ;;  %v803_v35 = vld [vmem:[#allocation7 + $0xc50] sm:$0xff]  ;;  %v796_v36 = vld [vmem:[#allocation7 + $0xc18] sm:$0xff] }
 0x225   :  { %7179 = vmatprep.subr.bf16.mxu1 %v9717_v58  ;;  %v9811_v58 = vcombine.high %v715_v42, %v723_v43  ;;  %v9877_v33 = vcombine.high %v780_v29, %v788_v30 }
 0x227   :  { %7008 = vmatpush1.bf16.msra.mxu0 %v9714_v0  ;;  %v740_v0 = vld [vmem:[#allocation7 + $0xa58] sm:$0xff] }
 0x228   :  { %7180 = vmatpush1.bf16.msra.mxu1 %v9716_v1  ;;  %7009 = vmatprep.subr.bf16.mxu0 %v9731_v2  ;;  %v9810_v1 = vcombine.low %v715_v42, %v723_v43  ;;  %v9812_v2 = vcombine.low %v716_v53, %v724_v54  ;;  %v9829_v4 = vcombine.high %v732_v63, %v740_v0  ;;  %v811_v43 = vld [vmem:[#allocation7 + $0xc90] sm:$0xff]  ;;  %v812_v54 = vld [vmem:[#allocation7 + $0xc98] sm:$0xff] }
 0x229   :  { %7181 = vmatprep.subr.bf16.mxu1 %v9733_v3  ;;  %v9827_v3 = vcombine.high %v731_v61, %v739_v62  ;;  %v819_v53 = vld [vmem:[#allocation7 + $0xcd0] sm:$0xff] }
 0x22b   :  { %7010 = vmatpush1.bf16.msra.mxu0 %v9730_v8  ;;  %v756_v8 = vld [vmem:[#allocation7 + $0xad8] sm:$0xff] }
 0x22c   :  { %7182 = vmatpush1.bf16.msra.mxu1 %v9732_v9  ;;  %7011 = vmatprep.subr.bf16.mxu0 %v9747_v11  ;;  %v9826_v9 = vcombine.low %v731_v61, %v739_v62  ;;  %v9828_v11 = vcombine.low %v732_v63, %v740_v0  ;;  %v9845_v13 = vcombine.high %v748_v7, %v756_v8  ;;  %v827_v62 = vld [vmem:[#allocation7 + $0xd10] sm:$0xff]  ;;  %v828_v0 = vld [vmem:[#allocation7 + $0xd18] sm:$0xff] }
 0x22d   :  { %7183 = vmatprep.subr.bf16.mxu1 %v9749_v12  ;;  %v9843_v12 = vcombine.high %v747_v5, %v755_v6  ;;  %v835_v63 = vld [vmem:[#allocation7 + $0xd50] sm:$0xff] }
 0x22f   :  { %7012 = vmatpush1.bf16.msra.mxu0 %v9746_v21  ;;  %v772_v21 = vld [vmem:[#allocation7 + $0xb58] sm:$0xff] }
 0x230   :  { %7184 = vmatpush1.bf16.msra.mxu1 %v9748_v22  ;;  %7024 = vmatprep.subr.bf16.mxu0 %v9763_v23  ;;  %v9842_v22 = vcombine.low %v747_v5, %v755_v6  ;;  %v9844_v23 = vcombine.low %v748_v7, %v756_v8  ;;  %v9861_v26 = vcombine.high %v764_v19, %v772_v21  ;;  %v843_v6 = vld [vmem:[#allocation7 + $0xd90] sm:$0xff]  ;;  %v844_v8 = vld [vmem:[#allocation7 + $0xd98] sm:$0xff] }
 0x231   :  { %7196 = vmatprep.subr.bf16.mxu1 %v9765_v25  ;;  %v9859_v25 = vcombine.high %v763_v15, %v771_v17  ;;  %v851_v7 = vld [vmem:[#allocation7 + $0xdd0] sm:$0xff] }
 0x232   :  { %7014 = vmatmul.mubr.bf16.vlgmr.msra.gmra.mrb[12].mxu0 %v11380_v10 }
 0x233   :  { %7186 = vmatmul.mubr.bf16.vlgmr.msra.gmra.mrb[12].mxu1 %v11380_v10  ;;  %7025 = vmatpush1.bf16.msra.mxu0 %v9762_v28  ;;  %v787_v28 = vld [vmem:[#allocation7 + $0xbd0] sm:$0xff] }
 0x234   :  { %7056 = vmatprep.mubr.bf16.mxu0 %v11392_v24  ;;  %7197 = vmatpush1.bf16.msra.mxu1 %v9764_v31  ;;  %v9858_v31 = vcombine.low %v763_v15, %v771_v17  ;;  %v9875_v45 = vcombine.high %v779_v27, %v787_v28  ;;  %v859_v17 = vld [vmem:[#allocation7 + $0xe10] sm:$0xff] }
 0x235   :  { %7228 = vmatprep.mubr.bf16.mxu1 %v11392_v24  ;;  %7026 = vmatprep.subr.bf16.mxu0 %v9779_v32  ;;  %v9860_v32 = vcombine.low %v764_v19, %v772_v21  ;;  %v867_v19 = vld [vmem:[#allocation7 + $0xe50] sm:$0xff]  ;;  %v860_v21 = vld [vmem:[#allocation7 + $0xe18] sm:$0xff] }
 0x236   :  { %7198 = vmatprep.subr.bf16.mxu1 %v9781_v34  ;;  %v795_v34 = vld [vmem:[#allocation7 + $0xc10] sm:$0xff] }
 0x237   :  { %7027 = vmatpush1.bf16.msra.mxu0 %v9778_v37  ;;  %v804_v37 = vld [vmem:[#allocation7 + $0xc58] sm:$0xff] }
 0x238   :  { %7199 = vmatpush1.bf16.msra.mxu1 %v9780_v38  ;;  %7028 = vmatprep.subr.bf16.mxu0 %v9795_v39  ;;  %v9874_v38 = vcombine.low %v779_v27, %v787_v28  ;;  %v9876_v39 = vcombine.low %v780_v29, %v788_v30  ;;  %v9893_v42 = vcombine.high %v796_v36, %v804_v37  ;;  %v875_v28 = vld [vmem:[#allocation7 + $0xe90] sm:$0xff]  ;;  %v876_v30 = vld [vmem:[#allocation7 + $0xe98] sm:$0xff] }
 0x239   :  { %7200 = vmatprep.subr.bf16.mxu1 %v9797_v40  ;;  %v9891_v40 = vcombine.high %v795_v34, %v803_v35  ;;  %v883_v29 = vld [vmem:[#allocation7 + $0xed0] sm:$0xff] }
 0x23b   :  { %7029 = vmatpush1.bf16.msra.mxu0 %v9794_v55  ;;  %v820_v55 = vld [vmem:[#allocation7 + $0xcd8] sm:$0xff] }
 0x23c   :  { %7201 = vmatpush1.bf16.msra.mxu1 %v9796_v56  ;;  %7030 = vmatprep.subr.bf16.mxu0 %v9811_v58  ;;  %v9890_v56 = vcombine.low %v795_v34, %v803_v35  ;;  %v9892_v58 = vcombine.low %v796_v36, %v804_v37  ;;  %v9909_v61 = vcombine.high %v812_v54, %v820_v55  ;;  %v891_v35 = vld [vmem:[#allocation7 + $0xf10] sm:$0xff]  ;;  %v892_v37 = vld [vmem:[#allocation7 + $0xf18] sm:$0xff] }
 0x23d   :  { %7202 = vmatprep.subr.bf16.mxu1 %v9813_v59  ;;  %v9907_v59 = vcombine.high %v811_v43, %v819_v53  ;;  %v899_v36 = vld [vmem:[#allocation7 + $0xf50] sm:$0xff] }
 0x23f   :  { %7031 = vmatpush1.bf16.msra.mxu0 %v9810_v1  ;;  %v836_v1 = vld [vmem:[#allocation7 + $0xd58] sm:$0xff] }
 0x240   :  { %7203 = vmatpush1.bf16.msra.mxu1 %v9812_v2  ;;  %7032 = vmatprep.subr.bf16.mxu0 %v9827_v3  ;;  %v9906_v2 = vcombine.low %v811_v43, %v819_v53  ;;  %v9908_v3 = vcombine.low %v812_v54, %v820_v55  ;;  %v9925_v5 = vcombine.high %v828_v0, %v836_v1  ;;  %v907_v53 = vld [vmem:[#allocation7 + $0xf90] sm:$0xff]  ;;  %v908_v55 = vld [vmem:[#allocation7 + $0xf98] sm:$0xff] }
 0x241   :  { %7204 = vmatprep.subr.bf16.mxu1 %v9829_v4  ;;  %v9923_v4 = vcombine.high %v827_v62, %v835_v63  ;;  %v915_v54 = vld [vmem:[#allocation7 + $0xfd0] sm:$0xff] }
 0x243   :  { %7033 = vmatpush1.bf16.msra.mxu0 %v9826_v9  ;;  %v852_v9 = vld [vmem:[#allocation7 + $0xdd8] sm:$0xff] }
 0x244   :  { %7205 = vmatpush1.bf16.msra.mxu1 %v9828_v11  ;;  %7034 = vmatprep.subr.bf16.mxu0 %v9843_v12  ;;  %v9922_v11 = vcombine.low %v827_v62, %v835_v63  ;;  %v9924_v12 = vcombine.low %v828_v0, %v836_v1  ;;  %v9941_v15 = vcombine.high %v844_v8, %v852_v9  ;;  %v923_v63 = vld [vmem:[#allocation7 + $0x1010] sm:$0xff]  ;;  %v924_v1 = vld [vmem:[#allocation7 + $0x1018] sm:$0xff] }
 0x245   :  { %7206 = vmatprep.subr.bf16.mxu1 %v9845_v13  ;;  %v9939_v13 = vcombine.high %v843_v6, %v851_v7  ;;  %v931_v0 = vld [vmem:[#allocation7 + $0x1050] sm:$0xff] }
 0x247   :  { %7035 = vmatpush1.bf16.msra.mxu0 %v9842_v22  ;;  %v868_v22 = vld [vmem:[#allocation7 + $0xe58] sm:$0xff] }
 0x248   :  { %7207 = vmatpush1.bf16.msra.mxu1 %v9844_v23  ;;  %7036 = vmatprep.subr.bf16.mxu0 %v9859_v25  ;;  %v9938_v23 = vcombine.low %v843_v6, %v851_v7  ;;  %v9940_v25 = vcombine.low %v844_v8, %v852_v9  ;;  %v9957_v27 = vcombine.high %v860_v21, %v868_v22  ;;  %v939_v7 = vld [vmem:[#allocation7 + $0x1090] sm:$0xff] }
 0x249   :  { %7208 = vmatprep.subr.bf16.mxu1 %v9861_v26  ;;  %v9955_v26 = vcombine.high %v859_v17, %v867_v19  ;;  %v947_v8 = vld [vmem:[#allocation7 + $0x10d0] sm:$0xff]  ;;  %v10018_v9 = vcombine.low %v923_v63, %v931_v0 }
 0x24b   :  { %7037 = vmatpush1.bf16.msra.mxu0 %v9858_v31  ;;  %v884_v31 = vld [vmem:[#allocation7 + $0xed8] sm:$0xff] }
 0x24c   :  { %7209 = vmatpush1.bf16.msra.mxu1 %v9860_v32  ;;  %7038 = vmatprep.subr.bf16.mxu0 %v9875_v45  ;;  %v9954_v32 = vcombine.low %v859_v17, %v867_v19  ;;  %v9956_v45 = vcombine.low %v860_v21, %v868_v22  ;;  %v9973_v34 = vcombine.high %v876_v30, %v884_v31  ;;  %v955_v17 = vld [vmem:[#allocation7 + $0x1110] sm:$0xff]  ;;  %v956_v22 = vld [vmem:[#allocation7 + $0x1118] sm:$0xff] }
 0x24d   :  { %7210 = vmatprep.subr.bf16.mxu1 %v9877_v33  ;;  %v9971_v33 = vcombine.high %v875_v28, %v883_v29  ;;  %v963_v19 = vld [vmem:[#allocation7 + $0x1150] sm:$0xff] }
 0x24f   :  { %7039 = vmatpush1.bf16.msra.mxu0 %v9874_v38  ;;  %v900_v38 = vld [vmem:[#allocation7 + $0xf58] sm:$0xff] }
 0x250   :  { %7211 = vmatpush1.bf16.msra.mxu1 %v9876_v39  ;;  %7040 = vmatprep.subr.bf16.mxu0 %v9891_v40  ;;  %v9970_v39 = vcombine.low %v875_v28, %v883_v29  ;;  %v9972_v40 = vcombine.low %v876_v30, %v884_v31  ;;  %v9989_v43 = vcombine.high %v892_v37, %v900_v38  ;;  %v971_v29 = vld [vmem:[#allocation7 + $0x1190] sm:$0xff]  ;;  %v972_v31 = vld [vmem:[#allocation7 + $0x1198] sm:$0xff] }
 0x251   :  { %7212 = vmatprep.subr.bf16.mxu1 %v9893_v42  ;;  %v9987_v42 = vcombine.high %v891_v35, %v899_v36  ;;  %v979_v30 = vld [vmem:[#allocation7 + $0x11d0] sm:$0xff] }
 0x253   :  { %7041 = vmatpush1.bf16.msra.mxu0 %v9890_v56  ;;  %v916_v56 = vld [vmem:[#allocation7 + $0xfd8] sm:$0xff] }
 0x254   :  { %7213 = vmatpush1.bf16.msra.mxu1 %v9892_v58  ;;  %7042 = vmatprep.subr.bf16.mxu0 %v9907_v59  ;;  %v9986_v58 = vcombine.low %v891_v35, %v899_v36  ;;  %v9988_v59 = vcombine.low %v892_v37, %v900_v38  ;;  %v10005_v62 = vcombine.high %v908_v55, %v916_v56  ;;  %v987_v36 = vld [vmem:[#allocation7 + $0x1210] sm:$0xff]  ;;  %v988_v38 = vld [vmem:[#allocation7 + $0x1218] sm:$0xff] }
 0x255   :  { %7214 = vmatprep.subr.bf16.mxu1 %v9909_v61  ;;  %v10003_v61 = vcombine.high %v907_v53, %v915_v54  ;;  %v995_v37 = vld [vmem:[#allocation7 + $0x1250] sm:$0xff] }
 0x257   :  { %7043 = vmatpush1.bf16.msra.mxu0 %v9906_v2  ;;  %v932_v2 = vld [vmem:[#allocation7 + $0x1058] sm:$0xff] }
 0x258   :  { %7215 = vmatpush1.bf16.msra.mxu1 %v9908_v3  ;;  %7044 = vmatprep.subr.bf16.mxu0 %v9923_v4  ;;  %v10002_v3 = vcombine.low %v907_v53, %v915_v54  ;;  %v10004_v4 = vcombine.low %v908_v55, %v916_v56  ;;  %v10021_v6 = vcombine.high %v924_v1, %v932_v2  ;;  %v1003_v54 = vld [vmem:[#allocation7 + $0x1290] sm:$0xff]  ;;  %v1004_v56 = vld [vmem:[#allocation7 + $0x1298] sm:$0xff] }
 0x259   :  { %7216 = vmatprep.subr.bf16.mxu1 %v9925_v5  ;;  %v10019_v5 = vcombine.high %v923_v63, %v931_v0  ;;  %v1011_v55 = vld [vmem:[#allocation7 + $0x12d0] sm:$0xff] }
 0x25a   :  { %v1019_v0 = vld [vmem:[#allocation7 + $0x1310] sm:$0xff] }
 0x25b   :  { %7045 = vmatpush1.bf16.msra.mxu0 %v9922_v11  ;;  %v940_v11 = vld [vmem:[#allocation7 + $0x1098] sm:$0xff] }
 0x25c   :  { %7217 = vmatpush1.bf16.msra.mxu1 %v9924_v12  ;;  %7046 = vmatprep.subr.bf16.mxu0 %v9939_v13  ;;  %v948_v12 = vld [vmem:[#allocation7 + $0x10d8] sm:$0xff]  ;;  %v10020_v13 = vcombine.low %v924_v1, %v932_v2  ;;  %v1027_v1 = vld [vmem:[#allocation7 + $0x1350] sm:$0xff] }
 0x25d   :  { %7218 = vmatprep.subr.bf16.mxu1 %v9941_v15  ;;  %v10035_v15 = vcombine.high %v939_v7, %v947_v8  ;;  %v10037_v21 = vcombine.high %v940_v11, %v948_v12  ;;  %v1020_v2 = vld [vmem:[#allocation7 + $0x1318] sm:$0xff] }
 0x25f   :  { %7047 = vmatpush1.bf16.msra.mxu0 %v9938_v23  ;;  %v964_v23 = vld [vmem:[#allocation7 + $0x1158] sm:$0xff] }
 0x260   :  { %7219 = vmatpush1.bf16.msra.mxu1 %v9940_v25  ;;  %7048 = vmatprep.subr.bf16.mxu0 %v9955_v26  ;;  %v10034_v25 = vcombine.low %v939_v7, %v947_v8  ;;  %v10036_v26 = vcombine.low %v940_v11, %v948_v12  ;;  %v10053_v28 = vcombine.high %v956_v22, %v964_v23  ;;  %v1035_v8 = vld [vmem:[#allocation7 + $0x1390] sm:$0xff]  ;;  %v1036_v11 = vld [vmem:[#allocation7 + $0x1398] sm:$0xff] }
 0x261   :  { %7220 = vmatprep.subr.bf16.mxu1 %v9957_v27  ;;  %v10051_v27 = vcombine.high %v955_v17, %v963_v19  ;;  %v1044_v12 = vld [vmem:[#allocation7 + $0x13d8] sm:$0xff] }
 0x263   :  { %7049 = vmatpush1.bf16.msra.mxu0 %v9954_v32  ;;  %v980_v32 = vld [vmem:[#allocation7 + $0x11d8] sm:$0xff] }
 0x264   :  { %7221 = vmatpush1.bf16.msra.mxu1 %v9956_v45  ;;  %7050 = vmatprep.subr.bf16.mxu0 %v9971_v33  ;;  %v10050_v45 = vcombine.low %v955_v17, %v963_v19  ;;  %v10052_v33 = vcombine.low %v956_v22, %v964_v23  ;;  %v10069_v35 = vcombine.high %v972_v31, %v980_v32  ;;  %v1059_v22 = vld [vmem:[#allocation7 + $0x1450] sm:$0xff]  ;;  %v1052_v23 = vld [vmem:[#allocation7 + $0x1418] sm:$0xff] }
 0x265   :  { %7222 = vmatprep.subr.bf16.mxu1 %v9973_v34  ;;  %v10067_v34 = vcombine.high %v971_v29, %v979_v30  ;;  %v10133_v19 = vcombine.high %v1036_v11, %v1044_v12 }
 0x267   :  { %7051 = vmatpush1.bf16.msra.mxu0 %v9970_v39  ;;  %v996_v39 = vld [vmem:[#allocation7 + $0x1258] sm:$0xff] }
 0x268   :  { %7223 = vmatpush1.bf16.msra.mxu1 %v9972_v40  ;;  %7052 = vmatprep.subr.bf16.mxu0 %v9987_v42  ;;  %v10066_v40 = vcombine.low %v971_v29, %v979_v30  ;;  %v10068_v42 = vcombine.low %v972_v31, %v980_v32  ;;  %v10085_v53 = vcombine.high %v988_v38, %v996_v39  ;;  %v1067_v30 = vld [vmem:[#allocation7 + $0x1490] sm:$0xff]  ;;  %v1068_v32 = vld [vmem:[#allocation7 + $0x1498] sm:$0xff] }
 0x269   :  { %7224 = vmatprep.subr.bf16.mxu1 %v9989_v43  ;;  %v10083_v43 = vcombine.high %v987_v36, %v995_v37  ;;  %v1075_v31 = vld [vmem:[#allocation7 + $0x14d0] sm:$0xff] }
 0x26b   :  { %7053 = vmatpush1.bf16.msra.mxu0 %v9986_v58  ;;  %v1012_v58 = vld [vmem:[#allocation7 + $0x12d8] sm:$0xff] }
 0x26c   :  { %7225 = vmatpush1.bf16.msra.mxu1 %v9988_v59  ;;  %7054 = vmatprep.subr.bf16.mxu0 %v10003_v61  ;;  %v10082_v59 = vcombine.low %v987_v36, %v995_v37  ;;  %v10084_v61 = vcombine.low %v988_v38, %v996_v39  ;;  %v10101_v63 = vcombine.high %v1004_v56, %v1012_v58  ;;  %v1083_v37 = vld [vmem:[#allocation7 + $0x1510] sm:$0xff]  ;;  %v1084_v39 = vld [vmem:[#allocation7 + $0x1518] sm:$0xff] }
 0x26d   :  { %7226 = vmatprep.subr.bf16.mxu1 %v10005_v62  ;;  %v10099_v62 = vcombine.high %v1003_v54, %v1011_v55  ;;  %v1091_v38 = vld [vmem:[#allocation7 + $0x1550] sm:$0xff] }
 0x26f   :  { %7055 = vmatpush1.bf16.msra.mxu0 %v10002_v3  ;;  %v1028_v3 = vld [vmem:[#allocation7 + $0x1358] sm:$0xff] }
 0x270   :  { %7227 = vmatpush1.bf16.msra.mxu1 %v10004_v4  ;;  %7067 = vmatprep.subr.bf16.mxu0 %v10019_v5  ;;  %v10098_v4 = vcombine.low %v1003_v54, %v1011_v55  ;;  %v10100_v5 = vcombine.low %v1004_v56, %v1012_v58  ;;  %v10117_v7 = vcombine.high %v1020_v2, %v1028_v3  ;;  %v1099_v55 = vld [vmem:[#allocation7 + $0x1590] sm:$0xff]  ;;  %v1100_v58 = vld [vmem:[#allocation7 + $0x1598] sm:$0xff] }
 0x271   :  { %7239 = vmatprep.subr.bf16.mxu1 %v10021_v6  ;;  %v10115_v6 = vcombine.high %v1019_v0, %v1027_v1  ;;  %v1107_v56 = vld [vmem:[#allocation7 + $0x15d0] sm:$0xff] }
 0x272   :  { %7057 = vmatmul.mubr.bf16.vlgmr.msra.gmra.mrb[12].mxu0 %v11388_v20 }
 0x273   :  { %7229 = vmatmul.mubr.bf16.vlgmr.msra.gmra.mrb[12].mxu1 %v11388_v20  ;;  %7068 = vmatpush1.bf16.msra.mxu0 %v10018_v9  ;;  %v1043_v9 = vld [vmem:[#allocation7 + $0x13d0] sm:$0xff] }
 0x274   :  { %7099 = vmatprep.mubr.bf16.mxu0 %v11400_v51  ;;  %7240 = vmatpush1.bf16.msra.mxu1 %v10020_v13  ;;  %v10114_v13 = vcombine.low %v1019_v0, %v1027_v1  ;;  %v10131_v17 = vcombine.high %v1035_v8, %v1043_v9  ;;  %v1115_v1 = vld [vmem:[#allocation7 + $0x1610] sm:$0xff] }
 0x275   :  { %7271 = vmatprep.mubr.bf16.mxu1 %v11400_v51  ;;  %7069 = vmatprep.subr.bf16.mxu0 %v10035_v15  ;;  %v10116_v15 = vcombine.low %v1020_v2, %v1028_v3  ;;  %v1123_v2 = vld [vmem:[#allocation7 + $0x1650] sm:$0xff]  ;;  %v1116_v3 = vld [vmem:[#allocation7 + $0x1618] sm:$0xff] }
 0x276   :  { %7241 = vmatprep.subr.bf16.mxu1 %v10037_v21  ;;  %v1051_v21 = vld [vmem:[#allocation7 + $0x1410] sm:$0xff] }
 0x277   :  { %7070 = vmatpush1.bf16.msra.mxu0 %v10034_v25  ;;  %v1060_v25 = vld [vmem:[#allocation7 + $0x1458] sm:$0xff] }
 0x278   :  { %7242 = vmatpush1.bf16.msra.mxu1 %v10036_v26  ;;  %7071 = vmatprep.subr.bf16.mxu0 %v10051_v27  ;;  %v10130_v26 = vcombine.low %v1035_v8, %v1043_v9  ;;  %v10132_v27 = vcombine.low %v1036_v11, %v1044_v12  ;;  %v10149_v29 = vcombine.high %v1052_v23, %v1060_v25  ;;  %v1131_v9 = vld [vmem:[#allocation7 + $0x1690] sm:$0xff]  ;;  %v1132_v12 = vld [vmem:[#allocation7 + $0x1698] sm:$0xff] }
 0x279   :  { %7243 = vmatprep.subr.bf16.mxu1 %v10053_v28  ;;  %v10147_v28 = vcombine.high %v1051_v21, %v1059_v22  ;;  %v1139_v11 = vld [vmem:[#allocation7 + $0x16d0] sm:$0xff] }
 0x27b   :  { %7072 = vmatpush1.bf16.msra.mxu0 %v10050_v45  ;;  %v1076_v45 = vld [vmem:[#allocation7 + $0x14d8] sm:$0xff] }
 0x27c   :  { %7244 = vmatpush1.bf16.msra.mxu1 %v10052_v33  ;;  %7073 = vmatprep.subr.bf16.mxu0 %v10067_v34  ;;  %v10146_v33 = vcombine.low %v1051_v21, %v1059_v22  ;;  %v10148_v34 = vcombine.low %v1052_v23, %v1060_v25  ;;  %v10165_v36 = vcombine.high %v1068_v32, %v1076_v45  ;;  %v1147_v22 = vld [vmem:[#allocation7 + $0x1710] sm:$0xff]  ;;  %v1148_v25 = vld [vmem:[#allocation7 + $0x1718] sm:$0xff] }
 0x27d   :  { %7245 = vmatprep.subr.bf16.mxu1 %v10069_v35  ;;  %v10163_v35 = vcombine.high %v1067_v30, %v1075_v31  ;;  %v1155_v23 = vld [vmem:[#allocation7 + $0x1750] sm:$0xff] }
 0x27f   :  { %7074 = vmatpush1.bf16.msra.mxu0 %v10066_v40  ;;  %v1092_v40 = vld [vmem:[#allocation7 + $0x1558] sm:$0xff] }
 0x280   :  { %7246 = vmatpush1.bf16.msra.mxu1 %v10068_v42  ;;  %7075 = vmatprep.subr.bf16.mxu0 %v10083_v43  ;;  %v10162_v42 = vcombine.low %v1067_v30, %v1075_v31  ;;  %v10164_v43 = vcombine.low %v1068_v32, %v1076_v45  ;;  %v10181_v54 = vcombine.high %v1084_v39, %v1092_v40  ;;  %v1163_v31 = vld [vmem:[#allocation7 + $0x1790] sm:$0xff]  ;;  %v1164_v45 = vld [vmem:[#allocation7 + $0x1798] sm:$0xff] }
 0x281   :  { %7247 = vmatprep.subr.bf16.mxu1 %v10085_v53  ;;  %v10179_v53 = vcombine.high %v1083_v37, %v1091_v38  ;;  %v1171_v32 = vld [vmem:[#allocation7 + $0x17d0] sm:$0xff] }
 0x283   :  { %7076 = vmatpush1.bf16.msra.mxu0 %v10082_v59  ;;  %v1108_v59 = vld [vmem:[#allocation7 + $0x15d8] sm:$0xff] }
 0x284   :  { %7248 = vmatpush1.bf16.msra.mxu1 %v10084_v61  ;;  %7077 = vmatprep.subr.bf16.mxu0 %v10099_v62  ;;  %v10178_v61 = vcombine.low %v1083_v37, %v1091_v38  ;;  %v10180_v62 = vcombine.low %v1084_v39, %v1092_v40  ;;  %v10197_v0 = vcombine.high %v1100_v58, %v1108_v59  ;;  %v1179_v38 = vld [vmem:[#allocation7 + $0x1810] sm:$0xff]  ;;  %v1180_v40 = vld [vmem:[#allocation7 + $0x1818] sm:$0xff] }
 0x285   :  { %7249 = vmatprep.subr.bf16.mxu1 %v10101_v63  ;;  %v10195_v63 = vcombine.high %v1099_v55, %v1107_v56  ;;  %v1187_v39 = vld [vmem:[#allocation7 + $0x1850] sm:$0xff] }
 0x287   :  { %7078 = vmatpush1.bf16.msra.mxu0 %v10098_v4  ;;  %v1124_v4 = vld [vmem:[#allocation7 + $0x1658] sm:$0xff] }
 0x288   :  { %7250 = vmatpush1.bf16.msra.mxu1 %v10100_v5  ;;  %7079 = vmatprep.subr.bf16.mxu0 %v10115_v6  ;;  %v10194_v5 = vcombine.low %v1099_v55, %v1107_v56  ;;  %v10196_v6 = vcombine.low %v1100_v58, %v1108_v59  ;;  %v10213_v8 = vcombine.high %v1116_v3, %v1124_v4  ;;  %v1195_v56 = vld [vmem:[#allocation7 + $0x1890] sm:$0xff] }
 0x289   :  { %7251 = vmatprep.subr.bf16.mxu1 %v10117_v7  ;;  %v10211_v7 = vcombine.high %v1115_v1, %v1123_v2  ;;  %v1203_v58 = vld [vmem:[#allocation7 + $0x18d0] sm:$0xff]  ;;  %v10274_v59 = vcombine.low %v1179_v38, %v1187_v39 }
 0x28b   :  { %7080 = vmatpush1.bf16.msra.mxu0 %v10114_v13  ;;  %v1140_v13 = vld [vmem:[#allocation7 + $0x16d8] sm:$0xff] }
 0x28c   :  { %7252 = vmatpush1.bf16.msra.mxu1 %v10116_v15  ;;  %7081 = vmatprep.subr.bf16.mxu0 %v10131_v17  ;;  %v10210_v15 = vcombine.low %v1115_v1, %v1123_v2  ;;  %v10212_v17 = vcombine.low %v1116_v3, %v1124_v4  ;;  %v10229_v21 = vcombine.high %v1132_v12, %v1140_v13  ;;  %v1211_v1 = vld [vmem:[#allocation7 + $0x1910] sm:$0xff]  ;;  %v1212_v4 = vld [vmem:[#allocation7 + $0x1918] sm:$0xff] }
 0x28d   :  { %7253 = vmatprep.subr.bf16.mxu1 %v10133_v19  ;;  %v10227_v19 = vcombine.high %v1131_v9, %v1139_v11  ;;  %v1219_v2 = vld [vmem:[#allocation7 + $0x1950] sm:$0xff] }
 0x28f   :  { %7082 = vmatpush1.bf16.msra.mxu0 %v10130_v26  ;;  %v1156_v26 = vld [vmem:[#allocation7 + $0x1758] sm:$0xff] }
 0x290   :  { %7254 = vmatpush1.bf16.msra.mxu1 %v10132_v27  ;;  %7083 = vmatprep.subr.bf16.mxu0 %v10147_v28  ;;  %v10226_v27 = vcombine.low %v1131_v9, %v1139_v11  ;;  %v10228_v28 = vcombine.low %v1132_v12, %v1140_v13  ;;  %v10245_v30 = vcombine.high %v1148_v25, %v1156_v26  ;;  %v1227_v11 = vld [vmem:[#allocation7 + $0x1990] sm:$0xff]  ;;  %v1228_v13 = vld [vmem:[#allocation7 + $0x1998] sm:$0xff] }
 0x291   :  { %7255 = vmatprep.subr.bf16.mxu1 %v10149_v29  ;;  %v10243_v29 = vcombine.high %v1147_v22, %v1155_v23  ;;  %v1235_v12 = vld [vmem:[#allocation7 + $0x19d0] sm:$0xff] }
 0x293   :  { %7084 = vmatpush1.bf16.msra.mxu0 %v10146_v33  ;;  %v1172_v33 = vld [vmem:[#allocation7 + $0x17d8] sm:$0xff] }
 0x294   :  { %7256 = vmatpush1.bf16.msra.mxu1 %v10148_v34  ;;  %7085 = vmatprep.subr.bf16.mxu0 %v10163_v35  ;;  %v10242_v34 = vcombine.low %v1147_v22, %v1155_v23  ;;  %v10244_v35 = vcombine.low %v1148_v25, %v1156_v26  ;;  %v10261_v37 = vcombine.high %v1164_v45, %v1172_v33  ;;  %v1243_v23 = vld [vmem:[#allocation7 + $0x1a10] sm:$0xff]  ;;  %v1244_v26 = vld [vmem:[#allocation7 + $0x1a18] sm:$0xff] }
 0x295   :  { %7257 = vmatprep.subr.bf16.mxu1 %v10165_v36  ;;  %v10259_v36 = vcombine.high %v1163_v31, %v1171_v32  ;;  %v1251_v25 = vld [vmem:[#allocation7 + $0x1a50] sm:$0xff] }
 0x297   :  { %7086 = vmatpush1.bf16.msra.mxu0 %v10162_v42  ;;  %v1188_v42 = vld [vmem:[#allocation7 + $0x1858] sm:$0xff] }
 0x298   :  { %7258 = vmatpush1.bf16.msra.mxu1 %v10164_v43  ;;  %7087 = vmatprep.subr.bf16.mxu0 %v10179_v53  ;;  %v10258_v43 = vcombine.low %v1163_v31, %v1171_v32  ;;  %v10260_v53 = vcombine.low %v1164_v45, %v1172_v33  ;;  %v10277_v55 = vcombine.high %v1180_v40, %v1188_v42  ;;  %v1259_v32 = vld [vmem:[#allocation7 + $0x1a90] sm:$0xff]  ;;  %v1260_v33 = vld [vmem:[#allocation7 + $0x1a98] sm:$0xff] }
 0x299   :  { %7259 = vmatprep.subr.bf16.mxu1 %v10181_v54  ;;  %v10275_v54 = vcombine.high %v1179_v38, %v1187_v39  ;;  %v1267_v45 = vld [vmem:[#allocation7 + $0x1ad0] sm:$0xff] }
 0x29a   :  { %v10355_v38 = vcombine.high %v1259_v32, %v1267_v45 }
 0x29b   :  { %7088 = vmatpush1.bf16.msra.mxu0 %v10178_v61  ;;  %v1196_v61 = vld [vmem:[#allocation7 + $0x1898] sm:$0xff] }
 0x29c   :  { %7260 = vmatpush1.bf16.msra.mxu1 %v10180_v62  ;;  %7089 = vmatprep.subr.bf16.mxu0 %v10195_v63  ;;  %v1204_v62 = vld [vmem:[#allocation7 + $0x18d8] sm:$0xff]  ;;  %v10276_v63 = vcombine.low %v1180_v40, %v1188_v42  ;;  %v1275_v40 = vld [vmem:[#allocation7 + $0x1b10] sm:$0xff] }
 0x29d   :  { %7261 = vmatprep.subr.bf16.mxu1 %v10197_v0  ;;  %v10291_v0 = vcombine.high %v1195_v56, %v1203_v58  ;;  %v10293_v3 = vcombine.high %v1196_v61, %v1204_v62  ;;  %v1283_v42 = vld [vmem:[#allocation7 + $0x1b50] sm:$0xff] }
 0x29f   :  { %7090 = vmatpush1.bf16.msra.mxu0 %v10194_v5  ;;  %v1220_v5 = vld [vmem:[#allocation7 + $0x1958] sm:$0xff] }
 0x2a0   :  { %7262 = vmatpush1.bf16.msra.mxu1 %v10196_v6  ;;  %7091 = vmatprep.subr.bf16.mxu0 %v10211_v7  ;;  %v10290_v6 = vcombine.low %v1195_v56, %v1203_v58  ;;  %v10292_v7 = vcombine.low %v1196_v61, %v1204_v62  ;;  %v10309_v9 = vcombine.high %v1212_v4, %v1220_v5  ;;  %v1291_v56 = vld [vmem:[#allocation7 + $0x1b90] sm:$0xff] }
 0x2a1   :  { %7263 = vmatprep.subr.bf16.mxu1 %v10213_v8  ;;  %v10307_v8 = vcombine.high %v1211_v1, %v1219_v2  ;;  %v10371_v61 = vcombine.high %v1275_v40, %v1283_v42  ;;  %v1299_v62 = vld [vmem:[#allocation7 + $0x1bd0] sm:$0xff] }
 0x2a3   :  { %7092 = vmatpush1.bf16.msra.mxu0 %v10210_v15  ;;  %v1236_v15 = vld [vmem:[#allocation7 + $0x19d8] sm:$0xff] }
 0x2a4   :  { %7264 = vmatpush1.bf16.msra.mxu1 %v10212_v17  ;;  %7093 = vmatprep.subr.bf16.mxu0 %v10227_v19  ;;  %v10306_v17 = vcombine.low %v1211_v1, %v1219_v2  ;;  %v10308_v19 = vcombine.low %v1212_v4, %v1220_v5  ;;  %v10325_v22 = vcombine.high %v1228_v13, %v1236_v15 }
 0x2a5   :  { %7265 = vmatprep.subr.bf16.mxu1 %v10229_v21  ;;  %v10323_v21 = vcombine.high %v1227_v11, %v1235_v12 }
 0x2a7   :  { %7094 = vmatpush1.bf16.msra.mxu0 %v10226_v27  ;;  %v1252_v27 = vld [vmem:[#allocation7 + $0x1a58] sm:$0xff] }
 0x2a8   :  { %7266 = vmatpush1.bf16.msra.mxu1 %v10228_v28  ;;  %7095 = vmatprep.subr.bf16.mxu0 %v10243_v29  ;;  %v10322_v28 = vcombine.low %v1227_v11, %v1235_v12  ;;  %v10324_v29 = vcombine.low %v1228_v13, %v1236_v15  ;;  %v10341_v31 = vcombine.high %v1244_v26, %v1252_v27 }
 0x2a9   :  { %7267 = vmatprep.subr.bf16.mxu1 %v10245_v30  ;;  %v10339_v30 = vcombine.high %v1243_v23, %v1251_v25  ;;  %v10387_v15 = vcombine.high %v1291_v56, %v1299_v62 }
 0x2ab   :  { %7096 = vmatpush1.bf16.msra.mxu0 %v10242_v34  ;;  %v1268_v34 = vld [vmem:[#allocation7 + $0x1ad8] sm:$0xff] }
 0x2ac   :  { %7268 = vmatpush1.bf16.msra.mxu1 %v10244_v35  ;;  %7097 = vmatprep.subr.bf16.mxu0 %v10259_v36  ;;  %v10338_v35 = vcombine.low %v1243_v23, %v1251_v25  ;;  %v10340_v36 = vcombine.low %v1244_v26, %v1252_v27  ;;  %v10357_v39 = vcombine.high %v1260_v33, %v1268_v34 }
 0x2ad   :  { %7269 = vmatprep.subr.bf16.mxu1 %v10261_v37  ;;  %v1433_v37 = vld [vmem:[#allocation8] sm:$0xff] }
 0x2ae   :  { %v1448_v58 = vrot.slane %v1433_v37, %v11356_v47  ;;  %v1452_v4 = vrot.slane %v1433_v37, %v11364_v50 }
 0x2af   :  { %7098 = vmatpush1.bf16.msra.mxu0 %v10258_v43  ;;  %v1276_v43 = vld [vmem:[#allocation7 + $0x1b18] sm:$0xff] }
 0x2b0   :  { %7270 = vmatpush1.bf16.msra.mxu1 %v10260_v53  ;;  %7110 = vmatprep.subr.bf16.mxu0 %v10275_v54  ;;  %v1284_v53 = vld [vmem:[#allocation7 + $0x1b58] sm:$0xff]  ;;  %v1440_v54 = vrot.slane %v1433_v37, %v11353_v46 }
 0x2b1   :  { %7282 = vmatprep.subr.bf16.mxu1 %v10277_v55  ;;  %v10354_v55 = vcombine.low %v1259_v32, %v1267_v45  ;;  %v10373_v5 = vcombine.high %v1276_v43, %v1284_v53  ;;  %v10372_v13 = vcombine.low %v1276_v43, %v1284_v53  ;;  %v1331_v43 = vld [vmem:[#allocation7 + $0x1cd0] sm:$0xff]  ;;  %v1324_v53 = vld [vmem:[#allocation7 + $0x1c98] sm:$0xff] }
 0x2b2   :  { %7100 = vmatmul.mubr.bf16.vlgmr.msra.gmra.mrb[12].mxu0 %v11398_v41 }
 0x2b3   :  { %7272 = vmatmul.mubr.bf16.vlgmr.msra.gmra.mrb[12].mxu1 %v11398_v41  ;;  %7111 = vmatpush1.bf16.msra.mxu0 %v10274_v59  ;;  %v10356_v59 = vcombine.low %v1260_v33, %v1268_v34  ;;  %v1308_v33 = vld [vmem:[#allocation7 + $0x1c18] sm:$0xff] }
 0x2b4   :  { %7142 = vmatprep.mubr.bf16.mxu0 %v11414_v48  ;;  %7283 = vmatpush1.bf16.msra.mxu1 %v10276_v63  ;;  %v1292_v63 = vld [vmem:[#allocation7 + $0x1b98] sm:$0xff] }
 0x2b5   :  { %7314 = vmatprep.mubr.bf16.mxu1 %v11414_v48  ;;  %7112 = vmatprep.subr.bf16.mxu0 %v10291_v0  ;;  %v1300_v0 = vld [vmem:[#allocation7 + $0x1bd8] sm:$0xff] }
 0x2b6   :  { %7284 = vmatprep.subr.bf16.mxu1 %v10293_v3  ;;  %v1444_v3 = vrot.slane %v1433_v37, %v11361_v49  ;;  %v1316_v34 = vld [vmem:[#allocation7 + $0x1c58] sm:$0xff]  ;;  %v10386_v37 = vcombine.low %v1291_v56, %v1299_v62  ;;  %v1347_v56 = vld [vmem:[#allocation7 + $0x1d50] sm:$0xff] }
 0x2b7   :  { %7113 = vmatpush1.bf16.msra.mxu0 %v10290_v6  ;;  %v1340_v62 = vld [vmem:[#allocation7 + $0x1d18] sm:$0xff] }
 0x2b8   :  { %7285 = vmatpush1.bf16.msra.mxu1 %v10292_v7  ;;  %7114 = vmatprep.subr.bf16.mxu0 %v10307_v8  ;;  %v10370_v8 = vcombine.low %v1275_v40, %v1283_v42  ;;  %v10405_v40 = vcombine.high %v1308_v33, %v1316_v34  ;;  %v1323_v42 = vld [vmem:[#allocation7 + $0x1c90] sm:$0xff] }
 0x2b9   :  { %7286 = vmatprep.subr.bf16.mxu1 %v10309_v9 }
 0x2bb   :  { %7115 = vmatpush1.bf16.msra.mxu0 %v10306_v17  ;;  %v10389_v17 = vcombine.high %v1292_v63, %v1300_v0 }
 0x2bc   :  { %7287 = vmatpush1.bf16.msra.mxu1 %v10308_v19  ;;  %7116 = vmatprep.subr.bf16.mxu0 %v10323_v21 }
 0x2bd   :  { %7288 = vmatprep.subr.bf16.mxu1 %v10325_v22 }
 0x2bf   :  { %7117 = vmatpush1.bf16.msra.mxu0 %v10322_v28 }
 0x2c0   :  { %7289 = vmatpush1.bf16.msra.mxu1 %v10324_v29  ;;  %7118 = vmatprep.subr.bf16.mxu0 %v10339_v30  ;;  %v1307_v30 = vld [vmem:[#allocation7 + $0x1c10] sm:$0xff] }
 0x2c1   :  { %7290 = vmatprep.subr.bf16.mxu1 %v10341_v31  ;;  %v1315_v31 = vld [vmem:[#allocation7 + $0x1c50] sm:$0xff] }
 0x2c3   :  { %7119 = vmatpush1.bf16.msra.mxu0 %v10338_v35 }
 0x2c4   :  { %7291 = vmatpush1.bf16.msra.mxu1 %v10340_v36  ;;  %7120 = vmatprep.subr.bf16.mxu0 %v10355_v38  ;;  %v10388_v38 = vcombine.low %v1292_v63, %v1300_v0  ;;  %v10418_v63 = vcombine.low %v1323_v42, %v1331_v43 }
 0x2c5   :  { %v6800_v1 = vpop.f32.mrb[8].mxu0  ;;  %v6972_v2 = vpop.f32.mrb[8].mxu1  ;;  %7292 = vmatprep.subr.bf16.mxu1 %v10357_v39  ;;  %v10403_v39 = vcombine.high %v1307_v30, %v1315_v31 }
 0x2c6   :  { %v6802_v6 = vpop.f32.mrb[9].mxu0  ;;  %v6974_v7 = vpop.f32.mrb[9].mxu1  ;;  %v11444_v9 = vadd.f32 %v6800_v1, %v1440_v54  ;;  %v11446_v19 = vadd.f32 %v6972_v2, %v1448_v58  ;;  %v1339_v1 = vld [vmem:[#allocation7 + $0x1d10] sm:$0xff]  ;;  %v1348_v2 = vld [vmem:[#allocation7 + $0x1d58] sm:$0xff] }
 0x2c7   :  { %v6804_v11 = vpop.f32.mrb[10].mxu0  ;;  %v6976_v12 = vpop.f32.mrb[10].mxu1  ;;  %7121 = vmatpush1.bf16.msra.mxu0 %v10354_v55  ;;  %v11452_v26 = vadd.f32 %v6802_v6, %v1444_v3  ;;  %v11454_v27 = vadd.f32 %v6974_v7, %v1452_v4  ;;  %v10402_v55 = vcombine.low %v1307_v30, %v1315_v31  ;;  %v1363_v6 = vld [vmem:[#allocation7 + $0x1dd0] sm:$0xff]  ;;  %v1356_v7 = vld [vmem:[#allocation7 + $0x1d98] sm:$0xff] }
 0x2c8   :  { %v11448_v21 = vadd.f32 %v6804_v11, %v1440_v54  ;;  %v11450_v22 = vadd.f32 %v6976_v12, %v1448_v58  ;;  %7293 = vmatpush1.bf16.msra.mxu1 %v10356_v59  ;;  %v6806_v23 = vpop.f32.mrb[11].mxu0  ;;  %v6978_v25 = vpop.f32.mrb[11].mxu1  ;;  %7122 = vmatprep.subr.bf16.mxu0 %v10371_v61  ;;  %v1332_v54 = vld [vmem:[#allocation7 + $0x1cd8] sm:$0xff]  ;;  %v10404_v58 = vcombine.low %v1308_v33, %v1316_v34 }
 0x2c9   :  { %v11456_v28 = vadd.f32 %v6806_v23, %v1444_v3  ;;  %v11458_v29 = vadd.f32 %v6978_v25, %v1452_v4  ;;  %7294 = vmatprep.subr.bf16.mxu1 %v10373_v5  ;;  %v10419_v59 = vcombine.high %v1323_v42, %v1331_v43  ;;  %v10421_v61 = vcombine.high %v1324_v53, %v1332_v54  ;;  %v1355_v5 = vld [vmem:[#allocation7 + $0x1d90] sm:$0xff]  ;;  %v1372_v25 = vld [vmem:[#allocation7 + $0x1e18] sm:$0xff] }
 0x2ca   :  { %v8013_v32 = vpack.c.bf16 %v11448_v21, %v11444_v9  ;;  %v8015_v45 = vpack.c.bf16 %v11450_v22, %v11446_v19  ;;  %v10420_v0 = vcombine.low %v1324_v53, %v1332_v54  ;;  %v10435_v3 = vcombine.high %v1339_v1, %v1347_v56  ;;  %v1379_v23 = vld [vmem:[#allocation7 + $0x1e50] sm:$0xff]  ;;  %v1380_v30 = vld [vmem:[#allocation7 + $0x1e58] sm:$0xff]  ;;  %v11012_v9 = vld [vmem:[%s12023_s6 + $0x188] sm:$0xff]  }
 0x2cb   :  { %v8014_v35 = vpack.c.bf16 %v11456_v28, %v11452_v26  ;;  %v8016_v36 = vpack.c.bf16 %v11458_v29, %v11454_v27  ;;  %7123 = vmatpush1.bf16.msra.mxu0 %v10370_v8  ;;  %v10437_v4 = vcombine.high %v1340_v62, %v1348_v2  ;;  %v1364_v8 = vld [vmem:[#allocation7 + $0x1dd8] sm:$0xff]  ;;  %v10434_v11 = vcombine.low %v1339_v1, %v1347_v56  ;;  %v10983_v26 = vld [vmem:[%s12023_s6 + $0x10] sm:$0xff]   ;;  %v10985_v27 = vld [vmem:[%s12023_s6 + $0x58] sm:$0xff]  }
 0x2cc   :  { %7295 = vmatpush1.bf16.msra.mxu1 %v10372_v13  ;;  %7124 = vmatprep.subr.bf16.mxu0 %v10387_v15  ;;  %v10436_v12 = vcombine.low %v1340_v62, %v1348_v2  ;;  %v10451_v13 = vcombine.high %v1355_v5, %v1363_v6  ;;  %v10453_v15 = vcombine.high %v1356_v7, %v1364_v8  ;;  %v1396_v42 = vld [vmem:[#allocation7 + $0x1ed8] sm:$0xff]  ;;  %v10984_v28 = vld [vmem:[%s12023_s6 + $0x90] sm:$0xff]   ;;  %v10986_v29 = vld [vmem:[%s12023_s6 + $0xd8] sm:$0xff]  }
 0x2cd   :  { %7296 = vmatprep.subr.bf16.mxu1 %v10389_v17  ;;  %v1371_v17 = vld [vmem:[#allocation7 + $0x1e10] sm:$0xff]  ;;  %v10450_v31 = vcombine.low %v1355_v5, %v1363_v6  ;;  %v10452_v33 = vcombine.low %v1356_v7, %v1364_v8  ;;  %v10468_v53 = vcombine.low %v1372_v25, %v1380_v30  ;;  %v1412_v1 = vld [vmem:[#allocation7 + $0x1f58] sm:$0xff]  ;;  %v11013_v21 = vld [vmem:[%s12023_s6 + $0x150] sm:$0xff]  }
 0x2ce   :  { %v10467_v34 = vcombine.high %v1371_v17, %v1379_v23  ;;  %v10466_v43 = vcombine.low %v1371_v17, %v1379_v23  ;;  %v1428_v5 = vld [vmem:[#allocation7 + $0x1fd8] sm:$0xff]  ;;  %v422_v17 = vld [vmem:[#allocation7 + $0x68] sm:$0xff] }
 0x2cf   :  { %7125 = vmatpush1.bf16.msra.mxu0 %v10386_v37  ;;  %v10469_v37 = vcombine.high %v1372_v25, %v1380_v30  ;;  %v11014_v19 = vld [vmem:[%s12023_s6 + $0x1d0] sm:$0xff]  }
 0x2d0   :  { %7297 = vmatpush1.bf16.msra.mxu1 %v10388_v38  ;;  %7126 = vmatprep.subr.bf16.mxu0 %v10403_v39  ;;  %v1387_v38 = vld [vmem:[#allocation7 + $0x1e90] sm:$0xff]  ;;  %v11015_v22 = vld [vmem:[%s12023_s6 + $0x110] sm:$0xff]  }
 0x2d1   :  { %7298 = vmatprep.subr.bf16.mxu1 %v10405_v40  ;;  %v1395_v39 = vld [vmem:[#allocation7 + $0x1ed0] sm:$0xff]  ;;  %v1388_v40 = vld [vmem:[#allocation7 + $0x1e98] sm:$0xff] }
 0x2d2   :  { %v10483_v54 = vcombine.high %v1387_v38, %v1395_v39  ;;  %v10482_v56 = vcombine.low %v1387_v38, %v1395_v39  ;;  %v10484_v62 = vcombine.low %v1388_v40, %v1396_v42  ;;  %v430_v38 = vld [vmem:[#allocation7 + $0xa8] sm:$0xff] }
 0x2d3   :  { %7127 = vmatpush1.bf16.msra.mxu0 %v10402_v55  ;;  %v10485_v55 = vcombine.high %v1388_v40, %v1396_v42  ;;  %v438_v39 = vld [vmem:[#allocation7 + $0xe8] sm:$0xff] }
 0x2d4   :  { %7299 = vmatpush1.bf16.msra.mxu1 %v10404_v58  ;;  %7128 = vmatprep.subr.bf16.mxu0 %v10419_v59  ;;  %v1403_v58 = vld [vmem:[#allocation7 + $0x1f10] sm:$0xff] }
 0x2d5   :  { %7300 = vmatprep.subr.bf16.mxu1 %v10421_v61  ;;  %v1411_v59 = vld [vmem:[#allocation7 + $0x1f50] sm:$0xff]  ;;  %v1404_v61 = vld [vmem:[#allocation7 + $0x1f18] sm:$0xff] }
 0x2d6   :  { %v10499_v2 = vcombine.high %v1403_v58, %v1411_v59  ;;  %v10498_v6 = vcombine.low %v1403_v58, %v1411_v59  ;;  %v10500_v7 = vcombine.low %v1404_v61, %v1412_v1  ;;  %v454_v58 = vld [vmem:[#allocation7 + $0x168] sm:$0xff] }
 0x2d7   :  { %7129 = vmatpush1.bf16.msra.mxu0 %v10418_v63  ;;  %v10501_v63 = vcombine.high %v1404_v61, %v1412_v1  ;;  %v9528_v61 = vcombine.low %v430_v38, %v438_v39 }
 0x2d8   :  { %7301 = vmatpush1.bf16.msra.mxu1 %v10420_v0  ;;  %7130 = vmatprep.subr.bf16.mxu0 %v10435_v3  ;;  %v1419_v0 = vld [vmem:[#allocation7 + $0x1f90] sm:$0xff] }
 0x2d9   :  { %7302 = vmatprep.subr.bf16.mxu1 %v10437_v4  ;;  %v1427_v3 = vld [vmem:[#allocation7 + $0x1fd0] sm:$0xff]  ;;  %v1420_v4 = vld [vmem:[#allocation7 + $0x1f98] sm:$0xff] }
 0x2da   :  { %v10515_v8 = vcombine.high %v1419_v0, %v1427_v3  ;;  %v10514_v23 = vcombine.low %v1419_v0, %v1427_v3  ;;  %v10516_v25 = vcombine.low %v1420_v4, %v1428_v5  ;;  %v470_v0 = vld [vmem:[#allocation7 + $0x1e8] sm:$0xff] }
 0x2db   :  { %7131 = vmatpush1.bf16.msra.mxu0 %v10434_v11  ;;  %v10517_v11 = vcombine.high %v1420_v4, %v1428_v5 }
 0x2dc   :  { %7303 = vmatpush1.bf16.msra.mxu1 %v10436_v12  ;;  %7132 = vmatprep.subr.bf16.mxu0 %v10451_v13  ;;  %v413_v12 = vld [vmem:[#allocation7 + $0x20] sm:$0xff] }
 0x2dd   :  { %7304 = vmatprep.subr.bf16.mxu1 %v10453_v15  ;;  %v421_v13 = vld [vmem:[#allocation7 + $0x60] sm:$0xff]  ;;  %v414_v15 = vld [vmem:[#allocation7 + $0x28] sm:$0xff] }
 0x2de   :  { %v9511_v30 = vcombine.high %v413_v12, %v421_v13  ;;  %v9512_v40 = vcombine.low %v414_v15, %v422_v17 }
 0x2df   :  { %7133 = vmatpush1.bf16.msra.mxu0 %v10450_v31  ;;  %v9513_v31 = vcombine.high %v414_v15, %v422_v17 }
 0x2e0   :  { %7305 = vmatpush1.bf16.msra.mxu1 %v10452_v33  ;;  %7134 = vmatprep.subr.bf16.mxu0 %v10467_v34  ;;  %v429_v33 = vld [vmem:[#allocation7 + $0xa0] sm:$0xff] }
 0x2e1   :  { %7306 = vmatprep.subr.bf16.mxu1 %v10469_v37  ;;  %v437_v34 = vld [vmem:[#allocation7 + $0xe0] sm:$0xff]  ;;  %v9510_v37 = vcombine.low %v413_v12, %v421_v13  ;;  %v486_v12 = vld [vmem:[#allocation7 + $0x268] sm:$0xff] }
 0x2e2   :  { %v9527_v42 = vcombine.high %v429_v33, %v437_v34  ;;  %v9526_v59 = vcombine.low %v429_v33, %v437_v34  ;;  %v502_v33 = vld [vmem:[#allocation7 + $0x2e8] sm:$0xff] }
 0x2e3   :  { %7135 = vmatpush1.bf16.msra.mxu0 %v10466_v43  ;;  %v445_v43 = vld [vmem:[#allocation7 + $0x120] sm:$0xff] }
 0x2e4   :  { %7307 = vmatpush1.bf16.msra.mxu1 %v10468_v53  ;;  %7136 = vmatprep.subr.bf16.mxu0 %v10483_v54  ;;  %v453_v53 = vld [vmem:[#allocation7 + $0x160] sm:$0xff]  ;;  %v9529_v54 = vcombine.high %v430_v38, %v438_v39 }
 0x2e5   :  { %7308 = vmatprep.subr.bf16.mxu1 %v10485_v55  ;;  %v446_v55 = vld [vmem:[#allocation7 + $0x128] sm:$0xff]  ;;  %v9543_v1 = vcombine.high %v445_v43, %v453_v53  ;;  %v9542_v3 = vcombine.low %v445_v43, %v453_v53 }
 0x2e6   :  { %v9544_v4 = vcombine.low %v446_v55, %v454_v58  ;;  %v510_v43 = vld [vmem:[#allocation7 + $0x328] sm:$0xff] }
 0x2e7   :  { %7137 = vmatpush1.bf16.msra.mxu0 %v10482_v56  ;;  %v9545_v56 = vcombine.high %v446_v55, %v454_v58  ;;  %v518_v53 = vld [vmem:[#allocation7 + $0x368] sm:$0xff] }
 0x2e8   :  { %7309 = vmatpush1.bf16.msra.mxu1 %v10484_v62  ;;  %7138 = vmatprep.subr.bf16.mxu0 %v10499_v2  ;;  %v461_v62 = vld [vmem:[#allocation7 + $0x1a0] sm:$0xff] }
 0x2e9   :  { %7310 = vmatprep.subr.bf16.mxu1 %v10501_v63  ;;  %v469_v2 = vld [vmem:[#allocation7 + $0x1e0] sm:$0xff]  ;;  %v462_v63 = vld [vmem:[#allocation7 + $0x1a8] sm:$0xff] }
 0x2ea   :  { %v9559_v5 = vcombine.high %v461_v62, %v469_v2  ;;  %v9558_v13 = vcombine.low %v461_v62, %v469_v2  ;;  %v9560_v15 = vcombine.low %v462_v63, %v470_v0  ;;  %v534_v62 = vld [vmem:[#allocation7 + $0x3e8] sm:$0xff] }
 0x2eb   :  { %7139 = vmatpush1.bf16.msra.mxu0 %v10498_v6  ;;  %v9561_v6 = vcombine.high %v462_v63, %v470_v0  ;;  %v9608_v63 = vcombine.low %v510_v43, %v518_v53 }
 0x2ec   :  { %7311 = vmatpush1.bf16.msra.mxu1 %v10500_v7  ;;  %7140 = vmatprep.subr.bf16.mxu0 %v10515_v8  ;;  %v477_v7 = vld [vmem:[#allocation7 + $0x220] sm:$0xff] }
 0x2ed   :  { %7312 = vmatprep.subr.bf16.mxu1 %v10517_v11  ;;  %v485_v8 = vld [vmem:[#allocation7 + $0x260] sm:$0xff]  ;;  %v478_v11 = vld [vmem:[#allocation7 + $0x228] sm:$0xff] }
 0x2ee   :  { %v9575_v17 = vcombine.high %v477_v7, %v485_v8  ;;  %v9574_v34 = vcombine.low %v477_v7, %v485_v8  ;;  %v550_v7 = vld [vmem:[#allocation7 + $0x468] sm:$0xff] }
 0x2ef   :  { %7141 = vmatpush1.bf16.msra.mxu0 %v10514_v23  ;;  %v9577_v23 = vcombine.high %v478_v11, %v486_v12 }
 0x2f0   :  { %7313 = vmatpush1.bf16.msra.mxu1 %v10516_v25  ;;  %7325 = vmatprep.subr.bf16.mxu0 %v9511_v30  ;;  %v493_v25 = vld [vmem:[#allocation7 + $0x2a0] sm:$0xff] }
 0x2f1   :  { %7497 = vmatprep.subr.bf16.mxu1 %v9513_v31  ;;  %v501_v30 = vld [vmem:[#allocation7 + $0x2e0] sm:$0xff]  ;;  %v494_v31 = vld [vmem:[#allocation7 + $0x2a8] sm:$0xff] }
 0x2f2   :  { %7143 = vmatmul.mubr.bf16.vlgmr.msra.gmra.mrb[12].mxu0 %v11412_v52  ;;  %v9591_v38 = vcombine.high %v493_v25, %v501_v30  ;;  %v9593_v39 = vcombine.high %v494_v31, %v502_v33  ;;  %v9592_v55 = vcombine.low %v494_v31, %v502_v33 }
 0x2f3   :  { %7315 = vmatmul.mubr.bf16.vlgmr.msra.gmra.mrb[12].mxu1 %v11412_v52  ;;  %7326 = vmatpush1.bf16.msra.mxu0 %v9510_v37  ;;  %v9576_v37 = vcombine.low %v478_v11, %v486_v12 }
 0x2f4   :  { %7357 = vmatprep.mubr.bf16.mxu0 %v11384_v14  ;;  %7498 = vmatpush1.bf16.msra.mxu1 %v9512_v40  ;;  %v509_v40 = vld [vmem:[#allocation7 + $0x320] sm:$0xff] }
 0x2f5   :  { %7529 = vmatprep.mubr.bf16.mxu1 %v11384_v14  ;;  %7327 = vmatprep.subr.bf16.mxu0 %v9527_v42  ;;  %v517_v42 = vld [vmem:[#allocation7 + $0x360] sm:$0xff] }
 0x2f6   :  { %7499 = vmatprep.subr.bf16.mxu1 %v9529_v54  ;;  %v9590_v54 = vcombine.low %v493_v25, %v501_v30  ;;  %v9607_v58 = vcombine.high %v509_v40, %v517_v42  ;;  %v9606_v2 = vcombine.low %v509_v40, %v517_v42  ;;  %v566_v25 = vld [vmem:[#allocation7 + $0x4e8] sm:$0xff] }
 0x2f7   :  { %7328 = vmatpush1.bf16.msra.mxu0 %v9526_v59  ;;  %v9609_v59 = vcombine.high %v510_v43, %v518_v53  ;;  %v582_v40 = vld [vmem:[#allocation7 + $0x568] sm:$0xff] }
 0x2f8   :  { %7500 = vmatpush1.bf16.msra.mxu1 %v9528_v61  ;;  %7329 = vmatprep.subr.bf16.mxu0 %v9543_v1  ;;  %v525_v61 = vld [vmem:[#allocation7 + $0x3a0] sm:$0xff] }
 0x2f9   :  { %7501 = vmatprep.subr.bf16.mxu1 %v9545_v56  ;;  %v533_v1 = vld [vmem:[#allocation7 + $0x3e0] sm:$0xff]  ;;  %v526_v56 = vld [vmem:[#allocation7 + $0x3a8] sm:$0xff] }
 0x2fa   :  { %v9623_v0 = vcombine.high %v525_v61, %v533_v1  ;;  %v9622_v8 = vcombine.low %v525_v61, %v533_v1  ;;  %v9624_v11 = vcombine.low %v526_v56, %v534_v62  ;;  %v598_v61 = vld [vmem:[#allocation7 + $0x5e8] sm:$0xff] }
 0x2fb   :  { %7330 = vmatpush1.bf16.msra.mxu0 %v9542_v3  ;;  %v9625_v3 = vcombine.high %v526_v56, %v534_v62 }
 0x2fc   :  { %7502 = vmatpush1.bf16.msra.mxu1 %v9544_v4  ;;  %7331 = vmatprep.subr.bf16.mxu0 %v9559_v5  ;;  %v541_v4 = vld [vmem:[#allocation7 + $0x420] sm:$0xff] }
 0x2fd   :  { %7503 = vmatprep.subr.bf16.mxu1 %v9561_v6  ;;  %v549_v5 = vld [vmem:[#allocation7 + $0x460] sm:$0xff]  ;;  %v542_v6 = vld [vmem:[#allocation7 + $0x428] sm:$0xff] }
 0x2fe   :  { %v9639_v12 = vcombine.high %v541_v4, %v549_v5  ;;  %v9638_v30 = vcombine.low %v541_v4, %v549_v5  ;;  %v9640_v31 = vcombine.low %v542_v6, %v550_v7  ;;  %v614_v4 = vld [vmem:[#allocation7 + $0x668] sm:$0xff] }
 0x2ff   :  { %7332 = vmatpush1.bf16.msra.mxu0 %v9558_v13  ;;  %v9641_v13 = vcombine.high %v542_v6, %v550_v7 }
 0x300   :  { %7504 = vmatpush1.bf16.msra.mxu1 %v9560_v15  ;;  %7333 = vmatprep.subr.bf16.mxu0 %v9575_v17  ;;  %v557_v15 = vld [vmem:[#allocation7 + $0x4a0] sm:$0xff] }
 0x301   :  { %7505 = vmatprep.subr.bf16.mxu1 %v9577_v23  ;;  %v565_v17 = vld [vmem:[#allocation7 + $0x4e0] sm:$0xff]  ;;  %v558_v23 = vld [vmem:[#allocation7 + $0x4a8] sm:$0xff] }
 0x302   :  { %v9655_v33 = vcombine.high %v557_v15, %v565_v17  ;;  %v9654_v42 = vcombine.low %v557_v15, %v565_v17  ;;  %v9656_v43 = vcombine.low %v558_v23, %v566_v25  ;;  %v630_v15 = vld [vmem:[#allocation7 + $0x6e8] sm:$0xff] }
 0x303   :  { %7334 = vmatpush1.bf16.msra.mxu0 %v9574_v34  ;;  %v9657_v34 = vcombine.high %v558_v23, %v566_v25 }
 0x304   :  { %7506 = vmatpush1.bf16.msra.mxu1 %v9576_v37  ;;  %7335 = vmatprep.subr.bf16.mxu0 %v9591_v38  ;;  %v573_v37 = vld [vmem:[#allocation7 + $0x520] sm:$0xff] }
 0x305   :  { %7507 = vmatprep.subr.bf16.mxu1 %v9593_v39  ;;  %v581_v38 = vld [vmem:[#allocation7 + $0x560] sm:$0xff]  ;;  %v574_v39 = vld [vmem:[#allocation7 + $0x528] sm:$0xff] }
 0x306   :  { %v9671_v53 = vcombine.high %v573_v37, %v581_v38  ;;  %v9670_v1 = vcombine.low %v573_v37, %v581_v38  ;;  %v9672_v56 = vcombine.low %v574_v39, %v582_v40  ;;  %v646_v37 = vld [vmem:[#allocation7 + $0x768] sm:$0xff] }
 0x307   :  { %7336 = vmatpush1.bf16.msra.mxu0 %v9590_v54  ;;  %v9673_v54 = vcombine.high %v574_v39, %v582_v40 }
 0x308   :  { %7508 = vmatpush1.bf16.msra.mxu1 %v9592_v55  ;;  %7337 = vmatprep.subr.bf16.mxu0 %v9607_v58  ;;  %v589_v55 = vld [vmem:[#allocation7 + $0x5a0] sm:$0xff] }
 0x309   :  { %7509 = vmatprep.subr.bf16.mxu1 %v9609_v59  ;;  %v597_v58 = vld [vmem:[#allocation7 + $0x5e0] sm:$0xff]  ;;  %v590_v59 = vld [vmem:[#allocation7 + $0x5a8] sm:$0xff] }
 0x30a   :  { %v9687_v62 = vcombine.high %v589_v55, %v597_v58  ;;  %v9686_v5 = vcombine.low %v589_v55, %v597_v58  ;;  %v9688_v6 = vcombine.low %v590_v59, %v598_v61  ;;  %v662_v55 = vld [vmem:[#allocation7 + $0x7e8] sm:$0xff] }
 0x30b   :  { %7338 = vmatpush1.bf16.msra.mxu0 %v9606_v2  ;;  %v9689_v2 = vcombine.high %v590_v59, %v598_v61 }
 0x30c   :  { %7510 = vmatpush1.bf16.msra.mxu1 %v9608_v63  ;;  %7339 = vmatprep.subr.bf16.mxu0 %v9623_v0  ;;  %v605_v63 = vld [vmem:[#allocation7 + $0x620] sm:$0xff] }
 0x30d   :  { %7511 = vmatprep.subr.bf16.mxu1 %v9625_v3  ;;  %v613_v0 = vld [vmem:[#allocation7 + $0x660] sm:$0xff]  ;;  %v606_v3 = vld [vmem:[#allocation7 + $0x628] sm:$0xff] }
 0x30e   :  { %v9703_v7 = vcombine.high %v605_v63, %v613_v0  ;;  %v9702_v17 = vcombine.low %v605_v63, %v613_v0  ;;  %v9704_v23 = vcombine.low %v606_v3, %v614_v4  ;;  %v678_v63 = vld [vmem:[#allocation7 + $0x868] sm:$0xff] }
 0x30f   :  { %7340 = vmatpush1.bf16.msra.mxu0 %v9622_v8  ;;  %v9705_v8 = vcombine.high %v606_v3, %v614_v4 }
 0x310   :  { %7512 = vmatpush1.bf16.msra.mxu1 %v9624_v11  ;;  %7341 = vmatprep.subr.bf16.mxu0 %v9639_v12  ;;  %v621_v11 = vld [vmem:[#allocation7 + $0x6a0] sm:$0xff] }
 0x311   :  { %7513 = vmatprep.subr.bf16.mxu1 %v9641_v13  ;;  %v629_v12 = vld [vmem:[#allocation7 + $0x6e0] sm:$0xff]  ;;  %v622_v13 = vld [vmem:[#allocation7 + $0x6a8] sm:$0xff] }
 0x312   :  { %v9719_v25 = vcombine.high %v621_v11, %v629_v12  ;;  %v9718_v38 = vcombine.low %v621_v11, %v629_v12  ;;  %v9720_v39 = vcombine.low %v622_v13, %v630_v15  ;;  %v686_v11 = vld [vmem:[#allocation7 + $0x8a8] sm:$0xff] }
 0x313   :  { %7342 = vmatpush1.bf16.msra.mxu0 %v9638_v30  ;;  %v9721_v30 = vcombine.high %v622_v13, %v630_v15  ;;  %v694_v12 = vld [vmem:[#allocation7 + $0x8e8] sm:$0xff] }
 0x314   :  { %7514 = vmatpush1.bf16.msra.mxu1 %v9640_v31  ;;  %7343 = vmatprep.subr.bf16.mxu0 %v9655_v33  ;;  %v637_v31 = vld [vmem:[#allocation7 + $0x720] sm:$0xff] }
 0x315   :  { %7515 = vmatprep.subr.bf16.mxu1 %v9657_v34  ;;  %v645_v33 = vld [vmem:[#allocation7 + $0x760] sm:$0xff]  ;;  %v638_v34 = vld [vmem:[#allocation7 + $0x728] sm:$0xff] }
 0x316   :  { %v9735_v40 = vcombine.high %v637_v31, %v645_v33  ;;  %v9734_v58 = vcombine.low %v637_v31, %v645_v33  ;;  %v9736_v59 = vcombine.low %v638_v34, %v646_v37  ;;  %v710_v31 = vld [vmem:[#allocation7 + $0x968] sm:$0xff] }
 0x317   :  { %7344 = vmatpush1.bf16.msra.mxu0 %v9654_v42  ;;  %v9737_v42 = vcombine.high %v638_v34, %v646_v37  ;;  %v9784_v34 = vcombine.low %v686_v11, %v694_v12 }
 0x318   :  { %7516 = vmatpush1.bf16.msra.mxu1 %v9656_v43  ;;  %7345 = vmatprep.subr.bf16.mxu0 %v9671_v53  ;;  %v653_v43 = vld [vmem:[#allocation7 + $0x7a0] sm:$0xff] }
 0x319   :  { %7517 = vmatprep.subr.bf16.mxu1 %v9673_v54  ;;  %v661_v53 = vld [vmem:[#allocation7 + $0x7e0] sm:$0xff]  ;;  %v654_v54 = vld [vmem:[#allocation7 + $0x7a8] sm:$0xff] }
 0x31a   :  { %v9751_v61 = vcombine.high %v653_v43, %v661_v53  ;;  %v9750_v0 = vcombine.low %v653_v43, %v661_v53  ;;  %v9752_v3 = vcombine.low %v654_v54, %v662_v55  ;;  %v726_v43 = vld [vmem:[#allocation7 + $0x9e8] sm:$0xff] }
 0x31b   :  { %7346 = vmatpush1.bf16.msra.mxu0 %v9670_v1  ;;  %v9753_v1 = vcombine.high %v654_v54, %v662_v55 }
 0x31c   :  { %7518 = vmatpush1.bf16.msra.mxu1 %v9672_v56  ;;  %7347 = vmatprep.subr.bf16.mxu0 %v9687_v62  ;;  %v669_v56 = vld [vmem:[#allocation7 + $0x820] sm:$0xff] }
 0x31d   :  { %7519 = vmatprep.subr.bf16.mxu1 %v9689_v2  ;;  %v677_v62 = vld [vmem:[#allocation7 + $0x860] sm:$0xff]  ;;  %v670_v2 = vld [vmem:[#allocation7 + $0x828] sm:$0xff] }
 0x31e   :  { %v9767_v4 = vcombine.high %v669_v56, %v677_v62  ;;  %v9768_v13 = vcombine.low %v670_v2, %v678_v63 }
 0x31f   :  { %7348 = vmatpush1.bf16.msra.mxu0 %v9686_v5  ;;  %v9769_v5 = vcombine.high %v670_v2, %v678_v63 }
 0x320   :  { %7520 = vmatpush1.bf16.msra.mxu1 %v9688_v6  ;;  %7349 = vmatprep.subr.bf16.mxu0 %v9703_v7  ;;  %v685_v6 = vld [vmem:[#allocation7 + $0x8a0] sm:$0xff] }
 0x321   :  { %7521 = vmatprep.subr.bf16.mxu1 %v9705_v8  ;;  %v693_v7 = vld [vmem:[#allocation7 + $0x8e0] sm:$0xff]  ;;  %v9766_v8 = vcombine.low %v669_v56, %v677_v62  ;;  %v742_v56 = vld [vmem:[#allocation7 + $0xa68] sm:$0xff] }
 0x322   :  { %v9783_v15 = vcombine.high %v685_v6, %v693_v7  ;;  %v9782_v33 = vcombine.low %v685_v6, %v693_v7  ;;  %v758_v6 = vld [vmem:[#allocation7 + $0xae8] sm:$0xff] }
 0x323   :  { %7350 = vmatpush1.bf16.msra.mxu0 %v9702_v17  ;;  %v701_v17 = vld [vmem:[#allocation7 + $0x920] sm:$0xff] }
 0x324   :  { %7522 = vmatpush1.bf16.msra.mxu1 %v9704_v23  ;;  %7351 = vmatprep.subr.bf16.mxu0 %v9719_v25  ;;  %v709_v23 = vld [vmem:[#allocation7 + $0x960] sm:$0xff]  ;;  %v9785_v25 = vcombine.high %v686_v11, %v694_v12 }
 0x325   :  { %7523 = vmatprep.subr.bf16.mxu1 %v9721_v30  ;;  %v702_v30 = vld [vmem:[#allocation7 + $0x928] sm:$0xff]  ;;  %v9799_v37 = vcombine.high %v701_v17, %v709_v23  ;;  %v9798_v53 = vcombine.low %v701_v17, %v709_v23 }
 0x326   :  { %v9800_v54 = vcombine.low %v702_v30, %v710_v31  ;;  %v766_v17 = vld [vmem:[#allocation7 + $0xb28] sm:$0xff] }
 0x327   :  { %7352 = vmatpush1.bf16.msra.mxu0 %v9718_v38  ;;  %v9801_v38 = vcombine.high %v702_v30, %v710_v31  ;;  %v774_v23 = vld [vmem:[#allocation7 + $0xb68] sm:$0xff] }
 0x328   :  { %7524 = vmatpush1.bf16.msra.mxu1 %v9720_v39  ;;  %7353 = vmatprep.subr.bf16.mxu0 %v9735_v40  ;;  %v717_v39 = vld [vmem:[#allocation7 + $0x9a0] sm:$0xff] }
 0x329   :  { %7525 = vmatprep.subr.bf16.mxu1 %v9737_v42  ;;  %v725_v40 = vld [vmem:[#allocation7 + $0x9e0] sm:$0xff]  ;;  %v718_v42 = vld [vmem:[#allocation7 + $0x9a8] sm:$0xff] }
 0x32a   :  { %v9815_v55 = vcombine.high %v717_v39, %v725_v40  ;;  %v9814_v62 = vcombine.low %v717_v39, %v725_v40  ;;  %v9816_v2 = vcombine.low %v718_v42, %v726_v43  ;;  %v790_v39 = vld [vmem:[#allocation7 + $0xbe8] sm:$0xff] }
 0x32b   :  { %7354 = vmatpush1.bf16.msra.mxu0 %v9734_v58  ;;  %v9817_v58 = vcombine.high %v718_v42, %v726_v43  ;;  %v9864_v42 = vcombine.low %v766_v17, %v774_v23 }
 0x32c   :  { %7526 = vmatpush1.bf16.msra.mxu1 %v9736_v59  ;;  %7355 = vmatprep.subr.bf16.mxu0 %v9751_v61  ;;  %v733_v59 = vld [vmem:[#allocation7 + $0xa20] sm:$0xff] }
 0x32d   :  { %7527 = vmatprep.subr.bf16.mxu1 %v9753_v1  ;;  %v741_v61 = vld [vmem:[#allocation7 + $0xa60] sm:$0xff]  ;;  %v734_v1 = vld [vmem:[#allocation7 + $0xa28] sm:$0xff] }
 0x32e   :  { %v9831_v63 = vcombine.high %v733_v59, %v741_v61  ;;  %v9830_v7 = vcombine.low %v733_v59, %v741_v61  ;;  %v806_v59 = vld [vmem:[#allocation7 + $0xc68] sm:$0xff] }
 0x32f   :  { %7356 = vmatpush1.bf16.msra.mxu0 %v9750_v0  ;;  %v9833_v0 = vcombine.high %v734_v1, %v742_v56 }
 0x330   :  { %7528 = vmatpush1.bf16.msra.mxu1 %v9752_v3  ;;  %7368 = vmatprep.subr.bf16.mxu0 %v9767_v4  ;;  %v749_v3 = vld [vmem:[#allocation7 + $0xaa0] sm:$0xff] }
 0x331   :  { %7540 = vmatprep.subr.bf16.mxu1 %v9769_v5  ;;  %v757_v4 = vld [vmem:[#allocation7 + $0xae0] sm:$0xff]  ;;  %v750_v5 = vld [vmem:[#allocation7 + $0xaa8] sm:$0xff] }
 0x332   :  { %7358 = vmatmul.mubr.bf16.vlgmr.msra.gmra.mrb[16].mxu0 %v11380_v10  ;;  %v9847_v11 = vcombine.high %v749_v3, %v757_v4  ;;  %v9849_v12 = vcombine.high %v750_v5, %v758_v6  ;;  %v9848_v30 = vcombine.low %v750_v5, %v758_v6 }
 0x333   :  { %7530 = vmatmul.mubr.bf16.vlgmr.msra.gmra.mrb[16].mxu1 %v11380_v10  ;;  %7369 = vmatpush1.bf16.msra.mxu0 %v9766_v8  ;;  %v9832_v8 = vcombine.low %v734_v1, %v742_v56 }
 0x334   :  { %7400 = vmatprep.mubr.bf16.mxu0 %v11392_v24  ;;  %7541 = vmatpush1.bf16.msra.mxu1 %v9768_v13  ;;  %v765_v13 = vld [vmem:[#allocation7 + $0xb20] sm:$0xff] }
 0x335   :  { %7572 = vmatprep.mubr.bf16.mxu1 %v11392_v24  ;;  %7370 = vmatprep.subr.bf16.mxu0 %v9783_v15  ;;  %v773_v15 = vld [vmem:[#allocation7 + $0xb60] sm:$0xff] }
 0x336   :  { %7542 = vmatprep.subr.bf16.mxu1 %v9785_v25  ;;  %v9846_v25 = vcombine.low %v749_v3, %v757_v4  ;;  %v9863_v31 = vcombine.high %v765_v13, %v773_v15  ;;  %v9862_v40 = vcombine.low %v765_v13, %v773_v15  ;;  %v822_v3 = vld [vmem:[#allocation7 + $0xce8] sm:$0xff] }
 0x337   :  { %7371 = vmatpush1.bf16.msra.mxu0 %v9782_v33  ;;  %v9865_v33 = vcombine.high %v766_v17, %v774_v23  ;;  %v838_v13 = vld [vmem:[#allocation7 + $0xd68] sm:$0xff] }
 0x338   :  { %7543 = vmatpush1.bf16.msra.mxu1 %v9784_v34  ;;  %7372 = vmatprep.subr.bf16.mxu0 %v9799_v37  ;;  %v781_v34 = vld [vmem:[#allocation7 + $0xba0] sm:$0xff] }
 0x339   :  { %7544 = vmatprep.subr.bf16.mxu1 %v9801_v38  ;;  %v789_v37 = vld [vmem:[#allocation7 + $0xbe0] sm:$0xff]  ;;  %v782_v38 = vld [vmem:[#allocation7 + $0xba8] sm:$0xff] }
 0x33a   :  { %v9879_v43 = vcombine.high %v781_v34, %v789_v37  ;;  %v9878_v61 = vcombine.low %v781_v34, %v789_v37  ;;  %v9880_v1 = vcombine.low %v782_v38, %v790_v39  ;;  %v854_v34 = vld [vmem:[#allocation7 + $0xde8] sm:$0xff] }
 0x33b   :  { %7373 = vmatpush1.bf16.msra.mxu0 %v9798_v53  ;;  %v9881_v53 = vcombine.high %v782_v38, %v790_v39 }
 0x33c   :  { %7545 = vmatpush1.bf16.msra.mxu1 %v9800_v54  ;;  %7374 = vmatprep.subr.bf16.mxu0 %v9815_v55  ;;  %v797_v54 = vld [vmem:[#allocation7 + $0xc20] sm:$0xff] }
 0x33d   :  { %7546 = vmatprep.subr.bf16.mxu1 %v9817_v58  ;;  %v805_v55 = vld [vmem:[#allocation7 + $0xc60] sm:$0xff]  ;;  %v798_v58 = vld [vmem:[#allocation7 + $0xc28] sm:$0xff] }
 0x33e   :  { %v9895_v56 = vcombine.high %v797_v54, %v805_v55  ;;  %v9894_v4 = vcombine.low %v797_v54, %v805_v55  ;;  %v9896_v5 = vcombine.low %v798_v58, %v806_v59  ;;  %v870_v54 = vld [vmem:[#allocation7 + $0xe68] sm:$0xff] }
 0x33f   :  { %7375 = vmatpush1.bf16.msra.mxu0 %v9814_v62  ;;  %v9897_v62 = vcombine.high %v798_v58, %v806_v59 }
 0x340   :  { %7547 = vmatpush1.bf16.msra.mxu1 %v9816_v2  ;;  %7376 = vmatprep.subr.bf16.mxu0 %v9831_v63  ;;  %v813_v2 = vld [vmem:[#allocation7 + $0xca0] sm:$0xff] }
 0x341   :  { %7548 = vmatprep.subr.bf16.mxu1 %v9833_v0  ;;  %v821_v63 = vld [vmem:[#allocation7 + $0xce0] sm:$0xff]  ;;  %v814_v0 = vld [vmem:[#allocation7 + $0xca8] sm:$0xff] }
 0x342   :  { %v9911_v6 = vcombine.high %v813_v2, %v821_v63  ;;  %v9910_v15 = vcombine.low %v813_v2, %v821_v63  ;;  %v9912_v17 = vcombine.low %v814_v0, %v822_v3  ;;  %v886_v2 = vld [vmem:[#allocation7 + $0xee8] sm:$0xff] }
 0x343   :  { %7377 = vmatpush1.bf16.msra.mxu0 %v9830_v7  ;;  %v9913_v7 = vcombine.high %v814_v0, %v822_v3 }
 0x344   :  { %7549 = vmatpush1.bf16.msra.mxu1 %v9832_v8  ;;  %7378 = vmatprep.subr.bf16.mxu0 %v9847_v11  ;;  %v829_v8 = vld [vmem:[#allocation7 + $0xd20] sm:$0xff] }
 0x345   :  { %7550 = vmatprep.subr.bf16.mxu1 %v9849_v12  ;;  %v837_v11 = vld [vmem:[#allocation7 + $0xd60] sm:$0xff]  ;;  %v830_v12 = vld [vmem:[#allocation7 + $0xd28] sm:$0xff] }
 0x346   :  { %v9927_v23 = vcombine.high %v829_v8, %v837_v11  ;;  %v9926_v37 = vcombine.low %v829_v8, %v837_v11  ;;  %v9928_v38 = vcombine.low %v830_v12, %v838_v13  ;;  %v902_v8 = vld [vmem:[#allocation7 + $0xf68] sm:$0xff] }
 0x347   :  { %7379 = vmatpush1.bf16.msra.mxu0 %v9846_v25  ;;  %v9929_v25 = vcombine.high %v830_v12, %v838_v13 }
 0x348   :  { %7551 = vmatpush1.bf16.msra.mxu1 %v9848_v30  ;;  %7380 = vmatprep.subr.bf16.mxu0 %v9863_v31  ;;  %v845_v30 = vld [vmem:[#allocation7 + $0xda0] sm:$0xff] }
 0x349   :  { %7552 = vmatprep.subr.bf16.mxu1 %v9865_v33  ;;  %v853_v31 = vld [vmem:[#allocation7 + $0xde0] sm:$0xff]  ;;  %v846_v33 = vld [vmem:[#allocation7 + $0xda8] sm:$0xff] }
 0x34a   :  { %v9943_v39 = vcombine.high %v845_v30, %v853_v31  ;;  %v9942_v55 = vcombine.low %v845_v30, %v853_v31  ;;  %v9944_v58 = vcombine.low %v846_v33, %v854_v34  ;;  %v918_v30 = vld [vmem:[#allocation7 + $0xfe8] sm:$0xff] }
 0x34b   :  { %7381 = vmatpush1.bf16.msra.mxu0 %v9862_v40  ;;  %v9945_v40 = vcombine.high %v846_v33, %v854_v34 }
 0x34c   :  { %7553 = vmatpush1.bf16.msra.mxu1 %v9864_v42  ;;  %7382 = vmatprep.subr.bf16.mxu0 %v9879_v43  ;;  %v861_v42 = vld [vmem:[#allocation7 + $0xe20] sm:$0xff] }
 0x34d   :  { %7554 = vmatprep.subr.bf16.mxu1 %v9881_v53  ;;  %v869_v43 = vld [vmem:[#allocation7 + $0xe60] sm:$0xff]  ;;  %v862_v53 = vld [vmem:[#allocation7 + $0xe28] sm:$0xff] }
 0x34e   :  { %v9959_v59 = vcombine.high %v861_v42, %v869_v43  ;;  %v9958_v63 = vcombine.low %v861_v42, %v869_v43  ;;  %v9960_v0 = vcombine.low %v862_v53, %v870_v54  ;;  %v934_v42 = vld [vmem:[#allocation7 + $0x1068] sm:$0xff] }
 0x34f   :  { %7383 = vmatpush1.bf16.msra.mxu0 %v9878_v61  ;;  %v9961_v61 = vcombine.high %v862_v53, %v870_v54 }
 0x350   :  { %7555 = vmatpush1.bf16.msra.mxu1 %v9880_v1  ;;  %7384 = vmatprep.subr.bf16.mxu0 %v9895_v56  ;;  %v877_v1 = vld [vmem:[#allocation7 + $0xea0] sm:$0xff] }
 0x351   :  { %7556 = vmatprep.subr.bf16.mxu1 %v9897_v62  ;;  %v885_v56 = vld [vmem:[#allocation7 + $0xee0] sm:$0xff]  ;;  %v878_v62 = vld [vmem:[#allocation7 + $0xea8] sm:$0xff] }
 0x352   :  { %v9975_v3 = vcombine.high %v877_v1, %v885_v56  ;;  %v9974_v11 = vcombine.low %v877_v1, %v885_v56  ;;  %v9976_v12 = vcombine.low %v878_v62, %v886_v2  ;;  %v942_v1 = vld [vmem:[#allocation7 + $0x10a8] sm:$0xff] }
 0x353   :  { %7385 = vmatpush1.bf16.msra.mxu0 %v9894_v4  ;;  %v9977_v4 = vcombine.high %v878_v62, %v886_v2  ;;  %v950_v56 = vld [vmem:[#allocation7 + $0x10e8] sm:$0xff] }
 0x354   :  { %7557 = vmatpush1.bf16.msra.mxu1 %v9896_v5  ;;  %7386 = vmatprep.subr.bf16.mxu0 %v9911_v6  ;;  %v893_v5 = vld [vmem:[#allocation7 + $0xf20] sm:$0xff] }
 0x355   :  { %7558 = vmatprep.subr.bf16.mxu1 %v9913_v7  ;;  %v901_v6 = vld [vmem:[#allocation7 + $0xf60] sm:$0xff]  ;;  %v894_v7 = vld [vmem:[#allocation7 + $0xf28] sm:$0xff] }
 0x356   :  { %v9991_v13 = vcombine.high %v893_v5, %v901_v6  ;;  %v9990_v31 = vcombine.low %v893_v5, %v901_v6  ;;  %v9992_v33 = vcombine.low %v894_v7, %v902_v8  ;;  %v966_v5 = vld [vmem:[#allocation7 + $0x1168] sm:$0xff] }
 0x357   :  { %7387 = vmatpush1.bf16.msra.mxu0 %v9910_v15  ;;  %v9993_v15 = vcombine.high %v894_v7, %v902_v8  ;;  %v10040_v7 = vcombine.low %v942_v1, %v950_v56 }
 0x358   :  { %7559 = vmatpush1.bf16.msra.mxu1 %v9912_v17  ;;  %7388 = vmatprep.subr.bf16.mxu0 %v9927_v23  ;;  %v909_v17 = vld [vmem:[#allocation7 + $0xfa0] sm:$0xff] }
 0x359   :  { %7560 = vmatprep.subr.bf16.mxu1 %v9929_v25  ;;  %v917_v23 = vld [vmem:[#allocation7 + $0xfe0] sm:$0xff]  ;;  %v910_v25 = vld [vmem:[#allocation7 + $0xfa8] sm:$0xff] }
 0x35a   :  { %v10007_v34 = vcombine.high %v909_v17, %v917_v23  ;;  %v10006_v43 = vcombine.low %v909_v17, %v917_v23  ;;  %v10008_v53 = vcombine.low %v910_v25, %v918_v30  ;;  %v982_v17 = vld [vmem:[#allocation7 + $0x11e8] sm:$0xff] }
 0x35b   :  { %7389 = vmatpush1.bf16.msra.mxu0 %v9926_v37  ;;  %v10009_v37 = vcombine.high %v910_v25, %v918_v30 }
 0x35c   :  { %7561 = vmatpush1.bf16.msra.mxu1 %v9928_v38  ;;  %7390 = vmatprep.subr.bf16.mxu0 %v9943_v39  ;;  %v925_v38 = vld [vmem:[#allocation7 + $0x1020] sm:$0xff] }
 0x35d   :  { %7562 = vmatprep.subr.bf16.mxu1 %v9945_v40  ;;  %v933_v39 = vld [vmem:[#allocation7 + $0x1060] sm:$0xff]  ;;  %v926_v40 = vld [vmem:[#allocation7 + $0x1028] sm:$0xff] }
 0x35e   :  { %v10023_v54 = vcombine.high %v925_v38, %v933_v39  ;;  %v10024_v62 = vcombine.low %v926_v40, %v934_v42 }
 0x35f   :  { %7391 = vmatpush1.bf16.msra.mxu0 %v9942_v55  ;;  %v10025_v55 = vcombine.high %v926_v40, %v934_v42 }
 0x360   :  { %7563 = vmatpush1.bf16.msra.mxu1 %v9944_v58  ;;  %7392 = vmatprep.subr.bf16.mxu0 %v9959_v59  ;;  %v941_v58 = vld [vmem:[#allocation7 + $0x10a0] sm:$0xff] }
 0x361   :  { %7564 = vmatprep.subr.bf16.mxu1 %v9961_v61  ;;  %v949_v59 = vld [vmem:[#allocation7 + $0x10e0] sm:$0xff]  ;;  %v10022_v61 = vcombine.low %v925_v38, %v933_v39  ;;  %v998_v38 = vld [vmem:[#allocation7 + $0x1268] sm:$0xff] }
 0x362   :  { %v10039_v2 = vcombine.high %v941_v58, %v949_v59  ;;  %v10038_v6 = vcombine.low %v941_v58, %v949_v59  ;;  %v1014_v58 = vld [vmem:[#allocation7 + $0x12e8] sm:$0xff] }
 0x363   :  { %7393 = vmatpush1.bf16.msra.mxu0 %v9958_v63  ;;  %v957_v63 = vld [vmem:[#allocation7 + $0x1120] sm:$0xff] }
 0x364   :  { %7565 = vmatpush1.bf16.msra.mxu1 %v9960_v0  ;;  %7394 = vmatprep.subr.bf16.mxu0 %v9975_v3  ;;  %v965_v0 = vld [vmem:[#allocation7 + $0x1160] sm:$0xff]  ;;  %v10041_v3 = vcombine.high %v942_v1, %v950_v56 }
 0x365   :  { %7566 = vmatprep.subr.bf16.mxu1 %v9977_v4  ;;  %v958_v4 = vld [vmem:[#allocation7 + $0x1128] sm:$0xff]  ;;  %v10055_v8 = vcombine.high %v957_v63, %v965_v0  ;;  %v10054_v23 = vcombine.low %v957_v63, %v965_v0 }
 0x366   :  { %v10056_v25 = vcombine.low %v958_v4, %v966_v5  ;;  %v1022_v63 = vld [vmem:[#allocation7 + $0x1328] sm:$0xff] }
 0x367   :  { %7395 = vmatpush1.bf16.msra.mxu0 %v9974_v11  ;;  %v10057_v11 = vcombine.high %v958_v4, %v966_v5  ;;  %v1030_v0 = vld [vmem:[#allocation7 + $0x1368] sm:$0xff] }
 0x368   :  { %7567 = vmatpush1.bf16.msra.mxu1 %v9976_v12  ;;  %7396 = vmatprep.subr.bf16.mxu0 %v9991_v13  ;;  %v973_v12 = vld [vmem:[#allocation7 + $0x11a0] sm:$0xff] }
 0x369   :  { %7568 = vmatprep.subr.bf16.mxu1 %v9993_v15  ;;  %v981_v13 = vld [vmem:[#allocation7 + $0x11e0] sm:$0xff]  ;;  %v974_v15 = vld [vmem:[#allocation7 + $0x11a8] sm:$0xff] }
 0x36a   :  { %v10071_v30 = vcombine.high %v973_v12, %v981_v13  ;;  %v10070_v39 = vcombine.low %v973_v12, %v981_v13  ;;  %v10072_v40 = vcombine.low %v974_v15, %v982_v17  ;;  %v1046_v12 = vld [vmem:[#allocation7 + $0x13e8] sm:$0xff] }
 0x36b   :  { %7397 = vmatpush1.bf16.msra.mxu0 %v9990_v31  ;;  %v10073_v31 = vcombine.high %v974_v15, %v982_v17  ;;  %v10120_v15 = vcombine.low %v1022_v63, %v1030_v0 }
 0x36c   :  { %7569 = vmatpush1.bf16.msra.mxu1 %v9992_v33  ;;  %7398 = vmatprep.subr.bf16.mxu0 %v10007_v34  ;;  %v989_v33 = vld [vmem:[#allocation7 + $0x1220] sm:$0xff] }
 0x36d   :  { %7570 = vmatprep.subr.bf16.mxu1 %v10009_v37  ;;  %v997_v34 = vld [vmem:[#allocation7 + $0x1260] sm:$0xff]  ;;  %v990_v37 = vld [vmem:[#allocation7 + $0x1228] sm:$0xff] }
 0x36e   :  { %v10087_v42 = vcombine.high %v989_v33, %v997_v34  ;;  %v10086_v59 = vcombine.low %v989_v33, %v997_v34  ;;  %v1062_v33 = vld [vmem:[#allocation7 + $0x1468] sm:$0xff] }
 0x36f   :  { %7399 = vmatpush1.bf16.msra.mxu0 %v10006_v43  ;;  %v10089_v43 = vcombine.high %v990_v37, %v998_v38 }
 0x370   :  { %7571 = vmatpush1.bf16.msra.mxu1 %v10008_v53  ;;  %7411 = vmatprep.subr.bf16.mxu0 %v10023_v54  ;;  %v1005_v53 = vld [vmem:[#allocation7 + $0x12a0] sm:$0xff] }
 0x371   :  { %7583 = vmatprep.subr.bf16.mxu1 %v10025_v55  ;;  %v1013_v54 = vld [vmem:[#allocation7 + $0x12e0] sm:$0xff]  ;;  %v1006_v55 = vld [vmem:[#allocation7 + $0x12a8] sm:$0xff] }
 0x372   :  { %7401 = vmatmul.mubr.bf16.vlgmr.msra.gmra.mrb[16].mxu0 %v11388_v20  ;;  %v10103_v1 = vcombine.high %v1005_v53, %v1013_v54  ;;  %v10105_v56 = vcombine.high %v1006_v55, %v1014_v58  ;;  %v10104_v4 = vcombine.low %v1006_v55, %v1014_v58 }
 0x373   :  { %7573 = vmatmul.mubr.bf16.vlgmr.msra.gmra.mrb[16].mxu1 %v11388_v20  ;;  %7412 = vmatpush1.bf16.msra.mxu0 %v10022_v61  ;;  %v10088_v61 = vcombine.low %v990_v37, %v998_v38 }
 0x374   :  { %7443 = vmatprep.mubr.bf16.mxu0 %v11400_v51  ;;  %7584 = vmatpush1.bf16.msra.mxu1 %v10024_v62  ;;  %v1021_v62 = vld [vmem:[#allocation7 + $0x1320] sm:$0xff] }
 0x375   :  { %7615 = vmatprep.mubr.bf16.mxu1 %v11400_v51  ;;  %7413 = vmatprep.subr.bf16.mxu0 %v10039_v2  ;;  %v1029_v2 = vld [vmem:[#allocation7 + $0x1360] sm:$0xff] }
 0x376   :  { %7585 = vmatprep.subr.bf16.mxu1 %v10041_v3  ;;  %v10102_v3 = vcombine.low %v1005_v53, %v1013_v54  ;;  %v10119_v5 = vcombine.high %v1021_v62, %v1029_v2  ;;  %v10118_v13 = vcombine.low %v1021_v62, %v1029_v2  ;;  %v1078_v53 = vld [vmem:[#allocation7 + $0x14e8] sm:$0xff] }
 0x377   :  { %7414 = vmatpush1.bf16.msra.mxu0 %v10038_v6  ;;  %v10121_v6 = vcombine.high %v1022_v63, %v1030_v0  ;;  %v1094_v62 = vld [vmem:[#allocation7 + $0x1568] sm:$0xff] }
 0x378   :  { %7586 = vmatpush1.bf16.msra.mxu1 %v10040_v7  ;;  %7415 = vmatprep.subr.bf16.mxu0 %v10055_v8  ;;  %v1037_v7 = vld [vmem:[#allocation7 + $0x13a0] sm:$0xff] }
 0x379   :  { %7587 = vmatprep.subr.bf16.mxu1 %v10057_v11  ;;  %v1045_v8 = vld [vmem:[#allocation7 + $0x13e0] sm:$0xff]  ;;  %v1038_v11 = vld [vmem:[#allocation7 + $0x13a8] sm:$0xff] }
 0x37a   :  { %v10135_v17 = vcombine.high %v1037_v7, %v1045_v8  ;;  %v10134_v34 = vcombine.low %v1037_v7, %v1045_v8  ;;  %v10136_v37 = vcombine.low %v1038_v11, %v1046_v12  ;;  %v1110_v7 = vld [vmem:[#allocation7 + $0x15e8] sm:$0xff] }
 0x37b   :  { %7416 = vmatpush1.bf16.msra.mxu0 %v10054_v23  ;;  %v10137_v23 = vcombine.high %v1038_v11, %v1046_v12 }
 0x37c   :  { %7588 = vmatpush1.bf16.msra.mxu1 %v10056_v25  ;;  %7417 = vmatprep.subr.bf16.mxu0 %v10071_v30  ;;  %v1053_v25 = vld [vmem:[#allocation7 + $0x1420] sm:$0xff] }
 0x37d   :  { %7589 = vmatprep.subr.bf16.mxu1 %v10073_v31  ;;  %v1061_v30 = vld [vmem:[#allocation7 + $0x1460] sm:$0xff]  ;;  %v1054_v31 = vld [vmem:[#allocation7 + $0x1428] sm:$0xff] }
 0x37e   :  { %v10151_v38 = vcombine.high %v1053_v25, %v1061_v30  ;;  %v10150_v54 = vcombine.low %v1053_v25, %v1061_v30  ;;  %v10152_v55 = vcombine.low %v1054_v31, %v1062_v33  ;;  %v1126_v25 = vld [vmem:[#allocation7 + $0x1668] sm:$0xff] }
 0x37f   :  { %7418 = vmatpush1.bf16.msra.mxu0 %v10070_v39  ;;  %v10153_v39 = vcombine.high %v1054_v31, %v1062_v33 }
 0x380   :  { %7590 = vmatpush1.bf16.msra.mxu1 %v10072_v40  ;;  %7419 = vmatprep.subr.bf16.mxu0 %v10087_v42  ;;  %v1069_v40 = vld [vmem:[#allocation7 + $0x14a0] sm:$0xff] }
 0x381   :  { %7591 = vmatprep.subr.bf16.mxu1 %v10089_v43  ;;  %v1077_v42 = vld [vmem:[#allocation7 + $0x14e0] sm:$0xff]  ;;  %v1070_v43 = vld [vmem:[#allocation7 + $0x14a8] sm:$0xff] }
 0x382   :  { %v10167_v58 = vcombine.high %v1069_v40, %v1077_v42  ;;  %v10166_v2 = vcombine.low %v1069_v40, %v1077_v42  ;;  %v10168_v63 = vcombine.low %v1070_v43, %v1078_v53  ;;  %v1142_v40 = vld [vmem:[#allocation7 + $0x16e8] sm:$0xff] }
 0x383   :  { %7420 = vmatpush1.bf16.msra.mxu0 %v10086_v59  ;;  %v10169_v59 = vcombine.high %v1070_v43, %v1078_v53 }
 0x384   :  { %7592 = vmatpush1.bf16.msra.mxu1 %v10088_v61  ;;  %7421 = vmatprep.subr.bf16.mxu0 %v10103_v1  ;;  %v1085_v61 = vld [vmem:[#allocation7 + $0x1520] sm:$0xff] }
 0x385   :  { %7593 = vmatprep.subr.bf16.mxu1 %v10105_v56  ;;  %v1093_v1 = vld [vmem:[#allocation7 + $0x1560] sm:$0xff]  ;;  %v1086_v56 = vld [vmem:[#allocation7 + $0x1528] sm:$0xff] }
 0x386   :  { %v10183_v0 = vcombine.high %v1085_v61, %v1093_v1  ;;  %v10182_v8 = vcombine.low %v1085_v61, %v1093_v1  ;;  %v10184_v11 = vcombine.low %v1086_v56, %v1094_v62  ;;  %v1158_v61 = vld [vmem:[#allocation7 + $0x1768] sm:$0xff] }
 0x387   :  { %7422 = vmatpush1.bf16.msra.mxu0 %v10102_v3  ;;  %v10185_v3 = vcombine.high %v1086_v56, %v1094_v62 }
 0x388   :  { %7594 = vmatpush1.bf16.msra.mxu1 %v10104_v4  ;;  %7423 = vmatprep.subr.bf16.mxu0 %v10119_v5  ;;  %v1101_v4 = vld [vmem:[#allocation7 + $0x15a0] sm:$0xff] }
 0x389   :  { %7595 = vmatprep.subr.bf16.mxu1 %v10121_v6  ;;  %v1109_v5 = vld [vmem:[#allocation7 + $0x15e0] sm:$0xff]  ;;  %v1102_v6 = vld [vmem:[#allocation7 + $0x15a8] sm:$0xff] }
 0x38a   :  { %v10199_v12 = vcombine.high %v1101_v4, %v1109_v5  ;;  %v10198_v30 = vcombine.low %v1101_v4, %v1109_v5  ;;  %v10200_v31 = vcombine.low %v1102_v6, %v1110_v7  ;;  %v1174_v4 = vld [vmem:[#allocation7 + $0x17e8] sm:$0xff] }
 0x38b   :  { %7424 = vmatpush1.bf16.msra.mxu0 %v10118_v13  ;;  %v10201_v13 = vcombine.high %v1102_v6, %v1110_v7 }
 0x38c   :  { %7596 = vmatpush1.bf16.msra.mxu1 %v10120_v15  ;;  %7425 = vmatprep.subr.bf16.mxu0 %v10135_v17  ;;  %v1117_v15 = vld [vmem:[#allocation7 + $0x1620] sm:$0xff] }
 0x38d   :  { %7597 = vmatprep.subr.bf16.mxu1 %v10137_v23  ;;  %v1125_v17 = vld [vmem:[#allocation7 + $0x1660] sm:$0xff]  ;;  %v1118_v23 = vld [vmem:[#allocation7 + $0x1628] sm:$0xff] }
 0x38e   :  { %v10215_v33 = vcombine.high %v1117_v15, %v1125_v17  ;;  %v10214_v42 = vcombine.low %v1117_v15, %v1125_v17  ;;  %v10216_v43 = vcombine.low %v1118_v23, %v1126_v25  ;;  %v1190_v15 = vld [vmem:[#allocation7 + $0x1868] sm:$0xff] }
 0x38f   :  { %7426 = vmatpush1.bf16.msra.mxu0 %v10134_v34  ;;  %v10217_v34 = vcombine.high %v1118_v23, %v1126_v25 }
 0x390   :  { %7598 = vmatpush1.bf16.msra.mxu1 %v10136_v37  ;;  %7427 = vmatprep.subr.bf16.mxu0 %v10151_v38  ;;  %v1133_v37 = vld [vmem:[#allocation7 + $0x16a0] sm:$0xff] }
 0x391   :  { %7599 = vmatprep.subr.bf16.mxu1 %v10153_v39  ;;  %v1141_v38 = vld [vmem:[#allocation7 + $0x16e0] sm:$0xff]  ;;  %v1134_v39 = vld [vmem:[#allocation7 + $0x16a8] sm:$0xff] }
 0x392   :  { %v10231_v53 = vcombine.high %v1133_v37, %v1141_v38  ;;  %v10230_v1 = vcombine.low %v1133_v37, %v1141_v38  ;;  %v10232_v56 = vcombine.low %v1134_v39, %v1142_v40  ;;  %v1198_v37 = vld [vmem:[#allocation7 + $0x18a8] sm:$0xff] }
 0x393   :  { %7428 = vmatpush1.bf16.msra.mxu0 %v10150_v54  ;;  %v10233_v54 = vcombine.high %v1134_v39, %v1142_v40  ;;  %v1206_v38 = vld [vmem:[#allocation7 + $0x18e8] sm:$0xff] }
 0x394   :  { %7600 = vmatpush1.bf16.msra.mxu1 %v10152_v55  ;;  %7429 = vmatprep.subr.bf16.mxu0 %v10167_v58  ;;  %v1149_v55 = vld [vmem:[#allocation7 + $0x1720] sm:$0xff] }
 0x395   :  { %7601 = vmatprep.subr.bf16.mxu1 %v10169_v59  ;;  %v1157_v58 = vld [vmem:[#allocation7 + $0x1760] sm:$0xff]  ;;  %v1150_v59 = vld [vmem:[#allocation7 + $0x1728] sm:$0xff] }
 0x396   :  { %v10247_v62 = vcombine.high %v1149_v55, %v1157_v58  ;;  %v10246_v5 = vcombine.low %v1149_v55, %v1157_v58  ;;  %v10248_v6 = vcombine.low %v1150_v59, %v1158_v61  ;;  %v1222_v55 = vld [vmem:[#allocation7 + $0x1968] sm:$0xff] }
 0x397   :  { %7430 = vmatpush1.bf16.msra.mxu0 %v10166_v2  ;;  %v10249_v2 = vcombine.high %v1150_v59, %v1158_v61  ;;  %v10296_v59 = vcombine.low %v1198_v37, %v1206_v38 }
 0x398   :  { %7602 = vmatpush1.bf16.msra.mxu1 %v10168_v63  ;;  %7431 = vmatprep.subr.bf16.mxu0 %v10183_v0  ;;  %v1165_v63 = vld [vmem:[#allocation7 + $0x17a0] sm:$0xff] }
 0x399   :  { %7603 = vmatprep.subr.bf16.mxu1 %v10185_v3  ;;  %v1173_v0 = vld [vmem:[#allocation7 + $0x17e0] sm:$0xff]  ;;  %v1166_v3 = vld [vmem:[#allocation7 + $0x17a8] sm:$0xff] }
 0x39a   :  { %v10263_v7 = vcombine.high %v1165_v63, %v1173_v0  ;;  %v10262_v17 = vcombine.low %v1165_v63, %v1173_v0  ;;  %v10264_v23 = vcombine.low %v1166_v3, %v1174_v4  ;;  %v1238_v63 = vld [vmem:[#allocation7 + $0x19e8] sm:$0xff] }
 0x39b   :  { %7432 = vmatpush1.bf16.msra.mxu0 %v10182_v8  ;;  %v10265_v8 = vcombine.high %v1166_v3, %v1174_v4 }
 0x39c   :  { %7604 = vmatpush1.bf16.msra.mxu1 %v10184_v11  ;;  %7433 = vmatprep.subr.bf16.mxu0 %v10199_v12  ;;  %v1181_v11 = vld [vmem:[#allocation7 + $0x1820] sm:$0xff] }
 0x39d   :  { %7605 = vmatprep.subr.bf16.mxu1 %v10201_v13  ;;  %v1189_v12 = vld [vmem:[#allocation7 + $0x1860] sm:$0xff]  ;;  %v1182_v13 = vld [vmem:[#allocation7 + $0x1828] sm:$0xff] }
 0x39e   :  { %v10279_v25 = vcombine.high %v1181_v11, %v1189_v12  ;;  %v10280_v39 = vcombine.low %v1182_v13, %v1190_v15 }
 0x39f   :  { %7434 = vmatpush1.bf16.msra.mxu0 %v10198_v30  ;;  %v10281_v30 = vcombine.high %v1182_v13, %v1190_v15 }
 0x3a0   :  { %7606 = vmatpush1.bf16.msra.mxu1 %v10200_v31  ;;  %7435 = vmatprep.subr.bf16.mxu0 %v10215_v33  ;;  %v1197_v31 = vld [vmem:[#allocation7 + $0x18a0] sm:$0xff] }
 0x3a1   :  { %7607 = vmatprep.subr.bf16.mxu1 %v10217_v34  ;;  %v1205_v33 = vld [vmem:[#allocation7 + $0x18e0] sm:$0xff]  ;;  %v10278_v34 = vcombine.low %v1181_v11, %v1189_v12  ;;  %v1254_v11 = vld [vmem:[#allocation7 + $0x1a68] sm:$0xff] }
 0x3a2   :  { %v10295_v40 = vcombine.high %v1197_v31, %v1205_v33  ;;  %v10294_v58 = vcombine.low %v1197_v31, %v1205_v33  ;;  %v1270_v31 = vld [vmem:[#allocation7 + $0x1ae8] sm:$0xff] }
 0x3a3   :  { %7436 = vmatpush1.bf16.msra.mxu0 %v10214_v42  ;;  %v1213_v42 = vld [vmem:[#allocation7 + $0x1920] sm:$0xff] }
 0x3a4   :  { %7608 = vmatpush1.bf16.msra.mxu1 %v10216_v43  ;;  %7437 = vmatprep.subr.bf16.mxu0 %v10231_v53  ;;  %v1221_v43 = vld [vmem:[#allocation7 + $0x1960] sm:$0xff]  ;;  %v10297_v53 = vcombine.high %v1198_v37, %v1206_v38 }
 0x3a5   :  { %7609 = vmatprep.subr.bf16.mxu1 %v10233_v54  ;;  %v1214_v54 = vld [vmem:[#allocation7 + $0x1928] sm:$0xff]  ;;  %v10311_v61 = vcombine.high %v1213_v42, %v1221_v43  ;;  %v10310_v0 = vcombine.low %v1213_v42, %v1221_v43 }
 0x3a6   :  { %v10312_v3 = vcombine.low %v1214_v54, %v1222_v55  ;;  %v1278_v42 = vld [vmem:[#allocation7 + $0x1b28] sm:$0xff] }
 0x3a7   :  { %7438 = vmatpush1.bf16.msra.mxu0 %v10230_v1  ;;  %v10313_v1 = vcombine.high %v1214_v54, %v1222_v55  ;;  %v1286_v43 = vld [vmem:[#allocation7 + $0x1b68] sm:$0xff]  ;;  %v11113_v54 = vld [vmem:[#allocation8] sm:$0xff] }
 0x3a8   :  { %7610 = vmatpush1.bf16.msra.mxu1 %v10232_v56  ;;  %7439 = vmatprep.subr.bf16.mxu0 %v10247_v62  ;;  %v1229_v56 = vld [vmem:[#allocation7 + $0x19a0] sm:$0xff]  ;;  %v1456_v55 = vrot.slane %v11113_v54, %v11375_v57 }
 0x3a9   :  { %7611 = vmatprep.subr.bf16.mxu1 %v10249_v2  ;;  %v1237_v62 = vld [vmem:[#allocation7 + $0x19e0] sm:$0xff]  ;;  %v1230_v2 = vld [vmem:[#allocation7 + $0x19a8] sm:$0xff] }
 0x3aa   :  { %v10327_v4 = vcombine.high %v1229_v56, %v1237_v62  ;;  %v10326_v12 = vcombine.low %v1229_v56, %v1237_v62  ;;  %v10328_v13 = vcombine.low %v1230_v2, %v1238_v63  ;;  %v1464_v62 = vrot.slane %v11113_v54, %v11403_v16 }
 0x3ab   :  { %7440 = vmatpush1.bf16.msra.mxu0 %v10246_v5  ;;  %v10329_v5 = vcombine.high %v1230_v2, %v1238_v63  ;;  %v1460_v2 = vrot.slane %v11113_v54, %v11378_v60  ;;  %v10377_v63 = vcombine.high %v1278_v42, %v1286_v43 }
 0x3ac   :  { %7612 = vmatpush1.bf16.msra.mxu1 %v10248_v6  ;;  %7441 = vmatprep.subr.bf16.mxu0 %v10263_v7  ;;  %v1245_v6 = vld [vmem:[#allocation7 + $0x1a20] sm:$0xff] }
 0x3ad   :  { %7613 = vmatprep.subr.bf16.mxu1 %v10265_v8  ;;  %v1253_v7 = vld [vmem:[#allocation7 + $0x1a60] sm:$0xff]  ;;  %v1246_v8 = vld [vmem:[#allocation7 + $0x1a28] sm:$0xff] }
 0x3ae   :  { %v10343_v15 = vcombine.high %v1245_v6, %v1253_v7  ;;  %v10342_v33 = vcombine.low %v1245_v6, %v1253_v7  ;;  %v1468_v6 = vrot.slane %v11113_v54, %v11406_v18  ;;  %v1310_v54 = vld [vmem:[#allocation7 + $0x1c28] sm:$0xff] }
 0x3af   :  { %7442 = vmatpush1.bf16.msra.mxu0 %v10262_v17  ;;  %v10345_v17 = vcombine.high %v1246_v8, %v1254_v11 }
 0x3b0   :  { %7614 = vmatpush1.bf16.msra.mxu1 %v10264_v23  ;;  %7454 = vmatprep.subr.bf16.mxu0 %v10279_v25  ;;  %v1261_v23 = vld [vmem:[#allocation7 + $0x1aa0] sm:$0xff] }
 0x3b1   :  { %7626 = vmatprep.subr.bf16.mxu1 %v10281_v30  ;;  %v1269_v25 = vld [vmem:[#allocation7 + $0x1ae0] sm:$0xff]  ;;  %v1262_v30 = vld [vmem:[#allocation7 + $0x1aa8] sm:$0xff] }
 0x3b2   :  { %7444 = vmatmul.mubr.bf16.vlgmr.msra.gmra.mrb[16].mxu0 %v11398_v41  ;;  %v10359_v37 = vcombine.high %v1261_v23, %v1269_v25  ;;  %v10361_v38 = vcombine.high %v1262_v30, %v1270_v31 }
 0x3b3   :  { %7616 = vmatmul.mubr.bf16.vlgmr.msra.gmra.mrb[16].mxu1 %v11398_v41  ;;  %7455 = vmatpush1.bf16.msra.mxu0 %v10278_v34  ;;  %v10344_v34 = vcombine.low %v1246_v8, %v1254_v11 }
 0x3b4   :  { %7486 = vmatprep.mubr.bf16.mxu0 %v11414_v48  ;;  %7627 = vmatpush1.bf16.msra.mxu1 %v10280_v39  ;;  %v1277_v39 = vld [vmem:[#allocation7 + $0x1b20] sm:$0xff] }
 0x3b5   :  { %7658 = vmatprep.mubr.bf16.mxu1 %v11414_v48  ;;  %7456 = vmatprep.subr.bf16.mxu0 %v10295_v40  ;;  %v1285_v40 = vld [vmem:[#allocation7 + $0x1b60] sm:$0xff] }
 0x3b6   :  { %7628 = vmatprep.subr.bf16.mxu1 %v10297_v53  ;;  %v10358_v53 = vcombine.low %v1261_v23, %v1269_v25  ;;  %v10374_v11 = vcombine.low %v1277_v39, %v1285_v40 }
 0x3b7   :  { %7457 = vmatpush1.bf16.msra.mxu0 %v10294_v58  ;;  %v10360_v58 = vcombine.low %v1262_v30, %v1270_v31 }
 0x3b8   :  { %7629 = vmatpush1.bf16.msra.mxu1 %v10296_v59  ;;  %7458 = vmatprep.subr.bf16.mxu0 %v10311_v61  ;;  %v10375_v59 = vcombine.high %v1277_v39, %v1285_v40  ;;  %v1293_v61 = vld [vmem:[#allocation7 + $0x1ba0] sm:$0xff] }
 0x3b9   :  { %7630 = vmatprep.subr.bf16.mxu1 %v10313_v1  ;;  %v1301_v1 = vld [vmem:[#allocation7 + $0x1be0] sm:$0xff] }
 0x3ba   :  { %v1309_v39 = vld [vmem:[#allocation7 + $0x1c20] sm:$0xff] }
 0x3bb   :  { %7459 = vmatpush1.bf16.msra.mxu0 %v10310_v0  ;;  %v1294_v0 = vld [vmem:[#allocation7 + $0x1ba8] sm:$0xff]  ;;  %v1317_v40 = vld [vmem:[#allocation7 + $0x1c60] sm:$0xff] }
 0x3bc   :  { %7631 = vmatpush1.bf16.msra.mxu1 %v10312_v3  ;;  %7460 = vmatprep.subr.bf16.mxu0 %v10327_v4  ;;  %v1302_v3 = vld [vmem:[#allocation7 + $0x1be8] sm:$0xff] }
 0x3bd   :  { %7632 = vmatprep.subr.bf16.mxu1 %v10329_v5  ;;  %v10393_v30 = vcombine.high %v1294_v0, %v1302_v3 }
 0x3bf   :  { %7461 = vmatpush1.bf16.msra.mxu0 %v10326_v12  ;;  %v10376_v12 = vcombine.low %v1278_v42, %v1286_v43 }
 0x3c0   :  { %7633 = vmatpush1.bf16.msra.mxu1 %v10328_v13  ;;  %7462 = vmatprep.subr.bf16.mxu0 %v10343_v15  ;;  %v10391_v13 = vcombine.high %v1293_v61, %v1301_v1 }
 0x3c1   :  { %7634 = vmatprep.subr.bf16.mxu1 %v10345_v17 }
 0x3c3   :  { %7463 = vmatpush1.bf16.msra.mxu0 %v10342_v33 }
 0x3c4   :  { %7635 = vmatpush1.bf16.msra.mxu1 %v10344_v34  ;;  %7464 = vmatprep.subr.bf16.mxu0 %v10359_v37 }
 0x3c5   :  { %v7144_v56 = vpop.f32.mrb[12].mxu0  ;;  %7636 = vmatprep.subr.bf16.mxu1 %v10361_v38 }
 0x3c6   :  { %v7316_v4 = vpop.f32.mrb[12].mxu1  ;;  %v7146_v5 = vpop.f32.mrb[13].mxu0  ;;  %v11488_v15 = vadd.f32 %v7144_v56, %v1456_v55  ;;  %v10390_v56 = vcombine.low %v1293_v61, %v1301_v1  ;;  %v1341_v1 = vld [vmem:[#allocation7 + $0x1d20] sm:$0xff] }
 0x3c7   :  { %v7318_v7 = vpop.f32.mrb[13].mxu1  ;;  %v7148_v8 = vpop.f32.mrb[14].mxu0  ;;  %7465 = vmatpush1.bf16.msra.mxu0 %v10358_v53  ;;  %v11492_v31 = vadd.f32 %v7316_v4, %v1464_v62  ;;  %v11494_v33 = vadd.f32 %v7146_v5, %v1460_v2  ;;  %v1325_v5 = vld [vmem:[#allocation7 + $0x1ca0] sm:$0xff] }
 0x3c8   :  { %v11490_v17 = vadd.f32 %v7148_v8, %v1456_v55  ;;  %v7320_v23 = vpop.f32.mrb[14].mxu1  ;;  %7637 = vmatpush1.bf16.msra.mxu1 %v10360_v58  ;;  %v7150_v25 = vpop.f32.mrb[15].mxu0  ;;  %7466 = vmatprep.subr.bf16.mxu0 %v10375_v59  ;;  %v11500_v42 = vadd.f32 %v7318_v7, %v1468_v6  ;;  %v1318_v55 = vld [vmem:[#allocation7 + $0x1c68] sm:$0xff] }
 0x3c9   :  { %v11496_v34 = vadd.f32 %v7320_v23, %v1464_v62  ;;  %v11498_v37 = vadd.f32 %v7150_v25, %v1460_v2  ;;  %v7322_v38 = vpop.f32.mrb[15].mxu1  ;;  %7638 = vmatprep.subr.bf16.mxu1 %v10377_v63  ;;  %v10392_v2 = vcombine.low %v1294_v0, %v1302_v3  ;;  %v10407_v63 = vcombine.high %v1309_v39, %v1317_v40  ;;  %v1326_v7 = vld [vmem:[#allocation7 + $0x1ca8] sm:$0xff] }
 0x3ca   :  { %v8017_v43 = vpack.c.bf16 %v11490_v17, %v11488_v15  ;;  %v11504_v53 = vadd.f32 %v7322_v38, %v1468_v6  ;;  %v10409_v4 = vcombine.high %v1310_v54, %v1318_v55  ;;  %v1333_v6 = vld [vmem:[#allocation7 + $0x1ce0] sm:$0xff]  ;;  %v1334_v8 = vld [vmem:[#allocation7 + $0x1ce8] sm:$0xff]  ;;  %v10406_v23 = vcombine.low %v1309_v39, %v1317_v40 }
 0x3cb   :  { %v8019_v58 = vpack.c.bf16 %v11496_v34, %v11492_v31  ;;  %v8018_v59 = vpack.c.bf16 %v11498_v37, %v11494_v33  ;;  %7467 = vmatpush1.bf16.msra.mxu0 %v10374_v11  ;;  %v10408_v25 = vcombine.low %v1310_v54, %v1318_v55  ;;  %v10423_v11 = vcombine.high %v1325_v5, %v1333_v6  ;;  %v1349_v38 = vld [vmem:[#allocation7 + $0x1d60] sm:$0xff]  ;;  %v1358_v40 = vld [vmem:[#allocation7 + $0x1da8] sm:$0xff]  ;;  %v11018_v33 = vld [vmem:[%s12023_s6 + $0x1d8] sm:$0xff]  }
 0x3cc   :  { %v8020_v62 = vpack.c.bf16 %v11504_v53, %v11500_v42  ;;  %7639 = vmatpush1.bf16.msra.mxu1 %v10376_v12  ;;  %7468 = vmatprep.subr.bf16.mxu0 %v10391_v13  ;;  %v10425_v61 = vcombine.high %v1326_v7, %v1334_v8  ;;  %v1342_v12 = vld [vmem:[#allocation7 + $0x1d28] sm:$0xff]  ;;  %v10422_v0 = vcombine.low %v1325_v5, %v1333_v6  ;;  %v1365_v39 = vld [vmem:[#allocation7 + $0x1de0] sm:$0xff]  ;;  %v11019_v37 = vld [vmem:[%s12023_s6 + $0x118] sm:$0xff]  }
 0x3cd   :  { %7640 = vmatprep.subr.bf16.mxu1 %v10393_v30  ;;  %v1350_v13 = vld [vmem:[#allocation7 + $0x1d68] sm:$0xff]  ;;  %v10424_v3 = vcombine.low %v1326_v7, %v1334_v8  ;;  %v10439_v30 = vcombine.high %v1341_v1, %v1349_v38  ;;  %v10438_v54 = vcombine.low %v1341_v1, %v1349_v38  ;;  %v1381_v5 = vld [vmem:[#allocation7 + $0x1e60] sm:$0xff]  ;;  %v11020_v42 = vld [vmem:[%s12023_s6 + $0x198] sm:$0xff]  }
 0x3ce   :  { %v10441_v44 = vcombine.high %v1342_v12, %v1350_v13  ;;  %v10440_v55 = vcombine.low %v1342_v12, %v1350_v13  ;;  %v1374_v6 = vld [vmem:[#allocation7 + $0x1e28] sm:$0xff]  ;;  %v1397_v1 = vld [vmem:[#allocation7 + $0x1ee0] sm:$0xff]  ;;  %v11021_v53 = vld [vmem:[%s12023_s6 + $0x160] sm:$0xff]  }
 0x3cf   :  { %7469 = vmatpush1.bf16.msra.mxu0 %v10390_v56  ;;  %v1357_v56 = vld [vmem:[#allocation7 + $0x1da0] sm:$0xff]  ;;  %v1390_v38 = vld [vmem:[#allocation7 + $0x1ea8] sm:$0xff] }
 0x3d0   :  { %7641 = vmatpush1.bf16.msra.mxu1 %v10392_v2  ;;  %7470 = vmatprep.subr.bf16.mxu0 %v10407_v63  ;;  %v1366_v2 = vld [vmem:[#allocation7 + $0x1de8] sm:$0xff]  ;;  %v10455_v63 = vcombine.high %v1357_v56, %v1365_v39  ;;  %v10454_v7 = vcombine.low %v1357_v56, %v1365_v39  ;;  %v1413_v56 = vld [vmem:[#allocation7 + $0x1f60] sm:$0xff] }
 0x3d1   :  { %7642 = vmatprep.subr.bf16.mxu1 %v10409_v4  ;;  %v10457_v4 = vcombine.high %v1358_v40, %v1366_v2  ;;  %v10456_v8 = vcombine.low %v1358_v40, %v1366_v2  ;;  %v1406_v39 = vld [vmem:[#allocation7 + $0x1f28] sm:$0xff]  ;;  %v11044_v15 = vld [vmem:[%s12023_s6 + $0x288] sm:$0xff]  }
 0x3d2   :  { %v11045_v17 = vld [vmem:[%s12023_s6 + $0x250] sm:$0xff]  }
 0x3d3   :  { %7471 = vmatpush1.bf16.msra.mxu0 %v10406_v23  ;;  %v1373_v23 = vld [vmem:[#allocation7 + $0x1e20] sm:$0xff]  ;;  %v11046_v31 = vld [vmem:[%s12023_s6 + $0x2d0] sm:$0xff]  }
 0x3d4   :  { %7643 = vmatpush1.bf16.msra.mxu1 %v10408_v25  ;;  %7472 = vmatprep.subr.bf16.mxu0 %v10423_v11  ;;  %v1382_v25 = vld [vmem:[#allocation7 + $0x1e68] sm:$0xff]  ;;  %v10471_v11 = vcombine.high %v1373_v23, %v1381_v5  ;;  %v10470_v12 = vcombine.low %v1373_v23, %v1381_v5  ;;  %v1429_v23 = vld [vmem:[#allocation7 + $0x1fe0] sm:$0xff] }
 0x3d5   :  { %7644 = vmatprep.subr.bf16.mxu1 %v10425_v61  ;;  %v10473_v61 = vcombine.high %v1374_v6, %v1382_v25  ;;  %v1422_v5 = vld [vmem:[#allocation7 + $0x1fa8] sm:$0xff] }
 0x3d6   :  { %v11047_v34 = vld [vmem:[%s12023_s6 + $0x210] sm:$0xff]  }
 0x3d7   :  { %7473 = vmatpush1.bf16.msra.mxu0 %v10422_v0  ;;  %v1389_v0 = vld [vmem:[#allocation7 + $0x1ea0] sm:$0xff] }
 0x3d8   :  { %7645 = vmatpush1.bf16.msra.mxu1 %v10424_v3  ;;  %7474 = vmatprep.subr.bf16.mxu0 %v10439_v30  ;;  %v1398_v3 = vld [vmem:[#allocation7 + $0x1ee8] sm:$0xff]  ;;  %v10487_v13 = vcombine.high %v1389_v0, %v1397_v1  ;;  %v10486_v40 = vcombine.low %v1389_v0, %v1397_v1  ;;  %v423_v0 = vld [vmem:[#allocation7 + $0x70] sm:$0xff]  ;;  %v416_v1 = vld [vmem:[#allocation7 + $0x38] sm:$0xff] }
 0x3d9   :  { %7646 = vmatprep.subr.bf16.mxu1 %v10441_v44  ;;  %v10472_v44 = vcombine.low %v1374_v6, %v1382_v25  ;;  %v10489_v30 = vcombine.high %v1390_v38, %v1398_v3  ;;  %v10488_v2 = vcombine.low %v1390_v38, %v1398_v3 }
 0x3db   :  { %7475 = vmatpush1.bf16.msra.mxu0 %v10438_v54  ;;  %v1405_v54 = vld [vmem:[#allocation7 + $0x1f20] sm:$0xff] }
 0x3dc   :  { %7647 = vmatpush1.bf16.msra.mxu1 %v10440_v55  ;;  %7476 = vmatprep.subr.bf16.mxu0 %v10455_v63  ;;  %v1414_v55 = vld [vmem:[#allocation7 + $0x1f68] sm:$0xff]  ;;  %v10503_v63 = vcombine.high %v1405_v54, %v1413_v56  ;;  %v10502_v6 = vcombine.low %v1405_v54, %v1413_v56  ;;  %v439_v54 = vld [vmem:[#allocation7 + $0xf0] sm:$0xff] }
 0x3dd   :  { %7648 = vmatprep.subr.bf16.mxu1 %v10457_v4  ;;  %v10505_v4 = vcombine.high %v1406_v39, %v1414_v55  ;;  %v10504_v25 = vcombine.low %v1406_v39, %v1414_v55  ;;  %v432_v39 = vld [vmem:[#allocation7 + $0xb8] sm:$0xff] }
 0x3de   :  { %v440_v55 = vld [vmem:[#allocation7 + $0xf8] sm:$0xff] }
 0x3df   :  { %7477 = vmatpush1.bf16.msra.mxu0 %v10454_v7  ;;  %v1421_v7 = vld [vmem:[#allocation7 + $0x1fa0] sm:$0xff] }
 0x3e0   :  { %7649 = vmatpush1.bf16.msra.mxu1 %v10456_v8  ;;  %7478 = vmatprep.subr.bf16.mxu0 %v10471_v11  ;;  %v1430_v8 = vld [vmem:[#allocation7 + $0x1fe8] sm:$0xff]  ;;  %v10519_v11 = vcombine.high %v1421_v7, %v1429_v23  ;;  %v10518_v38 = vcombine.low %v1421_v7, %v1429_v23  ;;  %v9533_v7 = vcombine.high %v432_v39, %v440_v55  ;;  %v448_v23 = vld [vmem:[#allocation7 + $0x138] sm:$0xff] }
 0x3e1   :  { %7650 = vmatprep.subr.bf16.mxu1 %v10473_v61  ;;  %v10521_v61 = vcombine.high %v1422_v5, %v1430_v8  ;;  %v10520_v3 = vcombine.low %v1422_v5, %v1430_v8  ;;  %v456_v5 = vld [vmem:[#allocation7 + $0x178] sm:$0xff] }
 0x3e3   :  { %7479 = vmatpush1.bf16.msra.mxu0 %v10470_v12  ;;  %v415_v12 = vld [vmem:[#allocation7 + $0x30] sm:$0xff] }
 0x3e4   :  { %7651 = vmatpush1.bf16.msra.mxu1 %v10472_v44  ;;  %7480 = vmatprep.subr.bf16.mxu0 %v10487_v13  ;;  %v424_v44 = vld [vmem:[#allocation7 + $0x78] sm:$0xff]  ;;  %v9515_v13 = vcombine.high %v415_v12, %v423_v0  ;;  %v9514_v56 = vcombine.low %v415_v12, %v423_v0  ;;  %v463_v12 = vld [vmem:[#allocation7 + $0x1b0] sm:$0xff] }
 0x3e5   :  { %7652 = vmatprep.subr.bf16.mxu1 %v10489_v30  ;;  %v9517_v30 = vcombine.high %v416_v1, %v424_v44  ;;  %v471_v0 = vld [vmem:[#allocation7 + $0x1f0] sm:$0xff] }
 0x3e7   :  { %7481 = vmatpush1.bf16.msra.mxu0 %v10486_v40  ;;  %v431_v40 = vld [vmem:[#allocation7 + $0xb0] sm:$0xff] }
 0x3e8   :  { %7653 = vmatpush1.bf16.msra.mxu1 %v10488_v2  ;;  %7482 = vmatprep.subr.bf16.mxu0 %v10503_v63  ;;  %v9516_v2 = vcombine.low %v416_v1, %v424_v44  ;;  %v9531_v63 = vcombine.high %v431_v40, %v439_v54  ;;  %v9530_v8 = vcombine.low %v431_v40, %v439_v54  ;;  %v464_v1 = vld [vmem:[#allocation7 + $0x1b8] sm:$0xff]  ;;  %v479_v40 = vld [vmem:[#allocation7 + $0x230] sm:$0xff] }
 0x3e9   :  { %7654 = vmatprep.subr.bf16.mxu1 %v10505_v4  ;;  %v447_v4 = vld [vmem:[#allocation7 + $0x130] sm:$0xff]  ;;  %v472_v44 = vld [vmem:[#allocation7 + $0x1f8] sm:$0xff] }
 0x3ea   :  { %v487_v54 = vld [vmem:[#allocation7 + $0x270] sm:$0xff] }
 0x3eb   :  { %7483 = vmatpush1.bf16.msra.mxu0 %v10502_v6  ;;  %v455_v6 = vld [vmem:[#allocation7 + $0x170] sm:$0xff] }
 0x3ec   :  { %7655 = vmatpush1.bf16.msra.mxu1 %v10504_v25  ;;  %7484 = vmatprep.subr.bf16.mxu0 %v10519_v11  ;;  %v9532_v25 = vcombine.low %v432_v39, %v440_v55  ;;  %v9547_v11 = vcombine.high %v447_v4, %v455_v6  ;;  %v488_v39 = vld [vmem:[#allocation7 + $0x278] sm:$0xff]  ;;  %v9564_v55 = vcombine.low %v464_v1, %v472_v44 }
 0x3ed   :  { %7656 = vmatprep.subr.bf16.mxu1 %v10521_v61  ;;  %v9549_v61 = vcombine.high %v448_v23, %v456_v5 }
 0x3ef   :  { %7485 = vmatpush1.bf16.msra.mxu0 %v10518_v38  ;;  %v9546_v38 = vcombine.low %v447_v4, %v455_v6  ;;  %v503_v4 = vld [vmem:[#allocation7 + $0x2f0] sm:$0xff]  ;;  %v496_v6 = vld [vmem:[#allocation7 + $0x2b8] sm:$0xff] }
 0x3f0   :  { %7657 = vmatpush1.bf16.msra.mxu1 %v10520_v3  ;;  %7669 = vmatprep.subr.bf16.mxu0 %v9515_v13  ;;  %v9548_v3 = vcombine.low %v448_v23, %v456_v5  ;;  %v9563_v13 = vcombine.high %v463_v12, %v471_v0  ;;  %v9578_v23 = vcombine.low %v479_v40, %v487_v54 }
 0x3f1   :  { %7841 = vmatprep.subr.bf16.mxu1 %v9517_v30  ;;  %v9565_v30 = vcombine.high %v464_v1, %v472_v44 }
 0x3f2   :  { %7487 = vmatmul.mubr.bf16.vlgmr.msra.gmra.mrb[16].mxu0 %v11412_v52 }
 0x3f3   :  { %7659 = vmatmul.mubr.bf16.vlgmr.msra.gmra.mrb[16].mxu1 %v11412_v52  ;;  %7670 = vmatpush1.bf16.msra.mxu0 %v9514_v56  ;;  %v480_v56 = vld [vmem:[#allocation7 + $0x238] sm:$0xff] }
 0x3f4   :  { %7701 = vmatprep.mubr.bf16.mxu0 %v11384_v14  ;;  %7842 = vmatpush1.bf16.msra.mxu1 %v9516_v2  ;;  %v9579_v2 = vcombine.high %v479_v40, %v487_v54  ;;  %v9580_v5 = vcombine.low %v480_v56, %v488_v39  ;;  %v535_v40 = vld [vmem:[#allocation7 + $0x3f0] sm:$0xff]  ;;  %v528_v54 = vld [vmem:[#allocation7 + $0x3b8] sm:$0xff] }
 0x3f5   :  { %7873 = vmatprep.mubr.bf16.mxu1 %v11384_v14  ;;  %7671 = vmatprep.subr.bf16.mxu0 %v9531_v63  ;;  %v9562_v14 = vcombine.low %v463_v12, %v471_v0  ;;  %v9581_v63 = vcombine.high %v480_v56, %v488_v39  ;;  %v519_v12 = vld [vmem:[#allocation7 + $0x370] sm:$0xff]  ;;  %v512_v0 = vld [vmem:[#allocation7 + $0x338] sm:$0xff] }
 0x3f6   :  { %7843 = vmatprep.subr.bf16.mxu1 %v9533_v7  ;;  %v495_v7 = vld [vmem:[#allocation7 + $0x2b0] sm:$0xff] }
 0x3f7   :  { %7672 = vmatpush1.bf16.msra.mxu0 %v9530_v8  ;;  %v504_v8 = vld [vmem:[#allocation7 + $0x2f8] sm:$0xff]  ;;  %v9594_v1 = vcombine.low %v495_v7, %v503_v4 }
 0x3f8   :  { %7844 = vmatpush1.bf16.msra.mxu1 %v9532_v25  ;;  %7673 = vmatprep.subr.bf16.mxu0 %v9547_v11  ;;  %v9595_v25 = vcombine.high %v495_v7, %v503_v4  ;;  %v9597_v11 = vcombine.high %v496_v6, %v504_v8  ;;  %v9596_v44 = vcombine.low %v496_v6, %v504_v8  ;;  %v551_v7 = vld [vmem:[#allocation7 + $0x470] sm:$0xff]  ;;  %v544_v4 = vld [vmem:[#allocation7 + $0x438] sm:$0xff] }
 0x3f9   :  { %7845 = vmatprep.subr.bf16.mxu1 %v9549_v61  ;;  %v511_v61 = vld [vmem:[#allocation7 + $0x330] sm:$0xff] }
 0x3fa   :  { %v9610_v56 = vcombine.low %v511_v61, %v519_v12 }
 0x3fb   :  { %7674 = vmatpush1.bf16.msra.mxu0 %v9546_v38  ;;  %v520_v38 = vld [vmem:[#allocation7 + $0x378] sm:$0xff] }
 0x3fc   :  { %7846 = vmatpush1.bf16.msra.mxu1 %v9548_v3  ;;  %7675 = vmatprep.subr.bf16.mxu0 %v9563_v13  ;;  %v9611_v3 = vcombine.high %v511_v61, %v519_v12  ;;  %v9613_v13 = vcombine.high %v512_v0, %v520_v38  ;;  %v9612_v39 = vcombine.low %v512_v0, %v520_v38  ;;  %v567_v61 = vld [vmem:[#allocation7 + $0x4f0] sm:$0xff]  ;;  %v560_v12 = vld [vmem:[#allocation7 + $0x4b8] sm:$0xff] }
 0x3fd   :  { %7847 = vmatprep.subr.bf16.mxu1 %v9565_v30  ;;  %v527_v30 = vld [vmem:[#allocation7 + $0x3b0] sm:$0xff] }
 0x3fe   :  { %v9626_v6 = vcombine.low %v527_v30, %v535_v40 }
 0x3ff   :  { %7676 = vmatpush1.bf16.msra.mxu0 %v9562_v14  ;;  %v536_v14 = vld [vmem:[#allocation7 + $0x3f8] sm:$0xff] }
 0x400   :  { %7848 = vmatpush1.bf16.msra.mxu1 %v9564_v55  ;;  %7677 = vmatprep.subr.bf16.mxu0 %v9579_v2  ;;  %v9627_v55 = vcombine.high %v527_v30, %v535_v40  ;;  %v9629_v2 = vcombine.high %v528_v54, %v536_v14  ;;  %v9628_v8 = vcombine.low %v528_v54, %v536_v14  ;;  %v583_v30 = vld [vmem:[#allocation7 + $0x570] sm:$0xff]  ;;  %v576_v40 = vld [vmem:[#allocation7 + $0x538] sm:$0xff] }
 0x401   :  { %7849 = vmatprep.subr.bf16.mxu1 %v9581_v63  ;;  %v543_v63 = vld [vmem:[#allocation7 + $0x430] sm:$0xff] }
 0x402   :  { %v9642_v0 = vcombine.low %v543_v63, %v551_v7 }
 0x403   :  { %7678 = vmatpush1.bf16.msra.mxu0 %v9578_v23  ;;  %v552_v23 = vld [vmem:[#allocation7 + $0x478] sm:$0xff] }
 0x404   :  { %7850 = vmatpush1.bf16.msra.mxu1 %v9580_v5  ;;  %7679 = vmatprep.subr.bf16.mxu0 %v9595_v25  ;;  %v9643_v5 = vcombine.high %v543_v63, %v551_v7  ;;  %v9645_v25 = vcombine.high %v544_v4, %v552_v23  ;;  %v9644_v38 = vcombine.low %v544_v4, %v552_v23  ;;  %v599_v63 = vld [vmem:[#allocation7 + $0x5f0] sm:$0xff]  ;;  %v592_v7 = vld [vmem:[#allocation7 + $0x5b8] sm:$0xff] }
 0x405   :  { %7851 = vmatprep.subr.bf16.mxu1 %v9597_v11  ;;  %v559_v11 = vld [vmem:[#allocation7 + $0x4b0] sm:$0xff] }
 0x406   :  { %v9658_v54 = vcombine.low %v559_v11, %v567_v61 }
 0x407   :  { %7680 = vmatpush1.bf16.msra.mxu0 %v9594_v1  ;;  %v568_v1 = vld [vmem:[#allocation7 + $0x4f8] sm:$0xff] }
 0x408   :  { %7852 = vmatpush1.bf16.msra.mxu1 %v9596_v44  ;;  %7681 = vmatprep.subr.bf16.mxu0 %v9611_v3  ;;  %v9659_v44 = vcombine.high %v559_v11, %v567_v61  ;;  %v9661_v3 = vcombine.high %v560_v12, %v568_v1  ;;  %v9660_v14 = vcombine.low %v560_v12, %v568_v1  ;;  %v615_v11 = vld [vmem:[#allocation7 + $0x670] sm:$0xff]  ;;  %v608_v61 = vld [vmem:[#allocation7 + $0x638] sm:$0xff] }
 0x409   :  { %7853 = vmatprep.subr.bf16.mxu1 %v9613_v13  ;;  %v575_v13 = vld [vmem:[#allocation7 + $0x530] sm:$0xff] }
 0x40a   :  { %v9674_v4 = vcombine.low %v575_v13, %v583_v30 }
 0x40b   :  { %7682 = vmatpush1.bf16.msra.mxu0 %v9610_v56  ;;  %v584_v56 = vld [vmem:[#allocation7 + $0x578] sm:$0xff] }
 0x40c   :  { %7854 = vmatpush1.bf16.msra.mxu1 %v9612_v39  ;;  %7683 = vmatprep.subr.bf16.mxu0 %v9627_v55  ;;  %v9675_v39 = vcombine.high %v575_v13, %v583_v30  ;;  %v9677_v55 = vcombine.high %v576_v40, %v584_v56  ;;  %v9676_v23 = vcombine.low %v576_v40, %v584_v56  ;;  %v631_v13 = vld [vmem:[#allocation7 + $0x6f0] sm:$0xff]  ;;  %v624_v30 = vld [vmem:[#allocation7 + $0x6b8] sm:$0xff] }
 0x40d   :  { %7855 = vmatprep.subr.bf16.mxu1 %v9629_v2  ;;  %v591_v2 = vld [vmem:[#allocation7 + $0x5b0] sm:$0xff] }
 0x40e   :  { %v9690_v12 = vcombine.low %v591_v2, %v599_v63 }
 0x40f   :  { %7684 = vmatpush1.bf16.msra.mxu0 %v9626_v6  ;;  %v600_v6 = vld [vmem:[#allocation7 + $0x5f8] sm:$0xff] }
 0x410   :  { %7856 = vmatpush1.bf16.msra.mxu1 %v9628_v8  ;;  %7685 = vmatprep.subr.bf16.mxu0 %v9643_v5  ;;  %v9691_v8 = vcombine.high %v591_v2, %v599_v63  ;;  %v9693_v5 = vcombine.high %v592_v7, %v600_v6  ;;  %v9692_v1 = vcombine.low %v592_v7, %v600_v6  ;;  %v647_v2 = vld [vmem:[#allocation7 + $0x770] sm:$0xff]  ;;  %v640_v63 = vld [vmem:[#allocation7 + $0x738] sm:$0xff] }
 0x411   :  { %7857 = vmatprep.subr.bf16.mxu1 %v9645_v25  ;;  %v607_v25 = vld [vmem:[#allocation7 + $0x630] sm:$0xff] }
 0x412   :  { %v9706_v40 = vcombine.low %v607_v25, %v615_v11 }
 0x413   :  { %7686 = vmatpush1.bf16.msra.mxu0 %v9642_v0  ;;  %v616_v0 = vld [vmem:[#allocation7 + $0x678] sm:$0xff] }
 0x414   :  { %7858 = vmatpush1.bf16.msra.mxu1 %v9644_v38  ;;  %7687 = vmatprep.subr.bf16.mxu0 %v9659_v44  ;;  %v9707_v38 = vcombine.high %v607_v25, %v615_v11  ;;  %v9709_v44 = vcombine.high %v608_v61, %v616_v0  ;;  %v9708_v56 = vcombine.low %v608_v61, %v616_v0  ;;  %v663_v25 = vld [vmem:[#allocation7 + $0x7f0] sm:$0xff]  ;;  %v656_v11 = vld [vmem:[#allocation7 + $0x7b8] sm:$0xff] }
 0x415   :  { %7859 = vmatprep.subr.bf16.mxu1 %v9661_v3  ;;  %v623_v3 = vld [vmem:[#allocation7 + $0x6b0] sm:$0xff] }
 0x416   :  { %v9722_v7 = vcombine.low %v623_v3, %v631_v13 }
 0x417   :  { %7688 = vmatpush1.bf16.msra.mxu0 %v9658_v54  ;;  %v632_v54 = vld [vmem:[#allocation7 + $0x6f8] sm:$0xff] }
 0x418   :  { %7860 = vmatpush1.bf16.msra.mxu1 %v9660_v14  ;;  %7689 = vmatprep.subr.bf16.mxu0 %v9675_v39  ;;  %v9723_v14 = vcombine.high %v623_v3, %v631_v13  ;;  %v9725_v39 = vcombine.high %v624_v30, %v632_v54  ;;  %v9724_v6 = vcombine.low %v624_v30, %v632_v54  ;;  %v679_v3 = vld [vmem:[#allocation7 + $0x870] sm:$0xff]  ;;  %v672_v13 = vld [vmem:[#allocation7 + $0x838] sm:$0xff] }
 0x419   :  { %7861 = vmatprep.subr.bf16.mxu1 %v9677_v55  ;;  %v639_v55 = vld [vmem:[#allocation7 + $0x730] sm:$0xff] }
 0x41a   :  { %v9738_v61 = vcombine.low %v639_v55, %v647_v2 }
 0x41b   :  { %7690 = vmatpush1.bf16.msra.mxu0 %v9674_v4  ;;  %v648_v4 = vld [vmem:[#allocation7 + $0x778] sm:$0xff] }
 0x41c   :  { %7862 = vmatpush1.bf16.msra.mxu1 %v9676_v23  ;;  %7691 = vmatprep.subr.bf16.mxu0 %v9691_v8  ;;  %v9739_v23 = vcombine.high %v639_v55, %v647_v2  ;;  %v9741_v8 = vcombine.high %v640_v63, %v648_v4  ;;  %v9740_v0 = vcombine.low %v640_v63, %v648_v4  ;;  %v695_v55 = vld [vmem:[#allocation7 + $0x8f0] sm:$0xff]  ;;  %v688_v63 = vld [vmem:[#allocation7 + $0x8b8] sm:$0xff] }
 0x41d   :  { %7863 = vmatprep.subr.bf16.mxu1 %v9693_v5  ;;  %v655_v5 = vld [vmem:[#allocation7 + $0x7b0] sm:$0xff]  ;;  %v696_v4 = vld [vmem:[#allocation7 + $0x8f8] sm:$0xff] }
 0x41e   :  { %v9754_v30 = vcombine.low %v655_v5, %v663_v25 }
 0x41f   :  { %7692 = vmatpush1.bf16.msra.mxu0 %v9690_v12  ;;  %v664_v12 = vld [vmem:[#allocation7 + $0x7f8] sm:$0xff] }
 0x420   :  { %7864 = vmatpush1.bf16.msra.mxu1 %v9692_v1  ;;  %7693 = vmatprep.subr.bf16.mxu0 %v9707_v38  ;;  %v9755_v1 = vcombine.high %v655_v5, %v663_v25  ;;  %v9757_v38 = vcombine.high %v656_v11, %v664_v12  ;;  %v9756_v54 = vcombine.low %v656_v11, %v664_v12  ;;  %v704_v25 = vld [vmem:[#allocation7 + $0x938] sm:$0xff] }
 0x421   :  { %7865 = vmatprep.subr.bf16.mxu1 %v9709_v44  ;;  %v671_v44 = vld [vmem:[#allocation7 + $0x830] sm:$0xff]  ;;  %v9789_v5 = vcombine.high %v688_v63, %v696_v4  ;;  %v712_v11 = vld [vmem:[#allocation7 + $0x978] sm:$0xff] }
 0x422   :  { %v9770_v2 = vcombine.low %v671_v44, %v679_v3 }
 0x423   :  { %7694 = vmatpush1.bf16.msra.mxu0 %v9706_v40  ;;  %v680_v40 = vld [vmem:[#allocation7 + $0x878] sm:$0xff] }
 0x424   :  { %7866 = vmatpush1.bf16.msra.mxu1 %v9708_v56  ;;  %7695 = vmatprep.subr.bf16.mxu0 %v9723_v14  ;;  %v9771_v56 = vcombine.high %v671_v44, %v679_v3  ;;  %v9773_v14 = vcombine.high %v672_v13, %v680_v40  ;;  %v727_v44 = vld [vmem:[#allocation7 + $0x9f0] sm:$0xff]  ;;  %v720_v3 = vld [vmem:[#allocation7 + $0x9b8] sm:$0xff] }
 0x425   :  { %7867 = vmatprep.subr.bf16.mxu1 %v9725_v39  ;;  %v687_v39 = vld [vmem:[#allocation7 + $0x8b0] sm:$0xff] }
 0x426   :  { %v9786_v12 = vcombine.low %v687_v39, %v695_v55 }
 0x427   :  { %7696 = vmatpush1.bf16.msra.mxu0 %v9722_v7  ;;  %v9772_v7 = vcombine.low %v672_v13, %v680_v40  ;;  %v728_v13 = vld [vmem:[#allocation7 + $0x9f8] sm:$0xff] }
 0x428   :  { %7868 = vmatpush1.bf16.msra.mxu1 %v9724_v6  ;;  %7697 = vmatprep.subr.bf16.mxu0 %v9739_v23  ;;  %v9787_v6 = vcombine.high %v687_v39, %v695_v55  ;;  %v703_v23 = vld [vmem:[#allocation7 + $0x930] sm:$0xff]  ;;  %v736_v39 = vld [vmem:[#allocation7 + $0xa38] sm:$0xff] }
 0x429   :  { %7869 = vmatprep.subr.bf16.mxu1 %v9741_v8  ;;  %v711_v8 = vld [vmem:[#allocation7 + $0x970] sm:$0xff]  ;;  %v744_v55 = vld [vmem:[#allocation7 + $0xa78] sm:$0xff] }
 0x42a   :  { %v9802_v40 = vcombine.low %v703_v23, %v711_v8 }
 0x42b   :  { %7698 = vmatpush1.bf16.msra.mxu0 %v9738_v61  ;;  %v9788_v61 = vcombine.low %v688_v63, %v696_v4  ;;  %v9837_v4 = vcombine.high %v736_v39, %v744_v55 }
 0x42c   :  { %7870 = vmatpush1.bf16.msra.mxu1 %v9740_v0  ;;  %7699 = vmatprep.subr.bf16.mxu0 %v9755_v1  ;;  %v9803_v0 = vcombine.high %v703_v23, %v711_v8  ;;  %v9805_v1 = vcombine.high %v704_v25, %v712_v11  ;;  %v752_v23 = vld [vmem:[#allocation7 + $0xab8] sm:$0xff] }
 0x42d   :  { %7871 = vmatprep.subr.bf16.mxu1 %v9757_v38  ;;  %v719_v38 = vld [vmem:[#allocation7 + $0x9b0] sm:$0xff]  ;;  %v760_v8 = vld [vmem:[#allocation7 + $0xaf8] sm:$0xff] }
 0x42f   :  { %7700 = vmatpush1.bf16.msra.mxu0 %v9754_v30  ;;  %v9819_v30 = vcombine.high %v719_v38, %v727_v44 }
 0x430   :  { %7872 = vmatpush1.bf16.msra.mxu1 %v9756_v54  ;;  %7712 = vmatprep.subr.bf16.mxu0 %v9771_v56  ;;  %v9821_v54 = vcombine.high %v720_v3, %v728_v13  ;;  %v735_v56 = vld [vmem:[#allocation7 + $0xa30] sm:$0xff] }
 0x431   :  { %7884 = vmatprep.subr.bf16.mxu1 %v9773_v14  ;;  %v743_v14 = vld [vmem:[#allocation7 + $0xa70] sm:$0xff] }
 0x432   :  { %7702 = vmatmul.mubr.bf16.vlgmr.msra.gmra.mrb[20].mxu0 %v11380_v10  ;;  %v9835_v63 = vcombine.high %v735_v56, %v743_v14 }
 0x433   :  { %7874 = vmatmul.mubr.bf16.vlgmr.msra.gmra.mrb[20].mxu1 %v11380_v10  ;;  %7713 = vmatpush1.bf16.msra.mxu0 %v9770_v2  ;;  %v9804_v10 = vcombine.low %v704_v25, %v712_v11  ;;  %v9820_v2 = vcombine.low %v720_v3, %v728_v13  ;;  %v9836_v25 = vcombine.low %v736_v39, %v744_v55 }
 0x434   :  { %7744 = vmatprep.mubr.bf16.mxu0 %v11392_v24  ;;  %7885 = vmatpush1.bf16.msra.mxu1 %v9772_v7  ;;  %v751_v7 = vld [vmem:[#allocation7 + $0xab0] sm:$0xff]  ;;  %v9852_v3 = vcombine.low %v752_v23, %v760_v8 }
 0x435   :  { %7916 = vmatprep.mubr.bf16.mxu1 %v11392_v24  ;;  %7714 = vmatprep.subr.bf16.mxu0 %v9787_v6  ;;  %v9818_v24 = vcombine.low %v719_v38, %v727_v44  ;;  %v759_v6 = vld [vmem:[#allocation7 + $0xaf0] sm:$0xff]  ;;  %v776_v38 = vld [vmem:[#allocation7 + $0xb78] sm:$0xff] }
 0x436   :  { %7886 = vmatprep.subr.bf16.mxu1 %v9789_v5  ;;  %v9834_v5 = vcombine.low %v735_v56, %v743_v14  ;;  %v9851_v11 = vcombine.high %v751_v7, %v759_v6  ;;  %v9850_v44 = vcombine.low %v751_v7, %v759_v6  ;;  %v792_v56 = vld [vmem:[#allocation7 + $0xbf8] sm:$0xff] }
 0x437   :  { %7715 = vmatpush1.bf16.msra.mxu0 %v9786_v12  ;;  %v9853_v12 = vcombine.high %v752_v23, %v760_v8  ;;  %v808_v7 = vld [vmem:[#allocation7 + $0xc78] sm:$0xff] }
 0x438   :  { %7887 = vmatpush1.bf16.msra.mxu1 %v9788_v61  ;;  %7716 = vmatprep.subr.bf16.mxu0 %v9803_v0  ;;  %v767_v61 = vld [vmem:[#allocation7 + $0xb30] sm:$0xff] }
 0x439   :  { %7888 = vmatprep.subr.bf16.mxu1 %v9805_v1  ;;  %v775_v0 = vld [vmem:[#allocation7 + $0xb70] sm:$0xff]  ;;  %v768_v1 = vld [vmem:[#allocation7 + $0xb38] sm:$0xff] }
 0x43a   :  { %v9867_v13 = vcombine.high %v767_v61, %v775_v0  ;;  %v9866_v14 = vcombine.low %v767_v61, %v775_v0  ;;  %v9868_v39 = vcombine.low %v768_v1, %v776_v38  ;;  %v824_v61 = vld [vmem:[#allocation7 + $0xcf8] sm:$0xff] }
 0x43b   :  { %7717 = vmatpush1.bf16.msra.mxu0 %v9802_v40  ;;  %v9869_v40 = vcombine.high %v768_v1, %v776_v38 }
 0x43c   :  { %7889 = vmatpush1.bf16.msra.mxu1 %v9804_v10  ;;  %7718 = vmatprep.subr.bf16.mxu0 %v9819_v30  ;;  %v783_v10 = vld [vmem:[#allocation7 + $0xbb0] sm:$0xff] }
 0x43d   :  { %7890 = vmatprep.subr.bf16.mxu1 %v9821_v54  ;;  %v791_v30 = vld [vmem:[#allocation7 + $0xbf0] sm:$0xff]  ;;  %v784_v54 = vld [vmem:[#allocation7 + $0xbb8] sm:$0xff] }
 0x43e   :  { %v9883_v55 = vcombine.high %v783_v10, %v791_v30  ;;  %v9882_v6 = vcombine.low %v783_v10, %v791_v30  ;;  %v9884_v23 = vcombine.low %v784_v54, %v792_v56  ;;  %v840_v10 = vld [vmem:[#allocation7 + $0xd78] sm:$0xff] }
 0x43f   :  { %7719 = vmatpush1.bf16.msra.mxu0 %v9818_v24  ;;  %v9885_v24 = vcombine.high %v784_v54, %v792_v56 }
 0x440   :  { %7891 = vmatpush1.bf16.msra.mxu1 %v9820_v2  ;;  %7720 = vmatprep.subr.bf16.mxu0 %v9835_v63  ;;  %v799_v2 = vld [vmem:[#allocation7 + $0xc30] sm:$0xff] }
 0x441   :  { %7892 = vmatprep.subr.bf16.mxu1 %v9837_v4  ;;  %v807_v63 = vld [vmem:[#allocation7 + $0xc70] sm:$0xff]  ;;  %v800_v4 = vld [vmem:[#allocation7 + $0xc38] sm:$0xff] }
 0x442   :  { %v9899_v8 = vcombine.high %v799_v2, %v807_v63  ;;  %v9898_v0 = vcombine.low %v799_v2, %v807_v63  ;;  %v9900_v1 = vcombine.low %v800_v4, %v808_v7  ;;  %v856_v2 = vld [vmem:[#allocation7 + $0xdf8] sm:$0xff] }
 0x443   :  { %7721 = vmatpush1.bf16.msra.mxu0 %v9834_v5  ;;  %v9901_v5 = vcombine.high %v800_v4, %v808_v7 }
 0x444   :  { %7893 = vmatpush1.bf16.msra.mxu1 %v9836_v25  ;;  %7722 = vmatprep.subr.bf16.mxu0 %v9851_v11  ;;  %v815_v25 = vld [vmem:[#allocation7 + $0xcb0] sm:$0xff] }
 0x445   :  { %7894 = vmatprep.subr.bf16.mxu1 %v9853_v12  ;;  %v823_v11 = vld [vmem:[#allocation7 + $0xcf0] sm:$0xff]  ;;  %v816_v12 = vld [vmem:[#allocation7 + $0xcb8] sm:$0xff] }
 0x446   :  { %v9915_v38 = vcombine.high %v815_v25, %v823_v11  ;;  %v9914_v30 = vcombine.low %v815_v25, %v823_v11  ;;  %v9916_v54 = vcombine.low %v816_v12, %v824_v61  ;;  %v872_v25 = vld [vmem:[#allocation7 + $0xe78] sm:$0xff] }
 0x447   :  { %7723 = vmatpush1.bf16.msra.mxu0 %v9850_v44  ;;  %v9917_v44 = vcombine.high %v816_v12, %v824_v61 }
 0x448   :  { %7895 = vmatpush1.bf16.msra.mxu1 %v9852_v3  ;;  %7724 = vmatprep.subr.bf16.mxu0 %v9867_v13  ;;  %v831_v3 = vld [vmem:[#allocation7 + $0xd30] sm:$0xff] }
 0x449   :  { %7896 = vmatprep.subr.bf16.mxu1 %v9869_v40  ;;  %v839_v13 = vld [vmem:[#allocation7 + $0xd70] sm:$0xff]  ;;  %v832_v40 = vld [vmem:[#allocation7 + $0xd38] sm:$0xff] }
 0x44a   :  { %v9931_v56 = vcombine.high %v831_v3, %v839_v13  ;;  %v9930_v63 = vcombine.low %v831_v3, %v839_v13  ;;  %v9932_v4 = vcombine.low %v832_v40, %v840_v10  ;;  %v888_v3 = vld [vmem:[#allocation7 + $0xef8] sm:$0xff] }
 0x44b   :  { %7725 = vmatpush1.bf16.msra.mxu0 %v9866_v14  ;;  %v9933_v14 = vcombine.high %v832_v40, %v840_v10 }
 0x44c   :  { %7897 = vmatpush1.bf16.msra.mxu1 %v9868_v39  ;;  %7726 = vmatprep.subr.bf16.mxu0 %v9883_v55  ;;  %v847_v39 = vld [vmem:[#allocation7 + $0xdb0] sm:$0xff] }
 0x44d   :  { %7898 = vmatprep.subr.bf16.mxu1 %v9885_v24  ;;  %v855_v55 = vld [vmem:[#allocation7 + $0xdf0] sm:$0xff]  ;;  %v848_v24 = vld [vmem:[#allocation7 + $0xdb8] sm:$0xff] }
 0x44e   :  { %v9947_v7 = vcombine.high %v847_v39, %v855_v55  ;;  %v9946_v11 = vcombine.low %v847_v39, %v855_v55  ;;  %v9948_v12 = vcombine.low %v848_v24, %v856_v2  ;;  %v904_v39 = vld [vmem:[#allocation7 + $0xf78] sm:$0xff] }
 0x44f   :  { %7727 = vmatpush1.bf16.msra.mxu0 %v9882_v6  ;;  %v9949_v6 = vcombine.high %v848_v24, %v856_v2 }
 0x450   :  { %7899 = vmatpush1.bf16.msra.mxu1 %v9884_v23  ;;  %7728 = vmatprep.subr.bf16.mxu0 %v9899_v8  ;;  %v863_v23 = vld [vmem:[#allocation7 + $0xe30] sm:$0xff] }
 0x451   :  { %7900 = vmatprep.subr.bf16.mxu1 %v9901_v5  ;;  %v871_v8 = vld [vmem:[#allocation7 + $0xe70] sm:$0xff]  ;;  %v864_v5 = vld [vmem:[#allocation7 + $0xe38] sm:$0xff] }
 0x452   :  { %v9963_v61 = vcombine.high %v863_v23, %v871_v8  ;;  %v9962_v13 = vcombine.low %v863_v23, %v871_v8  ;;  %v9964_v40 = vcombine.low %v864_v5, %v872_v25  ;;  %v920_v23 = vld [vmem:[#allocation7 + $0xff8] sm:$0xff] }
 0x453   :  { %7729 = vmatpush1.bf16.msra.mxu0 %v9898_v0  ;;  %v9965_v0 = vcombine.high %v864_v5, %v872_v25 }
 0x454   :  { %7901 = vmatpush1.bf16.msra.mxu1 %v9900_v1  ;;  %7730 = vmatprep.subr.bf16.mxu0 %v9915_v38  ;;  %v879_v1 = vld [vmem:[#allocation7 + $0xeb0] sm:$0xff] }
 0x455   :  { %7902 = vmatprep.subr.bf16.mxu1 %v9917_v44  ;;  %v887_v38 = vld [vmem:[#allocation7 + $0xef0] sm:$0xff]  ;;  %v880_v44 = vld [vmem:[#allocation7 + $0xeb8] sm:$0xff] }
 0x456   :  { %v9979_v10 = vcombine.high %v879_v1, %v887_v38  ;;  %v9978_v55 = vcombine.low %v879_v1, %v887_v38  ;;  %v9980_v24 = vcombine.low %v880_v44, %v888_v3  ;;  %v936_v1 = vld [vmem:[#allocation7 + $0x1078] sm:$0xff] }
 0x457   :  { %7731 = vmatpush1.bf16.msra.mxu0 %v9914_v30  ;;  %v9981_v30 = vcombine.high %v880_v44, %v888_v3 }
 0x458   :  { %7903 = vmatpush1.bf16.msra.mxu1 %v9916_v54  ;;  %7732 = vmatprep.subr.bf16.mxu0 %v9931_v56  ;;  %v895_v54 = vld [vmem:[#allocation7 + $0xf30] sm:$0xff] }
 0x459   :  { %7904 = vmatprep.subr.bf16.mxu1 %v9933_v14  ;;  %v903_v56 = vld [vmem:[#allocation7 + $0xf70] sm:$0xff]  ;;  %v896_v14 = vld [vmem:[#allocation7 + $0xf38] sm:$0xff] }
 0x45a   :  { %v9995_v2 = vcombine.high %v895_v54, %v903_v56  ;;  %v9994_v8 = vcombine.low %v895_v54, %v903_v56  ;;  %v9996_v5 = vcombine.low %v896_v14, %v904_v39  ;;  %v944_v54 = vld [vmem:[#allocation7 + $0x10b8] sm:$0xff] }
 0x45b   :  { %7733 = vmatpush1.bf16.msra.mxu0 %v9930_v63  ;;  %v9997_v63 = vcombine.high %v896_v14, %v904_v39  ;;  %v952_v56 = vld [vmem:[#allocation7 + $0x10f8] sm:$0xff] }
 0x45c   :  { %7905 = vmatpush1.bf16.msra.mxu1 %v9932_v4  ;;  %7734 = vmatprep.subr.bf16.mxu0 %v9947_v7  ;;  %v911_v4 = vld [vmem:[#allocation7 + $0xfb0] sm:$0xff] }
 0x45d   :  { %7906 = vmatprep.subr.bf16.mxu1 %v9949_v6  ;;  %v919_v7 = vld [vmem:[#allocation7 + $0xff0] sm:$0xff]  ;;  %v912_v6 = vld [vmem:[#allocation7 + $0xfb8] sm:$0xff] }
 0x45e   :  { %v10011_v25 = vcombine.high %v911_v4, %v919_v7  ;;  %v10010_v38 = vcombine.low %v911_v4, %v919_v7  ;;  %v10012_v44 = vcombine.low %v912_v6, %v920_v23  ;;  %v968_v4 = vld [vmem:[#allocation7 + $0x1178] sm:$0xff] }
 0x45f   :  { %7735 = vmatpush1.bf16.msra.mxu0 %v9946_v11  ;;  %v10013_v11 = vcombine.high %v912_v6, %v920_v23  ;;  %v10044_v6 = vcombine.low %v944_v54, %v952_v56 }
 0x460   :  { %7907 = vmatpush1.bf16.msra.mxu1 %v9948_v12  ;;  %7736 = vmatprep.subr.bf16.mxu0 %v9963_v61  ;;  %v927_v12 = vld [vmem:[#allocation7 + $0x1030] sm:$0xff] }
 0x461   :  { %7908 = vmatprep.subr.bf16.mxu1 %v9965_v0  ;;  %v935_v61 = vld [vmem:[#allocation7 + $0x1070] sm:$0xff]  ;;  %v928_v0 = vld [vmem:[#allocation7 + $0x1038] sm:$0xff] }
 0x462   :  { %v10027_v3 = vcombine.high %v927_v12, %v935_v61  ;;  %v10028_v14 = vcombine.low %v928_v0, %v936_v1 }
 0x463   :  { %7737 = vmatpush1.bf16.msra.mxu0 %v9962_v13  ;;  %v10029_v13 = vcombine.high %v928_v0, %v936_v1 }
 0x464   :  { %7909 = vmatpush1.bf16.msra.mxu1 %v9964_v40  ;;  %7738 = vmatprep.subr.bf16.mxu0 %v9979_v10  ;;  %v943_v40 = vld [vmem:[#allocation7 + $0x10b0] sm:$0xff] }
 0x465   :  { %7910 = vmatprep.subr.bf16.mxu1 %v9981_v30  ;;  %v951_v10 = vld [vmem:[#allocation7 + $0x10f0] sm:$0xff]  ;;  %v10026_v30 = vcombine.low %v927_v12, %v935_v61  ;;  %v984_v12 = vld [vmem:[#allocation7 + $0x11f8] sm:$0xff] }
 0x466   :  { %v10043_v39 = vcombine.high %v943_v40, %v951_v10  ;;  %v10042_v7 = vcombine.low %v943_v40, %v951_v10 }
 0x467   :  { %7739 = vmatpush1.bf16.msra.mxu0 %v9978_v55  ;;  %v959_v55 = vld [vmem:[#allocation7 + $0x1130] sm:$0xff] }
 0x468   :  { %7911 = vmatpush1.bf16.msra.mxu1 %v9980_v24  ;;  %7740 = vmatprep.subr.bf16.mxu0 %v9995_v2  ;;  %v967_v24 = vld [vmem:[#allocation7 + $0x1170] sm:$0xff]  ;;  %v10045_v2 = vcombine.high %v944_v54, %v952_v56 }
 0x469   :  { %7912 = vmatprep.subr.bf16.mxu1 %v9997_v63  ;;  %v960_v63 = vld [vmem:[#allocation7 + $0x1138] sm:$0xff]  ;;  %v10059_v23 = vcombine.high %v959_v55, %v967_v24  ;;  %v10058_v61 = vcombine.low %v959_v55, %v967_v24  ;;  %v1007_v54 = vld [vmem:[#allocation7 + $0x12b0] sm:$0xff] }
 0x46a   :  { %v1015_v56 = vld [vmem:[#allocation7 + $0x12f0] sm:$0xff] }
 0x46b   :  { %7741 = vmatpush1.bf16.msra.mxu0 %v9994_v8  ;;  %v10061_v8 = vcombine.high %v960_v63, %v968_v4 }
 0x46c   :  { %7913 = vmatpush1.bf16.msra.mxu1 %v9996_v5  ;;  %7742 = vmatprep.subr.bf16.mxu0 %v10011_v25  ;;  %v975_v5 = vld [vmem:[#allocation7 + $0x11b0] sm:$0xff] }
 0x46d   :  { %7914 = vmatprep.subr.bf16.mxu1 %v10013_v11  ;;  %v983_v25 = vld [vmem:[#allocation7 + $0x11f0] sm:$0xff]  ;;  %v976_v11 = vld [vmem:[#allocation7 + $0x11b8] sm:$0xff] }
 0x46e   :  { %v10075_v0 = vcombine.high %v975_v5, %v983_v25  ;;  %v10077_v1 = vcombine.high %v976_v11, %v984_v12  ;;  %v10076_v40 = vcombine.low %v976_v11, %v984_v12  ;;  %v1039_v12 = vld [vmem:[#allocation7 + $0x13b0] sm:$0xff] }
 0x46f   :  { %7743 = vmatpush1.bf16.msra.mxu0 %v10010_v38  ;;  %v991_v38 = vld [vmem:[#allocation7 + $0x1230] sm:$0xff] }
 0x470   :  { %7915 = vmatpush1.bf16.msra.mxu1 %v10012_v44  ;;  %7755 = vmatprep.subr.bf16.mxu0 %v10027_v3  ;;  %v999_v44 = vld [vmem:[#allocation7 + $0x1270] sm:$0xff]  ;;  %v992_v3 = vld [vmem:[#allocation7 + $0x1238] sm:$0xff] }
 0x471   :  { %7927 = vmatprep.subr.bf16.mxu1 %v10029_v13  ;;  %v1000_v13 = vld [vmem:[#allocation7 + $0x1278] sm:$0xff]  ;;  %v10091_v10 = vcombine.high %v991_v38, %v999_v44  ;;  %v10090_v55 = vcombine.low %v991_v38, %v999_v44 }
 0x472   :  { %7745 = vmatmul.mubr.bf16.vlgmr.msra.gmra.mrb[20].mxu0 %v11388_v20  ;;  %v10092_v24 = vcombine.low %v992_v3, %v1000_v13 }
 0x473   :  { %7917 = vmatmul.mubr.bf16.vlgmr.msra.gmra.mrb[20].mxu1 %v11388_v20  ;;  %7756 = vmatpush1.bf16.msra.mxu0 %v10026_v30  ;;  %v10060_v20 = vcombine.low %v960_v63, %v968_v4  ;;  %v10093_v30 = vcombine.high %v992_v3, %v1000_v13  ;;  %v1023_v4 = vld [vmem:[#allocation7 + $0x1330] sm:$0xff] }
 0x474   :  { %7787 = vmatprep.mubr.bf16.mxu0 %v11400_v51  ;;  %7928 = vmatpush1.bf16.msra.mxu1 %v10028_v14  ;;  %v1008_v14 = vld [vmem:[#allocation7 + $0x12b8] sm:$0xff]  ;;  %v1055_v13 = vld [vmem:[#allocation7 + $0x1430] sm:$0xff] }
 0x475   :  { %7959 = vmatprep.mubr.bf16.mxu1 %v11400_v51  ;;  %7757 = vmatprep.subr.bf16.mxu0 %v10043_v39  ;;  %v10074_v51 = vcombine.low %v975_v5, %v983_v25  ;;  %v1016_v39 = vld [vmem:[#allocation7 + $0x12f8] sm:$0xff] }
 0x476   :  { %7929 = vmatprep.subr.bf16.mxu1 %v10045_v2  ;;  %v10107_v2 = vcombine.high %v1007_v54, %v1015_v56  ;;  %v10109_v63 = vcombine.high %v1008_v14, %v1016_v39  ;;  %v10108_v5 = vcombine.low %v1008_v14, %v1016_v39  ;;  %v1071_v39 = vld [vmem:[#allocation7 + $0x14b0] sm:$0xff] }
 0x477   :  { %7758 = vmatpush1.bf16.msra.mxu0 %v10042_v7  ;;  %v1031_v7 = vld [vmem:[#allocation7 + $0x1370] sm:$0xff] }
 0x478   :  { %7930 = vmatpush1.bf16.msra.mxu1 %v10044_v6  ;;  %7759 = vmatprep.subr.bf16.mxu0 %v10059_v23  ;;  %v1024_v6 = vld [vmem:[#allocation7 + $0x1338] sm:$0xff]  ;;  %v10123_v25 = vcombine.high %v1023_v4, %v1031_v7 }
 0x479   :  { %7931 = vmatprep.subr.bf16.mxu1 %v10061_v8  ;;  %v1032_v23 = vld [vmem:[#allocation7 + $0x1378] sm:$0xff]  ;;  %v10106_v8 = vcombine.low %v1007_v54, %v1015_v56 }
 0x47a   :  { %v10125_v11 = vcombine.high %v1024_v6, %v1032_v23  ;;  %v10124_v38 = vcombine.low %v1024_v6, %v1032_v23  ;;  %v1087_v23 = vld [vmem:[#allocation7 + $0x1530] sm:$0xff] }
 0x47b   :  { %7760 = vmatpush1.bf16.msra.mxu0 %v10058_v61  ;;  %v1047_v61 = vld [vmem:[#allocation7 + $0x13f0] sm:$0xff] }
 0x47c   :  { %7932 = vmatpush1.bf16.msra.mxu1 %v10060_v20  ;;  %7761 = vmatprep.subr.bf16.mxu0 %v10075_v0  ;;  %v1040_v20 = vld [vmem:[#allocation7 + $0x13b8] sm:$0xff]  ;;  %v10139_v44 = vcombine.high %v1039_v12, %v1047_v61 }
 0x47d   :  { %7933 = vmatprep.subr.bf16.mxu1 %v10077_v1  ;;  %v1048_v0 = vld [vmem:[#allocation7 + $0x13f8] sm:$0xff]  ;;  %v10122_v1 = vcombine.low %v1023_v4, %v1031_v7 }
 0x47e   :  { %v10141_v3 = vcombine.high %v1040_v20, %v1048_v0  ;;  %v10140_v54 = vcombine.low %v1040_v20, %v1048_v0  ;;  %v1103_v0 = vld [vmem:[#allocation7 + $0x15b0] sm:$0xff] }
 0x47f   :  { %7762 = vmatpush1.bf16.msra.mxu0 %v10074_v51  ;;  %v1063_v51 = vld [vmem:[#allocation7 + $0x1470] sm:$0xff] }
 0x480   :  { %7934 = vmatpush1.bf16.msra.mxu1 %v10076_v40  ;;  %7763 = vmatprep.subr.bf16.mxu0 %v10091_v10  ;;  %v1056_v40 = vld [vmem:[#allocation7 + $0x1438] sm:$0xff]  ;;  %v10155_v56 = vcombine.high %v1055_v13, %v1063_v51 }
 0x481   :  { %7935 = vmatprep.subr.bf16.mxu1 %v10093_v30  ;;  %v1064_v10 = vld [vmem:[#allocation7 + $0x1478] sm:$0xff]  ;;  %v10138_v30 = vcombine.low %v1039_v12, %v1047_v61 }
 0x482   :  { %v10157_v14 = vcombine.high %v1056_v40, %v1064_v10  ;;  %v10156_v4 = vcombine.low %v1056_v40, %v1064_v10  ;;  %v1119_v10 = vld [vmem:[#allocation7 + $0x1630] sm:$0xff] }
 0x483   :  { %7764 = vmatpush1.bf16.msra.mxu0 %v10090_v55  ;;  %v1079_v55 = vld [vmem:[#allocation7 + $0x14f0] sm:$0xff] }
 0x484   :  { %7936 = vmatpush1.bf16.msra.mxu1 %v10092_v24  ;;  %7765 = vmatprep.subr.bf16.mxu0 %v10107_v2  ;;  %v1072_v24 = vld [vmem:[#allocation7 + $0x14b8] sm:$0xff]  ;;  %v10171_v7 = vcombine.high %v1071_v39, %v1079_v55 }
 0x485   :  { %7937 = vmatprep.subr.bf16.mxu1 %v10109_v63  ;;  %v1080_v2 = vld [vmem:[#allocation7 + $0x14f8] sm:$0xff]  ;;  %v10154_v63 = vcombine.low %v1055_v13, %v1063_v51 }
 0x486   :  { %v10173_v6 = vcombine.high %v1072_v24, %v1080_v2  ;;  %v10172_v12 = vcombine.low %v1072_v24, %v1080_v2  ;;  %v1135_v2 = vld [vmem:[#allocation7 + $0x16b0] sm:$0xff] }
 0x487   :  { %7766 = vmatpush1.bf16.msra.mxu0 %v10106_v8  ;;  %v1095_v8 = vld [vmem:[#allocation7 + $0x1570] sm:$0xff] }
 0x488   :  { %7938 = vmatpush1.bf16.msra.mxu1 %v10108_v5  ;;  %7767 = vmatprep.subr.bf16.mxu0 %v10123_v25  ;;  %v1088_v5 = vld [vmem:[#allocation7 + $0x1538] sm:$0xff]  ;;  %v10187_v61 = vcombine.high %v1087_v23, %v1095_v8 }
 0x489   :  { %7939 = vmatprep.subr.bf16.mxu1 %v10125_v11  ;;  %v1096_v25 = vld [vmem:[#allocation7 + $0x1578] sm:$0xff]  ;;  %v10170_v11 = vcombine.low %v1071_v39, %v1079_v55 }
 0x48a   :  { %v10189_v20 = vcombine.high %v1088_v5, %v1096_v25  ;;  %v10188_v13 = vcombine.low %v1088_v5, %v1096_v25  ;;  %v1151_v25 = vld [vmem:[#allocation7 + $0x1730] sm:$0xff] }
 0x48b   :  { %7768 = vmatpush1.bf16.msra.mxu0 %v10122_v1  ;;  %v1111_v1 = vld [vmem:[#allocation7 + $0x15f0] sm:$0xff] }
 0x48c   :  { %7940 = vmatpush1.bf16.msra.mxu1 %v10124_v38  ;;  %7769 = vmatprep.subr.bf16.mxu0 %v10139_v44  ;;  %v1104_v38 = vld [vmem:[#allocation7 + $0x15b8] sm:$0xff]  ;;  %v10203_v51 = vcombine.high %v1103_v0, %v1111_v1 }
 0x48d   :  { %7941 = vmatprep.subr.bf16.mxu1 %v10141_v3  ;;  %v1112_v44 = vld [vmem:[#allocation7 + $0x15f8] sm:$0xff]  ;;  %v10186_v3 = vcombine.low %v1087_v23, %v1095_v8 }
 0x48e   :  { %v10205_v40 = vcombine.high %v1104_v38, %v1112_v44  ;;  %v10204_v39 = vcombine.low %v1104_v38, %v1112_v44  ;;  %v1167_v44 = vld [vmem:[#allocation7 + $0x17b0] sm:$0xff] }
 0x48f   :  { %7770 = vmatpush1.bf16.msra.mxu0 %v10138_v30  ;;  %v1127_v30 = vld [vmem:[#allocation7 + $0x1670] sm:$0xff] }
 0x490   :  { %7942 = vmatpush1.bf16.msra.mxu1 %v10140_v54  ;;  %7771 = vmatprep.subr.bf16.mxu0 %v10155_v56  ;;  %v1120_v54 = vld [vmem:[#allocation7 + $0x1638] sm:$0xff]  ;;  %v10219_v55 = vcombine.high %v1119_v10, %v1127_v30 }
 0x491   :  { %7943 = vmatprep.subr.bf16.mxu1 %v10157_v14  ;;  %v1128_v56 = vld [vmem:[#allocation7 + $0x1678] sm:$0xff]  ;;  %v10202_v14 = vcombine.low %v1103_v0, %v1111_v1 }
 0x492   :  { %v10221_v24 = vcombine.high %v1120_v54, %v1128_v56  ;;  %v10220_v23 = vcombine.low %v1120_v54, %v1128_v56  ;;  %v1183_v56 = vld [vmem:[#allocation7 + $0x1830] sm:$0xff] }
 0x493   :  { %7772 = vmatpush1.bf16.msra.mxu0 %v10154_v63  ;;  %v1143_v63 = vld [vmem:[#allocation7 + $0x16f0] sm:$0xff] }
 0x494   :  { %7944 = vmatpush1.bf16.msra.mxu1 %v10156_v4  ;;  %7773 = vmatprep.subr.bf16.mxu0 %v10171_v7  ;;  %v1136_v4 = vld [vmem:[#allocation7 + $0x16b8] sm:$0xff]  ;;  %v10235_v8 = vcombine.high %v1135_v2, %v1143_v63 }
 0x495   :  { %7945 = vmatprep.subr.bf16.mxu1 %v10173_v6  ;;  %v1144_v7 = vld [vmem:[#allocation7 + $0x16f8] sm:$0xff]  ;;  %v10218_v6 = vcombine.low %v1119_v10, %v1127_v30 }
 0x496   :  { %v10237_v5 = vcombine.high %v1136_v4, %v1144_v7  ;;  %v10236_v0 = vcombine.low %v1136_v4, %v1144_v7  ;;  %v1199_v7 = vld [vmem:[#allocation7 + $0x18b0] sm:$0xff] }
 0x497   :  { %7774 = vmatpush1.bf16.msra.mxu0 %v10170_v11  ;;  %v1159_v11 = vld [vmem:[#allocation7 + $0x1770] sm:$0xff] }
 0x498   :  { %7946 = vmatpush1.bf16.msra.mxu1 %v10172_v12  ;;  %7775 = vmatprep.subr.bf16.mxu0 %v10187_v61  ;;  %v1152_v12 = vld [vmem:[#allocation7 + $0x1738] sm:$0xff]  ;;  %v10251_v1 = vcombine.high %v1151_v25, %v1159_v11 }
 0x499   :  { %7947 = vmatprep.subr.bf16.mxu1 %v10189_v20  ;;  %v1160_v61 = vld [vmem:[#allocation7 + $0x1778] sm:$0xff]  ;;  %v10234_v20 = vcombine.low %v1135_v2, %v1143_v63 }
 0x49a   :  { %v10253_v38 = vcombine.high %v1152_v12, %v1160_v61  ;;  %v10252_v10 = vcombine.low %v1152_v12, %v1160_v61  ;;  %v1215_v12 = vld [vmem:[#allocation7 + $0x1930] sm:$0xff] }
 0x49b   :  { %7776 = vmatpush1.bf16.msra.mxu0 %v10186_v3  ;;  %v1175_v3 = vld [vmem:[#allocation7 + $0x17f0] sm:$0xff] }
 0x49c   :  { %7948 = vmatpush1.bf16.msra.mxu1 %v10188_v13  ;;  %7777 = vmatprep.subr.bf16.mxu0 %v10203_v51  ;;  %v1168_v13 = vld [vmem:[#allocation7 + $0x17b8] sm:$0xff]  ;;  %v10267_v30 = vcombine.high %v1167_v44, %v1175_v3  ;;  %v1223_v61 = vld [vmem:[#allocation7 + $0x1970] sm:$0xff] }
 0x49d   :  { %7949 = vmatprep.subr.bf16.mxu1 %v10205_v40  ;;  %v1176_v51 = vld [vmem:[#allocation7 + $0x17f8] sm:$0xff]  ;;  %v10250_v40 = vcombine.low %v1151_v25, %v1159_v11 }
 0x49e   :  { %v10269_v54 = vcombine.high %v1168_v13, %v1176_v51  ;;  %v10268_v2 = vcombine.low %v1168_v13, %v1176_v51  ;;  %v1231_v51 = vld [vmem:[#allocation7 + $0x19b0] sm:$0xff] }
 0x49f   :  { %7778 = vmatpush1.bf16.msra.mxu0 %v10202_v14  ;;  %v1191_v14 = vld [vmem:[#allocation7 + $0x1870] sm:$0xff] }
 0x4a0   :  { %7950 = vmatpush1.bf16.msra.mxu1 %v10204_v39  ;;  %7779 = vmatprep.subr.bf16.mxu0 %v10219_v55  ;;  %v1184_v39 = vld [vmem:[#allocation7 + $0x1838] sm:$0xff]  ;;  %v10283_v63 = vcombine.high %v1183_v56, %v1191_v14 }
 0x4a1   :  { %7951 = vmatprep.subr.bf16.mxu1 %v10221_v24  ;;  %v1192_v55 = vld [vmem:[#allocation7 + $0x1878] sm:$0xff]  ;;  %v10266_v24 = vcombine.low %v1167_v44, %v1175_v3  ;;  %v10315_v3 = vcombine.high %v1215_v12, %v1223_v61 }
 0x4a2   :  { %v10285_v4 = vcombine.high %v1184_v39, %v1192_v55  ;;  %v10284_v25 = vcombine.low %v1184_v39, %v1192_v55  ;;  %v1247_v39 = vld [vmem:[#allocation7 + $0x1a30] sm:$0xff] }
 0x4a3   :  { %7780 = vmatpush1.bf16.msra.mxu0 %v10218_v6  ;;  %v1207_v6 = vld [vmem:[#allocation7 + $0x18f0] sm:$0xff] }
 0x4a4   :  { %7952 = vmatpush1.bf16.msra.mxu1 %v10220_v23  ;;  %7781 = vmatprep.subr.bf16.mxu0 %v10235_v8  ;;  %v10282_v23 = vcombine.low %v1183_v56, %v1191_v14  ;;  %v1200_v8 = vld [vmem:[#allocation7 + $0x18b8] sm:$0xff]  ;;  %v10299_v11 = vcombine.high %v1199_v7, %v1207_v6  ;;  %v1255_v55 = vld [vmem:[#allocation7 + $0x1a70] sm:$0xff] }
 0x4a5   :  { %7953 = vmatprep.subr.bf16.mxu1 %v10237_v5  ;;  %v1208_v5 = vld [vmem:[#allocation7 + $0x18f8] sm:$0xff] }
 0x4a6   :  { %v10300_v44 = vcombine.low %v1200_v8, %v1208_v5 }
 0x4a7   :  { %7782 = vmatpush1.bf16.msra.mxu0 %v10234_v20  ;;  %v10301_v20 = vcombine.high %v1200_v8, %v1208_v5  ;;  %v1264_v8 = vld [vmem:[#allocation7 + $0x1ab8] sm:$0xff] }
 0x4a8   :  { %7954 = vmatpush1.bf16.msra.mxu1 %v10236_v0  ;;  %7783 = vmatprep.subr.bf16.mxu0 %v10251_v1  ;;  %v1216_v0 = vld [vmem:[#allocation7 + $0x1938] sm:$0xff] }
 0x4a9   :  { %7955 = vmatprep.subr.bf16.mxu1 %v10253_v38  ;;  %v1224_v1 = vld [vmem:[#allocation7 + $0x1978] sm:$0xff]  ;;  %v10298_v38 = vcombine.low %v1199_v7, %v1207_v6  ;;  %v1263_v6 = vld [vmem:[#allocation7 + $0x1ab0] sm:$0xff] }
 0x4aa   :  { %v10317_v13 = vcombine.high %v1216_v0, %v1224_v1  ;;  %v1272_v5 = vld [vmem:[#allocation7 + $0x1af8] sm:$0xff] }
 0x4ab   :  { %7784 = vmatpush1.bf16.msra.mxu0 %v10250_v40  ;;  %v1239_v40 = vld [vmem:[#allocation7 + $0x19f0] sm:$0xff] }
 0x4ac   :  { %7956 = vmatpush1.bf16.msra.mxu1 %v10252_v10  ;;  %7785 = vmatprep.subr.bf16.mxu0 %v10267_v30  ;;  %v1232_v10 = vld [vmem:[#allocation7 + $0x19b8] sm:$0xff]  ;;  %v10331_v56 = vcombine.high %v1231_v51, %v1239_v40 }
 0x4ad   :  { %7957 = vmatprep.subr.bf16.mxu1 %v10269_v54  ;;  %v1240_v30 = vld [vmem:[#allocation7 + $0x19f8] sm:$0xff]  ;;  %v10314_v54 = vcombine.low %v1215_v12, %v1223_v61  ;;  %v11528_v61 = vld [vmem:[#allocation8 + $0x8] sm:$0xff] }
 0x4ae   :  { %v10333_v14 = vcombine.high %v1232_v10, %v1240_v30 }
 0x4af   :  { %7786 = vmatpush1.bf16.msra.mxu0 %v10266_v24  ;;  %v1248_v24 = vld [vmem:[#allocation7 + $0x1a38] sm:$0xff] }
 0x4b0   :  { %7958 = vmatpush1.bf16.msra.mxu1 %v10268_v2  ;;  %7798 = vmatprep.subr.bf16.mxu0 %v10283_v63  ;;  %v1256_v2 = vld [vmem:[#allocation7 + $0x1a78] sm:$0xff]  ;;  %v10332_v63 = vcombine.low %v1232_v10, %v1240_v30  ;;  %v1295_v10 = vld [vmem:[#allocation7 + $0x1bb0] sm:$0xff] }
 0x4b1   :  { %7970 = vmatprep.subr.bf16.mxu1 %v10285_v4  ;;  %v10347_v4 = vcombine.high %v1247_v39, %v1255_v55  ;;  %v10349_v7 = vcombine.high %v1248_v24, %v1256_v2  ;;  %v1303_v30 = vld [vmem:[#allocation7 + $0x1bf0] sm:$0xff] }
 0x4b2   :  { %7788 = vmatmul.mubr.bf16.vlgmr.msra.gmra.mrb[20].mxu0 %v11398_v41 }
 0x4b3   :  { %7960 = vmatmul.mubr.bf16.vlgmr.msra.gmra.mrb[20].mxu1 %v11398_v41  ;;  %7799 = vmatpush1.bf16.msra.mxu0 %v10282_v23  ;;  %v10316_v41 = vcombine.low %v1216_v0, %v1224_v1  ;;  %v1271_v23 = vld [vmem:[#allocation7 + $0x1af0] sm:$0xff] }
 0x4b4   :  { %7830 = vmatprep.mubr.bf16.mxu0 %v11414_v48  ;;  %7971 = vmatpush1.bf16.msra.mxu1 %v10284_v25  ;;  %v10346_v25 = vcombine.low %v1247_v39, %v1255_v55  ;;  %v10363_v12 = vcombine.high %v1263_v6, %v1271_v23  ;;  %v1279_v0 = vld [vmem:[#allocation7 + $0x1b30] sm:$0xff]  ;;  %v1296_v39 = vld [vmem:[#allocation7 + $0x1bb8] sm:$0xff] }
 0x4b5   :  { %8002 = vmatprep.mubr.bf16.mxu1 %v11414_v48  ;;  %7800 = vmatprep.subr.bf16.mxu0 %v10299_v11  ;;  %v10330_v48 = vcombine.low %v1231_v51, %v1239_v40  ;;  %v10348_v11 = vcombine.low %v1248_v24, %v1256_v2  ;;  %v1287_v1 = vld [vmem:[#allocation7 + $0x1b70] sm:$0xff]  ;;  %v10364_v51 = vcombine.low %v1264_v8, %v1272_v5  ;;  %v1304_v55 = vld [vmem:[#allocation7 + $0x1bf8] sm:$0xff] }
 0x4b6   :  { %7972 = vmatprep.subr.bf16.mxu1 %v10301_v20  ;;  %v10365_v20 = vcombine.high %v1264_v8, %v1272_v5  ;;  %v10379_v40 = vcombine.high %v1279_v0, %v1287_v1  ;;  %v10397_v5 = vcombine.high %v1296_v39, %v1304_v55 }
 0x4b7   :  { %7801 = vmatpush1.bf16.msra.mxu0 %v10298_v38  ;;  %v1280_v38 = vld [vmem:[#allocation7 + $0x1b38] sm:$0xff] }
 0x4b8   :  { %7973 = vmatpush1.bf16.msra.mxu1 %v10300_v44  ;;  %7802 = vmatprep.subr.bf16.mxu0 %v10315_v3  ;;  %v1288_v44 = vld [vmem:[#allocation7 + $0x1b78] sm:$0xff]  ;;  %v10362_v3 = vcombine.low %v1263_v6, %v1271_v23  ;;  %v10395_v6 = vcombine.high %v1295_v10, %v1303_v30 }
 0x4b9   :  { %7974 = vmatprep.subr.bf16.mxu1 %v10317_v13  ;;  %v1472_v13 = vrot.slane %v11528_v61, %v11353_v46  ;;  %v1484_v46 = vrot.slane %v11528_v61, %v11364_v50 }
 0x4bb   :  { %7803 = vmatpush1.bf16.msra.mxu0 %v10314_v54 }
 0x4bc   :  { %7975 = vmatpush1.bf16.msra.mxu1 %v10316_v41  ;;  %7804 = vmatprep.subr.bf16.mxu0 %v10331_v56  ;;  %v1480_v41 = vrot.slane %v11528_v61, %v11356_v47  ;;  %v1476_v56 = vrot.slane %v11528_v61, %v11361_v49 }
 0x4bd   :  { %7976 = vmatprep.subr.bf16.mxu1 %v10333_v14  ;;  %v10381_v14 = vcombine.high %v1280_v38, %v1288_v44 }
 0x4bf   :  { %7805 = vmatpush1.bf16.msra.mxu0 %v10330_v48 }
 0x4c0   :  { %7977 = vmatpush1.bf16.msra.mxu1 %v10332_v63  ;;  %7806 = vmatprep.subr.bf16.mxu0 %v10347_v4  ;;  %v10378_v4 = vcombine.low %v1279_v0, %v1287_v1  ;;  %v1311_v0 = vld [vmem:[#allocation7 + $0x1c30] sm:$0xff] }
 0x4c1   :  { %7978 = vmatprep.subr.bf16.mxu1 %v10349_v7  ;;  %v10380_v7 = vcombine.low %v1280_v38, %v1288_v44  ;;  %v1319_v1 = vld [vmem:[#allocation7 + $0x1c70] sm:$0xff] }
 0x4c3   :  { %7807 = vmatpush1.bf16.msra.mxu0 %v10346_v25 }
 0x4c4   :  { %7979 = vmatpush1.bf16.msra.mxu1 %v10348_v11  ;;  %7808 = vmatprep.subr.bf16.mxu0 %v10363_v12 }
 0x4c5   :  { %v7488_v54 = vpop.f32.mrb[16].mxu0  ;;  %7980 = vmatprep.subr.bf16.mxu1 %v10365_v20 }
 0x4c6   :  { %v7660_v24 = vpop.f32.mrb[16].mxu1  ;;  %v7490_v2 = vpop.f32.mrb[17].mxu0  ;;  %v11538_v23 = vadd.f32 %v7488_v54, %v1472_v13 }
 0x4c7   :  { %v7662_v48 = vpop.f32.mrb[17].mxu1  ;;  %v7492_v63 = vpop.f32.mrb[18].mxu0  ;;  %7809 = vmatpush1.bf16.msra.mxu0 %v10362_v3  ;;  %v11542_v25 = vadd.f32 %v7660_v24, %v1480_v41  ;;  %v11544_v11 = vadd.f32 %v7490_v2, %v1476_v56  ;;  %v10411_v24 = vcombine.high %v1311_v0, %v1319_v1 }
 0x4c8   :  { %v11540_v47 = vadd.f32 %v7492_v63, %v1472_v13  ;;  %v7664_v49 = vpop.f32.mrb[18].mxu1  ;;  %7981 = vmatpush1.bf16.msra.mxu1 %v10364_v51  ;;  %v7494_v8 = vpop.f32.mrb[19].mxu0  ;;  %7810 = vmatprep.subr.bf16.mxu0 %v10379_v40  ;;  %v11550_v38 = vadd.f32 %v7662_v48, %v1484_v46  ;;  %v1312_v13 = vld [vmem:[#allocation7 + $0x1c38] sm:$0xff]  ;;  %v1335_v48 = vld [vmem:[#allocation7 + $0x1cf0] sm:$0xff] }
 0x4c9   :  { %v11546_v50 = vadd.f32 %v7664_v49, %v1480_v41  ;;  %v11548_v12 = vadd.f32 %v7494_v8, %v1476_v56  ;;  %v7666_v20 = vpop.f32.mrb[19].mxu1  ;;  %7982 = vmatprep.subr.bf16.mxu1 %v10381_v14  ;;  %v1320_v51 = vld [vmem:[#allocation7 + $0x1c78] sm:$0xff]  ;;  %v10394_v41 = vcombine.low %v1295_v10, %v1303_v30  ;;  %v10396_v14 = vcombine.low %v1296_v39, %v1304_v55  ;;  %v1343_v30 = vld [vmem:[#allocation7 + $0x1d30] sm:$0xff] }
 0x4ca   :  { %v11554_v3 = vadd.f32 %v7666_v20, %v1484_v46  ;;  %v10413_v2 = vcombine.high %v1312_v13, %v1320_v51  ;;  %v1327_v46 = vld [vmem:[#allocation7 + $0x1cb0] sm:$0xff]  ;;  %v1328_v63 = vld [vmem:[#allocation7 + $0x1cb8] sm:$0xff]  ;;  %v10410_v8 = vcombine.low %v1311_v0, %v1319_v1  ;;  %v10412_v20 = vcombine.low %v1312_v13, %v1320_v51 }
 0x4cb   :  { %v8022_v54 = vpack.c.bf16 %v11548_v12, %v11544_v11  ;;  %7811 = vmatpush1.bf16.msra.mxu0 %v10378_v4  ;;  %v1336_v49 = vld [vmem:[#allocation7 + $0x1cf8] sm:$0xff]  ;;  %v10427_v4 = vcombine.high %v1327_v46, %v1335_v48  ;;  %v1351_v40 = vld [vmem:[#allocation7 + $0x1d70] sm:$0xff]  ;;  %v10426_v39 = vcombine.low %v1327_v46, %v1335_v48 }
 0x4cc   :  { %v8024_v56 = vpack.c.bf16 %v11554_v3, %v11550_v38  ;;  %7983 = vmatpush1.bf16.msra.mxu1 %v10380_v7  ;;  %7812 = vmatprep.subr.bf16.mxu0 %v10395_v6  ;;  %v10429_v10 = vcombine.high %v1328_v63, %v1336_v49  ;;  %v1344_v7 = vld [vmem:[#allocation7 + $0x1d38] sm:$0xff]  ;;  %v10428_v55 = vcombine.low %v1328_v63, %v1336_v49  ;;  %v1367_v0 = vld [vmem:[#allocation7 + $0x1df0] sm:$0xff] }
 0x4cd   :  { %7984 = vmatprep.subr.bf16.mxu1 %v10397_v5  ;;  %v1352_v6 = vld [vmem:[#allocation7 + $0x1d78] sm:$0xff]  ;;  %v10443_v5 = vcombine.high %v1343_v30, %v1351_v40  ;;  %v10442_v13 = vcombine.low %v1343_v30, %v1351_v40  ;;  %v1383_v46 = vld [vmem:[#allocation7 + $0x1e70] sm:$0xff] }
 0x4ce   :  { %v10445_v44 = vcombine.high %v1344_v7, %v1352_v6  ;;  %v1360_v1 = vld [vmem:[#allocation7 + $0x1db8] sm:$0xff]  ;;  %v10444_v51 = vcombine.low %v1344_v7, %v1352_v6  ;;  %v1399_v40 = vld [vmem:[#allocation7 + $0x1ef0] sm:$0xff] }
 0x4cf   :  { %7813 = vmatpush1.bf16.msra.mxu0 %v10394_v41  ;;  %v1359_v41 = vld [vmem:[#allocation7 + $0x1db0] sm:$0xff]  ;;  %v1376_v48 = vld [vmem:[#allocation7 + $0x1e38] sm:$0xff] }
 0x4d0   :  { %7985 = vmatpush1.bf16.msra.mxu1 %v10396_v14  ;;  %7814 = vmatprep.subr.bf16.mxu0 %v10411_v24  ;;  %v1368_v14 = vld [vmem:[#allocation7 + $0x1df8] sm:$0xff]  ;;  %v10459_v24 = vcombine.high %v1359_v41, %v1367_v0  ;;  %v10458_v63 = vcombine.low %v1359_v41, %v1367_v0  ;;  %v1415_v41 = vld [vmem:[#allocation7 + $0x1f70] sm:$0xff] }
 0x4d1   :  { %7986 = vmatprep.subr.bf16.mxu1 %v10413_v2  ;;  %v10461_v2 = vcombine.high %v1360_v1, %v1368_v14  ;;  %v10460_v49 = vcombine.low %v1360_v1, %v1368_v14  ;;  %v1392_v30 = vld [vmem:[#allocation7 + $0x1eb8] sm:$0xff]  ;;  %v11050_v11 = vld [vmem:[%s12023_s6 + $0x2d8] sm:$0xff]  }
 0x4d2   :  { %v1408_v0 = vld [vmem:[#allocation7 + $0x1f38] sm:$0xff]  ;;  %v11051_v12 = vld [vmem:[%s12023_s6 + $0x218] sm:$0xff]  }
 0x4d3   :  { %7815 = vmatpush1.bf16.msra.mxu0 %v10410_v8  ;;  %v1375_v8 = vld [vmem:[#allocation7 + $0x1e30] sm:$0xff]  ;;  %v11053_v3 = vld [vmem:[%s12023_s6 + $0x260] sm:$0xff]  }
 0x4d4   :  { %7987 = vmatpush1.bf16.msra.mxu1 %v10412_v20  ;;  %7816 = vmatprep.subr.bf16.mxu0 %v10427_v4  ;;  %v1384_v20 = vld [vmem:[#allocation7 + $0x1e78] sm:$0xff]  ;;  %v10475_v4 = vcombine.high %v1375_v8, %v1383_v46  ;;  %v10474_v7 = vcombine.low %v1375_v8, %v1383_v46  ;;  %v1431_v8 = vld [vmem:[#allocation7 + $0x1ff0] sm:$0xff] }
 0x4d5   :  { %7988 = vmatprep.subr.bf16.mxu1 %v10429_v10  ;;  %v10477_v10 = vcombine.high %v1376_v48, %v1384_v20  ;;  %v1424_v46 = vld [vmem:[#allocation7 + $0x1fb8] sm:$0xff]  ;;  %v11052_v38 = vld [vmem:[%s12023_s6 + $0x298] sm:$0xff]  }
 0x4d7   :  { %7817 = vmatpush1.bf16.msra.mxu0 %v10426_v39  ;;  %v1391_v39 = vld [vmem:[#allocation7 + $0x1eb0] sm:$0xff] }
 0x4d8   :  { %7989 = vmatpush1.bf16.msra.mxu1 %v10428_v55  ;;  %7818 = vmatprep.subr.bf16.mxu0 %v10443_v5  ;;  %v1400_v55 = vld [vmem:[#allocation7 + $0x1ef8] sm:$0xff]  ;;  %v10491_v6 = vcombine.high %v1391_v39, %v1399_v40  ;;  %v10490_v1 = vcombine.low %v1391_v39, %v1399_v40 }
 0x4d9   :  { %7990 = vmatprep.subr.bf16.mxu1 %v10445_v44  ;;  %v10476_v44 = vcombine.low %v1376_v48, %v1384_v20  ;;  %v10493_v5 = vcombine.high %v1392_v30, %v1400_v55  ;;  %v10492_v14 = vcombine.low %v1392_v30, %v1400_v55  ;;  %v10973_v30 = vld [vmem:[%s12023_s6 + $0x40] sm:$0xff]  }
 0x4da   :  { %v10974_v55 = vld [vmem:[%s12023_s6 + $0xc0] sm:$0xff]  }
 0x4db   :  { %7819 = vmatpush1.bf16.msra.mxu0 %v10442_v13  ;;  %v1407_v13 = vld [vmem:[#allocation7 + $0x1f30] sm:$0xff] }
 0x4dc   :  { %7991 = vmatpush1.bf16.msra.mxu1 %v10444_v51  ;;  %7820 = vmatprep.subr.bf16.mxu0 %v10459_v24  ;;  %v1416_v51 = vld [vmem:[#allocation7 + $0x1f78] sm:$0xff]  ;;  %v10507_v24 = vcombine.high %v1407_v13, %v1415_v41  ;;  %v10506_v48 = vcombine.low %v1407_v13, %v1415_v41  ;;  %v10979_v13 = vld [vmem:[%s12023_s6 + $0x8] sm:$0xff]  }
 0x4dd   :  { %7992 = vmatprep.subr.bf16.mxu1 %v10461_v2  ;;  %v10509_v2 = vcombine.high %v1408_v0, %v1416_v51  ;;  %v10508_v20 = vcombine.low %v1408_v0, %v1416_v51  ;;  %v10980_v41 = vld [vmem:[%s12023_s6 + $0x88] sm:$0xff]   ;;  %v10981_v0 = vld [vmem:[%s12023_s6 + $0x50] sm:$0xff]   ;;  %v10989_v51 = vld [vmem:[%s12023_s6 + $0x60] sm:$0xff]  }
 0x4df   :  { %7821 = vmatpush1.bf16.msra.mxu0 %v10458_v63  ;;  %v1423_v63 = vld [vmem:[#allocation7 + $0x1fb0] sm:$0xff] }
 0x4e0   :  { %7993 = vmatpush1.bf16.msra.mxu1 %v10460_v49  ;;  %7822 = vmatprep.subr.bf16.mxu0 %v10475_v4  ;;  %v1432_v49 = vld [vmem:[#allocation7 + $0x1ff8] sm:$0xff]  ;;  %v10523_v4 = vcombine.high %v1423_v63, %v1431_v8  ;;  %v10522_v39 = vcombine.low %v1423_v63, %v1431_v8  ;;  %v10994_v63 = vld [vmem:[%s12023_s6 + $0xe8] sm:$0xff]  }
 0x4e1   :  { %7994 = vmatprep.subr.bf16.mxu1 %v10477_v10  ;;  %v10525_v10 = vcombine.high %v1424_v46, %v1432_v49  ;;  %v10524_v40 = vcombine.low %v1424_v46, %v1432_v49  ;;  %v10995_v8 = vld [vmem:[%s12023_s6 + $0x28] sm:$0xff]   ;;  %v10997_v49 = vld [vmem:[%s12023_s6 + $0x70] sm:$0xff]  }
 0x4e2   :  { %v10996_v46 = vld [vmem:[%s12023_s6 + $0xa8] sm:$0xff]  }
 0x4e3   :  { %7823 = vmatpush1.bf16.msra.mxu0 %v10474_v7  ;;  %v10975_v7 = vld [vmem:[%s12023_s6] sm:$0xff]  }
 0x4e4   :  { %7995 = vmatpush1.bf16.msra.mxu1 %v10476_v44  ;;  %7824 = vmatprep.subr.bf16.mxu0 %v10491_v6  ;;  %v10976_v44 = vld [vmem:[%s12023_s6 + $0x80] sm:$0xff]   ;;  %v10977_v6 = vld [vmem:[%s12023_s6 + $0x48] sm:$0xff]  }
 0x4e5   :  { %7996 = vmatprep.subr.bf16.mxu1 %v10493_v5  ;;  %v10978_v5 = vld [vmem:[%s12023_s6 + $0xc8] sm:$0xff]  }
 0x4e7   :  { %7825 = vmatpush1.bf16.msra.mxu0 %v10490_v1  ;;  %v10990_v1 = vld [vmem:[%s12023_s6 + $0xe0] sm:$0xff]  }
 0x4e8   :  { %7997 = vmatpush1.bf16.msra.mxu1 %v10492_v14  ;;  %7826 = vmatprep.subr.bf16.mxu0 %v10507_v24  ;;  %v10991_v14 = vld [vmem:[%s12023_s6 + $0x20] sm:$0xff]  }
 0x4e9   :  { %7998 = vmatprep.subr.bf16.mxu1 %v10509_v2  ;;  %v10992_v24 = vld [vmem:[%s12023_s6 + $0xa0] sm:$0xff]   ;;  %v10993_v2 = vld [vmem:[%s12023_s6 + $0x68] sm:$0xff]  }
 0x4eb   :  { %7827 = vmatpush1.bf16.msra.mxu0 %v10506_v48  ;;  %v10998_v48 = vld [vmem:[%s12023_s6 + $0xf0] sm:$0xff]  }
 0x4ec   :  { %7999 = vmatpush1.bf16.msra.mxu1 %v10508_v20  ;;  %7828 = vmatprep.subr.bf16.mxu0 %v10523_v4  ;;  %v10999_v20 = vld [vmem:[%s12023_s6 + $0x30] sm:$0xff]  }
 0x4ed   :  { %8000 = vmatprep.subr.bf16.mxu1 %v10525_v10  ;;  %v11000_v4 = vld [vmem:[%s12023_s6 + $0xb0] sm:$0xff]   ;;  %v11001_v10 = vld [vmem:[%s12023_s6 + $0x78] sm:$0xff]  }
 0x4ef   :  { %7829 = vmatpush1.bf16.msra.mxu0 %v10522_v39  ;;  %v11002_v39 = vld [vmem:[%s12023_s6 + $0xf8] sm:$0xff]  }
 0x4f0   :  { %8001 = vmatpush1.bf16.msra.mxu1 %v10524_v40  ;;  %10657 = vmatprep.subr.bf16.mxu0 %v10973_v30  ;;  %v11003_v40 = vld [vmem:[%s12023_s6 + $0x38] sm:$0xff]  }
 0x4f1   :  { %10679 = vmatprep.subr.bf16.mxu1 %v10974_v55  ;;  %v11004_v30 = vld [vmem:[%s12023_s6 + $0xb8] sm:$0xff]   ;;  %v11005_v55 = vld [vmem:[%s12023_s6 + $0x140] sm:$0xff]  }
 0x4f2   :  { %7831 = vmatmul.mubr.bf16.vlgmr.msra.gmra.mrb[20].mxu0 %v11412_v52 }
 0x4f3   :  { %8003 = vmatmul.mubr.bf16.vlgmr.msra.gmra.mrb[20].mxu1 %v11412_v52  ;;  %10658 = vmatpush3.bf16.msra.mxu0 %v10975_v7  ;;  %v10982_v52 = vld [vmem:[%s12023_s6 + $0xd0] sm:$0xff]   ;;  %v11006_v7 = vld [vmem:[%s12023_s6 + $0x1c0] sm:$0xff]  }
 0x4f4   :  { %9092 = vmatprep.mubr.bf16.mxu0 %v8014_v35  ;;  %10680 = vmatpush3.bf16.msra.mxu1 %v10976_v44  ;;  %v10987_v35 = vld [vmem:[%s12023_s6 + $0x18] sm:$0xff]   ;;  %v11007_v44 = vld [vmem:[%s12023_s6 + $0x100] sm:$0xff]  }
 0x4f5   :  { %9133 = vmatprep.mubr.bf16.mxu1 %v8016_v36  ;;  %10659 = vmatprep.subr.bf16.mxu0 %v10977_v6  ;;  %v10988_v36 = vld [vmem:[%s12023_s6 + $0x98] sm:$0xff]   ;;  %v11008_v6 = vld [vmem:[%s12023_s6 + $0x180] sm:$0xff]  }
 0x4f6   :  { %10681 = vmatprep.subr.bf16.mxu1 %v10978_v5  ;;  %v11009_v5 = vld [vmem:[%s12023_s6 + $0x148] sm:$0xff]  }
 0x4f7   :  { %10660 = vmatpush3.bf16.msra.mxu0 %v10979_v13  ;;  %v11010_v13 = vld [vmem:[%s12023_s6 + $0x1c8] sm:$0xff]  }
 0x4f8   :  { %10682 = vmatpush3.bf16.msra.mxu1 %v10980_v41  ;;  %10661 = vmatprep.subr.bf16.mxu0 %v10981_v0  ;;  %v11011_v41 = vld [vmem:[%s12023_s6 + $0x108] sm:$0xff]   ;;  %v11024_v0 = vld [vmem:[%s12023_s6 + $0x1a0] sm:$0xff]  }
 0x4f9   :  { %10683 = vmatprep.subr.bf16.mxu1 %v10982_v52  ;;  %v11025_v52 = vld [vmem:[%s12023_s6 + $0x168] sm:$0xff]  }
 0x4fb   :  { %10662 = vmatpush3.bf16.msra.mxu0 %v10983_v26  ;;  %v11026_v26 = vld [vmem:[%s12023_s6 + $0x1e8] sm:$0xff]  }
 0x4fc   :  { %10684 = vmatpush3.bf16.msra.mxu1 %v10984_v28  ;;  %10663 = vmatprep.subr.bf16.mxu0 %v10985_v27  ;;  %v11027_v28 = vld [vmem:[%s12023_s6 + $0x128] sm:$0xff]  }
 0x4fd   :  { %10685 = vmatprep.subr.bf16.mxu1 %v10986_v29  ;;  %v11028_v27 = vld [vmem:[%s12023_s6 + $0x1a8] sm:$0xff]   ;;  %v11029_v29 = vld [vmem:[%s12023_s6 + $0x170] sm:$0xff]  }
 0x4ff   :  { %10664 = vmatpush3.bf16.msra.mxu0 %v10987_v35  ;;  %v11030_v35 = vld [vmem:[%s12023_s6 + $0x1f0] sm:$0xff]  }
 0x500   :  { %10686 = vmatpush3.bf16.msra.mxu1 %v10988_v36  ;;  %10665 = vmatprep.subr.bf16.mxu0 %v10989_v51  ;;  %v11031_v36 = vld [vmem:[%s12023_s6 + $0x130] sm:$0xff]  }
 0x501   :  { %10687 = vmatprep.subr.bf16.mxu1 %v10990_v1  ;;  %v11032_v51 = vld [vmem:[%s12023_s6 + $0x1b0] sm:$0xff]   ;;  %v11033_v1 = vld [vmem:[%s12023_s6 + $0x178] sm:$0xff]  }
 0x503   :  { %10666 = vmatpush3.bf16.msra.mxu0 %v10991_v14  ;;  %v11034_v14 = vld [vmem:[%s12023_s6 + $0x1f8] sm:$0xff]  }
 0x504   :  { %10688 = vmatpush3.bf16.msra.mxu1 %v10992_v24  ;;  %10667 = vmatprep.subr.bf16.mxu0 %v10993_v2  ;;  %v11035_v24 = vld [vmem:[%s12023_s6 + $0x138] sm:$0xff]  }
 0x505   :  { %10689 = vmatprep.subr.bf16.mxu1 %v10994_v63  ;;  %v11036_v2 = vld [vmem:[%s12023_s6 + $0x1b8] sm:$0xff]   ;;  %v11037_v63 = vld [vmem:[%s12023_s6 + $0x240] sm:$0xff]  }
 0x507   :  { %10668 = vmatpush3.bf16.msra.mxu0 %v10995_v8  ;;  %v11038_v8 = vld [vmem:[%s12023_s6 + $0x2c0] sm:$0xff]  }
 0x508   :  { %10690 = vmatpush3.bf16.msra.mxu1 %v10996_v46  ;;  %10669 = vmatprep.subr.bf16.mxu0 %v10997_v49  ;;  %v11039_v46 = vld [vmem:[%s12023_s6 + $0x200] sm:$0xff]  }
 0x509   :  { %10691 = vmatprep.subr.bf16.mxu1 %v10998_v48  ;;  %v11040_v49 = vld [vmem:[%s12023_s6 + $0x280] sm:$0xff]   ;;  %v11041_v48 = vld [vmem:[%s12023_s6 + $0x248] sm:$0xff]  }
 0x50b   :  { %10670 = vmatpush3.bf16.msra.mxu0 %v10999_v20  ;;  %v11042_v20 = vld [vmem:[%s12023_s6 + $0x2c8] sm:$0xff]  }
 0x50c   :  { %10692 = vmatpush3.bf16.msra.mxu1 %v11000_v4  ;;  %10671 = vmatprep.subr.bf16.mxu0 %v11001_v10  ;;  %v11043_v4 = vld [vmem:[%s12023_s6 + $0x208] sm:$0xff]   ;;  %v11056_v10 = vld [vmem:[%s12023_s6 + $0x2a0] sm:$0xff]  }
 0x50d   :  { %10693 = vmatprep.subr.bf16.mxu1 %v11002_v39  ;;  %v11057_v39 = vld [vmem:[%s12023_s6 + $0x268] sm:$0xff]  }
 0x50f   :  { %10672 = vmatpush3.bf16.msra.mxu0 %v11003_v40  ;;  %v11058_v40 = vld [vmem:[%s12023_s6 + $0x2e8] sm:$0xff]  }
 0x510   :  { %10694 = vmatpush3.bf16.msra.mxu1 %v11004_v30  ;;  %10701 = vmatprep.subr.bf16.mxu0 %v11005_v55  ;;  %v11059_v30 = vld [vmem:[%s12023_s6 + $0x228] sm:$0xff]  }
 0x511   :  { %10723 = vmatprep.subr.bf16.mxu1 %v11006_v7  ;;  %v11060_v55 = vld [vmem:[%s12023_s6 + $0x2a8] sm:$0xff]   ;;  %v11061_v7 = vld [vmem:[%s12023_s6 + $0x270] sm:$0xff]  }
 0x512   :  { %9093 = vmatmul.mubr.bf16.vlgmr.msra.gmra.mrb[24].mxu0 %v8013_v32  ;;  %v11016_v32 = vld [vmem:[%s12023_s6 + $0x190] sm:$0xff]  }
 0x513   :  { %9134 = vmatmul.mubr.bf16.vlgmr.msra.gmra.mrb[24].mxu1 %v8015_v45  ;;  %10702 = vmatpush3.bf16.msra.mxu0 %v11007_v44  ;;  %v11017_v45 = vld [vmem:[%s12023_s6 + $0x158] sm:$0xff]   ;;  %v11062_v44 = vld [vmem:[%s12023_s6 + $0x2f0] sm:$0xff]  }
 0x514   :  { %9174 = vmatprep.mubr.bf16.mxu0 %v8018_v59  ;;  %10724 = vmatpush3.bf16.msra.mxu1 %v11008_v6  ;;  %v11022_v59 = vld [vmem:[%s12023_s6 + $0x1e0] sm:$0xff]   ;;  %v11063_v6 = vld [vmem:[%s12023_s6 + $0x230] sm:$0xff]  }
 0x515   :  { %9215 = vmatprep.mubr.bf16.mxu1 %v8020_v62  ;;  %10703 = vmatprep.subr.bf16.mxu0 %v11009_v5  ;;  %v11023_v62 = vld [vmem:[%s12023_s6 + $0x120] sm:$0xff]   ;;  %v11064_v5 = vld [vmem:[%s12023_s6 + $0x2b0] sm:$0xff]  }
 0x516   :  { %10725 = vmatprep.subr.bf16.mxu1 %v11010_v13  ;;  %v11065_v13 = vld [vmem:[%s12023_s6 + $0x278] sm:$0xff]  }
 0x517   :  { %10704 = vmatpush3.bf16.msra.mxu0 %v11011_v41  ;;  %v11066_v41 = vld [vmem:[%s12023_s6 + $0x2f8] sm:$0xff]  }
 0x518   :  { %10726 = vmatpush3.bf16.msra.mxu1 %v11012_v9  ;;  %10705 = vmatprep.subr.bf16.mxu0 %v11013_v21  ;;  %v11067_v9 = vld [vmem:[%s12023_s6 + $0x238] sm:$0xff]  }
 0x519   :  { %10727 = vmatprep.subr.bf16.mxu1 %v11014_v19  ;;  %v11068_v21 = vld [vmem:[%s12023_s6 + $0x2b8] sm:$0xff]   ;;  %v11069_v19 = vld [vmem:[%s12023_s6 + $0x340] sm:$0xff]  }
 0x51b   :  { %10706 = vmatpush3.bf16.msra.mxu0 %v11015_v22  ;;  %v11070_v22 = vld [vmem:[%s12023_s6 + $0x3c0] sm:$0xff]  }
 0x51c   :  { %10728 = vmatpush3.bf16.msra.mxu1 %v11016_v32  ;;  %10707 = vmatprep.subr.bf16.mxu0 %v11017_v45  ;;  %v11071_v32 = vld [vmem:[%s12023_s6 + $0x300] sm:$0xff]  }
 0x51d   :  { %10729 = vmatprep.subr.bf16.mxu1 %v11018_v33  ;;  %v11072_v45 = vld [vmem:[%s12023_s6 + $0x380] sm:$0xff]   ;;  %v11073_v33 = vld [vmem:[%s12023_s6 + $0x348] sm:$0xff]  }
 0x51f   :  { %10708 = vmatpush3.bf16.msra.mxu0 %v11019_v37  ;;  %v11074_v37 = vld [vmem:[%s12023_s6 + $0x3c8] sm:$0xff]  }
 0x520   :  { %10730 = vmatpush3.bf16.msra.mxu1 %v11020_v42  ;;  %10709 = vmatprep.subr.bf16.mxu0 %v11021_v53  ;;  %v12028_v42 = vpack.c.bf16 %v11540_v47, %v11538_v23  ;;  %v12029_v53 = vpack.c.bf16 %v11546_v50, %v11542_v25  ;;  %v11077_v23 = vld [vmem:[%s12023_s6 + $0x350] sm:$0xff]  }
 0x521   :  { %10731 = vmatprep.subr.bf16.mxu1 %v11022_v59  ;;  %v11075_v59 = vld [vmem:[%s12023_s6 + $0x308] sm:$0xff]   ;;  %v11078_v47 = vld [vmem:[%s12023_s6 + $0x3d0] sm:$0xff]  }
 0x522   :  { %v11079_v25 = vld [vmem:[%s12023_s6 + $0x310] sm:$0xff]  }
 0x523   :  { %10710 = vmatpush3.bf16.msra.mxu0 %v11023_v62  ;;  %v11076_v62 = vld [vmem:[%s12023_s6 + $0x388] sm:$0xff]   ;;  %v11080_v50 = vld [vmem:[%s12023_s6 + $0x390] sm:$0xff]  }
 0x524   :  { %10732 = vmatpush3.bf16.msra.mxu1 %v11024_v0  ;;  %10711 = vmatprep.subr.bf16.mxu0 %v11025_v52  ;;  %v11081_v0 = vld [vmem:[%s12023_s6 + $0x358] sm:$0xff]  }
 0x525   :  { %10733 = vmatprep.subr.bf16.mxu1 %v11026_v26  ;;  %v11082_v52 = vld [vmem:[%s12023_s6 + $0x3d8] sm:$0xff]  }
 0x526   :  { %v11083_v26 = vld [vmem:[%s12023_s6 + $0x318] sm:$0xff]  }
 0x527   :  { %10712 = vmatpush3.bf16.msra.mxu0 %v11027_v28  ;;  %v11084_v28 = vld [vmem:[%s12023_s6 + $0x398] sm:$0xff]  }
 0x528   :  { %10734 = vmatpush3.bf16.msra.mxu1 %v11028_v27  ;;  %10713 = vmatprep.subr.bf16.mxu0 %v11029_v29  ;;  %v11085_v27 = vld [vmem:[%s12023_s6 + $0x360] sm:$0xff]  }
 0x529   :  { %10735 = vmatprep.subr.bf16.mxu1 %v11030_v35  ;;  %v11086_v29 = vld [vmem:[%s12023_s6 + $0x3e0] sm:$0xff]  }
 0x52a   :  { %v11087_v35 = vld [vmem:[%s12023_s6 + $0x320] sm:$0xff]  }
 0x52b   :  { %10714 = vmatpush3.bf16.msra.mxu0 %v11031_v36  ;;  %v11088_v36 = vld [vmem:[%s12023_s6 + $0x3a0] sm:$0xff]  }
 0x52c   :  { %10736 = vmatpush3.bf16.msra.mxu1 %v11032_v51  ;;  %10715 = vmatprep.subr.bf16.mxu0 %v11033_v1  ;;  %v11089_v51 = vld [vmem:[%s12023_s6 + $0x368] sm:$0xff]  }
 0x52d   :  { %10737 = vmatprep.subr.bf16.mxu1 %v11034_v14  ;;  %v11090_v1 = vld [vmem:[%s12023_s6 + $0x3e8] sm:$0xff]  }
 0x52e   :  { %v11091_v14 = vld [vmem:[%s12023_s6 + $0x328] sm:$0xff]  }
 0x52f   :  { %10716 = vmatpush3.bf16.msra.mxu0 %v11035_v24  ;;  %v11092_v24 = vld [vmem:[%s12023_s6 + $0x3a8] sm:$0xff]  }
 0x530   :  { %10738 = vmatpush3.bf16.msra.mxu1 %v11036_v2  ;;  %10745 = vmatprep.subr.bf16.mxu0 %v11037_v63  ;;  %v11093_v2 = vld [vmem:[%s12023_s6 + $0x370] sm:$0xff]  }
 0x531   :  { %10767 = vmatprep.subr.bf16.mxu1 %v11038_v8  ;;  %v11094_v63 = vld [vmem:[%s12023_s6 + $0x3f0] sm:$0xff]  }
 0x532   :  { %9175 = vmatmul.mubr.bf16.vlgmr.msra.gmra.mrb[28].mxu0 %v8017_v43  ;;  %v11048_v43 = vld [vmem:[%s12023_s6 + $0x290] sm:$0xff]  }
 0x533   :  { %9216 = vmatmul.mubr.bf16.vlgmr.msra.gmra.mrb[28].mxu1 %v8019_v58  ;;  %10746 = vmatpush3.bf16.msra.mxu0 %v11039_v46  ;;  %v11049_v58 = vld [vmem:[%s12023_s6 + $0x258] sm:$0xff]   ;;  %v11095_v8 = vld [vmem:[%s12023_s6 + $0x330] sm:$0xff]  }
 0x534   :  { %9256 = vmatprep.mubr.bf16.mxu0 %v8022_v54  ;;  %10768 = vmatpush3.bf16.msra.mxu1 %v11040_v49  ;;  %v11054_v54 = vld [vmem:[%s12023_s6 + $0x2e0] sm:$0xff]   ;;  %v11096_v46 = vld [vmem:[%s12023_s6 + $0x3b0] sm:$0xff]   ;;  %v11097_v49 = vld [vmem:[%s12023_s6 + $0x378] sm:$0xff]  }
 0x535   :  { %9297 = vmatprep.mubr.bf16.mxu1 %v8024_v56  ;;  %10747 = vmatprep.subr.bf16.mxu0 %v11041_v48  ;;  %v11055_v56 = vld [vmem:[%s12023_s6 + $0x220] sm:$0xff]   ;;  %v11098_v48 = vld [vmem:[%s12023_s6 + $0x3f8] sm:$0xff]  }
 0x536   :  { %10769 = vmatprep.subr.bf16.mxu1 %v11042_v20  ;;  %v11099_v20 = vld [vmem:[%s12023_s6 + $0x338] sm:$0xff]  }
 0x537   :  { %10748 = vmatpush3.bf16.msra.mxu0 %v11043_v4  ;;  %v11100_v4 = vld [vmem:[%s12023_s6 + $0x3b8] sm:$0xff]  }
 0x538   :  { %10770 = vmatpush3.bf16.msra.mxu1 %v11044_v15  ;;  %10749 = vmatprep.subr.bf16.mxu0 %v11045_v17  ;;  %v1488_v15 = vrot.slane %v11528_v61, %v11375_v57 }
 0x539   :  { %10771 = vmatprep.subr.bf16.mxu1 %v11046_v31  ;;  %v1496_v31 = vrot.slane %v11528_v61, %v11403_v16 }
 0x53b   :  { %10750 = vmatpush3.bf16.msra.mxu0 %v11047_v34  ;;  %v1492_v34 = vrot.slane %v11528_v61, %v11378_v60 }
 0x53c   :  { %10772 = vmatpush3.bf16.msra.mxu1 %v11048_v43  ;;  %10751 = vmatprep.subr.bf16.mxu0 %v11049_v58 }
 0x53d   :  { %10773 = vmatprep.subr.bf16.mxu1 %v11050_v11  ;;  %v1500_v11 = vrot.slane %v11528_v61, %v11406_v18 }
 0x53f   :  { %10752 = vmatpush3.bf16.msra.mxu0 %v11051_v12 }
 0x540   :  { %10774 = vmatpush3.bf16.msra.mxu1 %v11052_v38  ;;  %10753 = vmatprep.subr.bf16.mxu0 %v11053_v3 }
 0x541   :  { %10775 = vmatprep.subr.bf16.mxu1 %v11054_v54 }
 0x543   :  { %10754 = vmatpush3.bf16.msra.mxu0 %v11055_v56 }
 0x544   :  { %10776 = vmatpush3.bf16.msra.mxu1 %v11056_v10  ;;  %10755 = vmatprep.subr.bf16.mxu0 %v11057_v39 }
 0x545   :  { %10777 = vmatprep.subr.bf16.mxu1 %v11058_v40 }
 0x547   :  { %10756 = vmatpush3.bf16.msra.mxu0 %v11059_v30 }
 0x548   :  { %10778 = vmatpush3.bf16.msra.mxu1 %v11060_v55  ;;  %10757 = vmatprep.subr.bf16.mxu0 %v11061_v7 }
 0x549   :  { %10779 = vmatprep.subr.bf16.mxu1 %v11062_v44 }
 0x54b   :  { %10758 = vmatpush3.bf16.msra.mxu0 %v11063_v6 }
 0x54c   :  { %10780 = vmatpush3.bf16.msra.mxu1 %v11064_v5  ;;  %10759 = vmatprep.subr.bf16.mxu0 %v11065_v13  ;;  %v10526_v13 = vld [vmem:[%s12024_s7] ss:$0 sm:$0xff] }
 0x54d   :  { %10781 = vmatprep.subr.bf16.mxu1 %v11066_v41 }
 0x54f   :  { %10760 = vmatpush3.bf16.msra.mxu0 %v11067_v9 }
 0x550   :  { %10782 = vmatpush3.bf16.msra.mxu1 %v11068_v21  ;;  %10789 = vmatprep.subr.bf16.mxu0 %v11069_v19 }
 0x551   :  { %10811 = vmatprep.subr.bf16.mxu1 %v11070_v22 }
 0x552   :  { %9257 = vmatmul.mubr.bf16.vlgmr.msra.gmra.mrb[32].mxu0 %v12028_v42 }
 0x553   :  { %9298 = vmatmul.mubr.bf16.vlgmr.msra.gmra.mrb[32].mxu1 %v12029_v53  ;;  %10790 = vmatpush3.bf16.msra.mxu0 %v11071_v32 }
 0x554   :  { %10812 = vmatpush3.bf16.msra.mxu1 %v11072_v45  ;;  %10791 = vmatprep.subr.bf16.mxu0 %v11073_v33 }
 0x555   :  { %10813 = vmatprep.subr.bf16.mxu1 %v11074_v37 }
 0x557   :  { %10792 = vmatpush3.bf16.msra.mxu0 %v11075_v59 }
 0x558   :  { %10814 = vmatpush3.bf16.msra.mxu1 %v11076_v62  ;;  %10793 = vmatprep.subr.bf16.mxu0 %v11077_v23 }
 0x559   :  { %10815 = vmatprep.subr.bf16.mxu1 %v11078_v47 }
 0x55b   :  { %10794 = vmatpush3.bf16.msra.mxu0 %v11079_v25 }
 0x55c   :  { %10816 = vmatpush3.bf16.msra.mxu1 %v11080_v50  ;;  %10795 = vmatprep.subr.bf16.mxu0 %v11081_v0 }
 0x55d   :  { %10817 = vmatprep.subr.bf16.mxu1 %v11082_v52 }
 0x55f   :  { %10796 = vmatpush3.bf16.msra.mxu0 %v11083_v26 }
 0x560   :  { %10818 = vmatpush3.bf16.msra.mxu1 %v11084_v28  ;;  %10797 = vmatprep.subr.bf16.mxu0 %v11085_v27 }
 0x561   :  { %10819 = vmatprep.subr.bf16.mxu1 %v11086_v29 }
 0x563   :  { %10798 = vmatpush3.bf16.msra.mxu0 %v11087_v35 }
 0x564   :  { %10820 = vmatpush3.bf16.msra.mxu1 %v11088_v36  ;;  %10799 = vmatprep.subr.bf16.mxu0 %v11089_v51 }
 0x565   :  { %10821 = vmatprep.subr.bf16.mxu1 %v11090_v1 }
 0x567   :  { %10800 = vmatpush3.bf16.msra.mxu0 %v11091_v14 }
 0x568   :  { %10822 = vmatpush3.bf16.msra.mxu1 %v11092_v24  ;;  %10801 = vmatprep.subr.bf16.mxu0 %v11093_v2 }
 0x569   :  { %10823 = vmatprep.subr.bf16.mxu1 %v11094_v63 }
 0x56b   :  { %10802 = vmatpush3.bf16.msra.mxu0 %v11095_v8 }
 0x56c   :  { %10824 = vmatpush3.bf16.msra.mxu1 %v11096_v46  ;;  %10803 = vmatprep.subr.bf16.mxu0 %v11097_v49 }
 0x56d   :  { %10825 = vmatprep.subr.bf16.mxu1 %v11098_v48 }
 0x56f   :  { %10804 = vmatpush3.bf16.msra.mxu0 %v11099_v20 }
 0x570   :  { %10826 = vmatpush3.bf16.msra.mxu1 %v11100_v4 }
 0x5c5   :  { %v7832_v17 = vpop.f32.mrb[20].mxu0 }
 0x5c6   :  { %v8004_v43 = vpop.f32.mrb[20].mxu1  ;;  %v7834_v58 = vpop.f32.mrb[21].mxu0  ;;  %v10857_v3 = vadd.f32 %v7832_v17, %v1488_v15 }
 0x5c7   :  { %v8006_v12 = vpop.f32.mrb[21].mxu1  ;;  %v7836_v38 = vpop.f32.mrb[22].mxu0  ;;  %v10861_v39 = vadd.f32 %v8004_v43, %v1496_v31  ;;  %v10858_v57 = vadd.f32 %v7834_v58, %v1492_v34 }
 0x5c8   :  { %v10859_v54 = vadd.f32 %v7836_v38, %v1488_v15  ;;  %v8008_v56 = vpop.f32.mrb[22].mxu1  ;;  %v7838_v10 = vpop.f32.mrb[23].mxu0  ;;  %v10862_v16 = vadd.f32 %v8006_v12, %v1500_v11 }
 0x5c9   :  { %v10863_v40 = vadd.f32 %v8008_v56, %v1496_v31  ;;  %v10860_v30 = vadd.f32 %v7838_v10, %v1492_v34  ;;  %v8010_v55 = vpop.f32.mrb[23].mxu1 }
 0x5ca   :  { %v8025_v7 = vpack.c.bf16 %v10859_v54, %v10857_v3  ;;  %v10864_v44 = vadd.f32 %v8010_v55, %v1500_v11 }
 0x5cb   :  { %v8027_v60 = vpack.c.bf16 %v10863_v40, %v10861_v39  ;;  %v8026_v6 = vpack.c.bf16 %v10860_v30, %v10858_v57 }
 0x5cc   :  { %v8028_v5 = vpack.c.bf16 %v10864_v44, %v10862_v16 }
 0x5cd   :  { %9338 = vmatprep.mubr.bf16.mxu0 %v8026_v6 }
 0x5ce   :  { %9379 = vmatprep.mubr.bf16.mxu1 %v8028_v5  ;;  %9339 = vmatmul.mubr.bf16.vlgmr.msra.gmra.mrb[36].mxu0 %v8025_v7 }
 0x5cf   :  { %9380 = vmatmul.mubr.bf16.vlgmr.msra.gmra.mrb[36].mxu1 %v8027_v60 }
 0x5e5   :  { %v10673_v18 = vpop.f32.mrb[24].mxu0 }
 0x5e6   :  { %v10695_v61 = vpop.f32.mrb[24].mxu1  ;;  %v10674_v41 = vpop.f32.mrb[25].mxu0 }
 0x5e7   :  { %v10675_v9 = vadd.f32 %v10674_v41, %v10673_v18  ;;  %v10696_v21 = vpop.f32.mrb[25].mxu1  ;;  %v10676_v19 = vpop.f32.mrb[26].mxu0 }
 0x5e8   :  { %v10697_v22 = vadd.f32 %v10696_v21, %v10695_v61  ;;  %v10698_v32 = vpop.f32.mrb[26].mxu1  ;;  %v10677_v45 = vpop.f32.mrb[27].mxu0 }
 0x5e9   :  { %v9095_v33 = vadd.f32 %v10675_v9, %v10526_v13  ;;  %v10678_v37 = vadd.f32 %v10677_v45, %v10676_v19  ;;  %v10699_v42 = vpop.f32.mrb[27].mxu1 }
 0x5ea   :  { %v10700_v53 = vadd.f32 %v10699_v42, %v10698_v32 }
 0x5eb   :  { %v9136_v59 = vadd.f32 %v10697_v22, %v9095_v33  ;;  %v9098_v62 = vadd.f32 %v10678_v37, %v10526_v13 }
 0x5ed   :  { %v9139_v23 = vadd.f32 %v10700_v53, %v9098_v62 }
 0x605   :  { %v10717_v47 = vpop.f32.mrb[28].mxu0 }
 0x606   :  { %v10739_v25 = vpop.f32.mrb[28].mxu1  ;;  %v10718_v50 = vpop.f32.mrb[29].mxu0 }
 0x607   :  { %v10719_v0 = vadd.f32 %v10718_v50, %v10717_v47  ;;  %v10740_v52 = vpop.f32.mrb[29].mxu1  ;;  %v10720_v26 = vpop.f32.mrb[30].mxu0 }
 0x608   :  { %v10741_v28 = vadd.f32 %v10740_v52, %v10739_v25  ;;  %v10742_v27 = vpop.f32.mrb[30].mxu1  ;;  %v10721_v29 = vpop.f32.mrb[31].mxu0  ;;  %v12030_v25 = vlaneseq }
 0x609   :  { %v9177_v35 = vadd.f32 %v10719_v0, %v9136_v59  ;;  %v10722_v36 = vadd.f32 %v10721_v29, %v10720_v26  ;;  %v10743_v51 = vpop.f32.mrb[31].mxu1  ;;  %v9402_v59 = vld [vmem:[%s12018_s1] sm:$0xff] }
 0x60a   :  { %v10744_v1 = vadd.f32 %v10743_v51, %v10742_v27  ;;  %v9442_v50 = vand.u32 127, %v12030_v25 }
 0x60b   :  { %v9218_v14 = vadd.f32 %v10741_v28, %v9177_v35  ;;  %v9180_v24 = vadd.f32 %v10722_v36, %v9139_v23 }
 0x60c   :  { %vm9445_vm2 = vcmp.lt.s32.totalorder %v9442_v50, 16 }
 0x60d   :  { %v9221_v2 = vadd.f32 %v10744_v1, %v9180_v24 }
 0x625   :  { %v10761_v63 = vpop.f32.mrb[32].mxu0 }
 0x626   :  { %v10783_v8 = vpop.f32.mrb[32].mxu1  ;;  %v10762_v46 = vpop.f32.mrb[33].mxu0 }
 0x627   :  { %v10763_v49 = vadd.f32 %v10762_v46, %v10761_v63  ;;  %v10784_v48 = vpop.f32.mrb[33].mxu1  ;;  %v10764_v20 = vpop.f32.mrb[34].mxu0 }
 0x628   :  { %v10785_v4 = vadd.f32 %v10784_v48, %v10783_v8  ;;  %v10786_v15 = vpop.f32.mrb[34].mxu1  ;;  %v10765_v17 = vpop.f32.mrb[35].mxu0 }
 0x629   :  { %v9259_v31 = vadd.f32 %v10763_v49, %v9218_v14  ;;  %v10766_v34 = vadd.f32 %v10765_v17, %v10764_v20  ;;  %v10787_v43 = vpop.f32.mrb[35].mxu1 }
 0x62a   :  { %v10788_v58 = vadd.f32 %v10787_v43, %v10786_v15 }
 0x62b   :  { %v9300_v11 = vadd.f32 %v10785_v4, %v9259_v31  ;;  %v9262_v12 = vadd.f32 %v10766_v34, %v9221_v2 }
 0x62d   :  { %v9303_v38 = vadd.f32 %v10788_v58, %v9262_v12 }
 0x6a1   :  { %v10805_v3 = vpop.f32.mrb[36].mxu0 }
 0x6a2   :  { %v10827_v54 = vpop.f32.mrb[36].mxu1  ;;  %v10806_v56 = vpop.f32.mrb[37].mxu0 }
 0x6a3   :  { %v10807_v10 = vadd.f32 %v10806_v56, %v10805_v3  ;;  %v10828_v39 = vpop.f32.mrb[37].mxu1  ;;  %v10808_v57 = vpop.f32.mrb[38].mxu0 }
 0x6a4   :  { %v10829_v40 = vadd.f32 %v10828_v39, %v10827_v54  ;;  %v10830_v30 = vpop.f32.mrb[38].mxu1  ;;  %v10809_v55 = vpop.f32.mrb[39].mxu0 }
 0x6a5   :  { %v9341_v16 = vadd.f32 %v10807_v10, %v9300_v11  ;;  %v10810_v7 = vadd.f32 %v10809_v55, %v10808_v57  ;;  %v10831_v44 = vpop.f32.mrb[39].mxu1 }
 0x6a6   :  { %v10832_v60 = vadd.f32 %v10831_v44, %v10830_v30 }
 0x6a7   :  { %v9382_v6 = vadd.f32 %v10829_v40, %v9341_v16  ;;  %v9344_v5 = vadd.f32 %v10810_v7, %v9303_v38 }
 0x6a9   :  { %v10655_v18 = vmul.f32 -1.442695, %v9382_v6  ;;  %v9385_v61 = vadd.f32 %v10832_v60, %v9344_v5 }
 0x6ab   :  { %11101 = vpow2.f32 %v10655_v18  ;;  %v10656_v13 = vmul.f32 -1.442695, %v9385_v61 }
 0x6ad   :  { %11103 = vpow2.f32 %v10656_v13 }
 0x6b5   :  { %v11102_v41 = vpop.eup %11101 }
 0x6b6   :  { %v9394_v9 = vadd.f32 1.0, %v11102_v41 }
 0x6b7   :  { %v11104_v21 = vpop.eup %11103 }
 0x6b8   :  { %11105 = vrcp.f32 %v9394_v9  ;;  %v9395_v19 = vadd.f32 1.0, %v11104_v21 }
 0x6ba   :  { %11107 = vrcp.f32 %v9395_v19 }
 0x6c2   :  { %v11106_v22 = vpop.eup %11105 }
 0x6c3   :  { %9400 = vst [vmem:[%s12025_s8] sm:$0xff] %v11106_v22  ;;  %v9408_v32 = vsub.f32 0.0, %v11106_v22  ;;  %v9404_v23 = vmul.f32 %v11106_v22, %v9402_v59 }
 0x6c4   :  { %v11108_v45 = vpop.eup %11107 }
 0x6c5   :  { %9401 = vst [vmem:[%s12025_s8 + $0x8] sm:$0xff] %v11108_v45  ;;  %v9410_v33 = vmul.f32 1.442695, %v9408_v32  ;;  %v9406_v28 = vsub.f32 %v11106_v22, %v9404_v23 }
 0x6c7   :  { %11109 = vpow2.f32 %v9410_v33 }
 0x6d1   :  { %v11110_v37 = vpop.eup %11109 }
 0x6d2   :  { %v9414_v42 = vadd.f32 1.0, %v11110_v37  ;;  %v9417_v53 = vmul.f32 -0.5, %v11110_v37  ;;  %v9420_v47 = vand.u32 2147483647, %v11110_v37 }
 0x6d4   :  { %11111 = vlog2.f32 %v9414_v42  ;;  %v9418_v62 = vadd.f32 1.0, %v9417_v53  ;;  %vm9421_vm1 = vcmp.lt.f32.partialorder %v9420_v47, 0.0004427343 }
 0x6d6   :  { %v9419_v26 = vmul.f32 %v11110_v37, %v9418_v62 }
 0x6de   :  { %v11112_v0 = vpop.eup %11111 }
 0x6df   :  { %v9416_v52 = vmul.f32 0.6931472, %v11112_v0 }
 0x6e1   :  { %v9422_v27 = vsel %vm9421_vm1, %v9419_v26, %v9416_v52 }
 0x6e2   :  { %v9432_v29 = vadd.f32 %v9422_v27, %v9406_v28 }
 0x6e4   :  { %v9448_v35 = vsel %vm9445_vm2, %v9432_v29, 0.0 }
 0x6e5   :  { %9451 = vadd.xlane.f32.xlu0 %v9448_v35 }
 0x772   :  { %v9452_v36 = vpop.xlane.xlu0 %9451 }
 0x773   :  { %v9453_v51 = vrot.slane %v9452_v36, 4 }
 0x775   :  { %v9454_v1 = vadd.f32 %v9453_v51, %v9452_v36 }
 0x777   :  { %v9455_v14 = vrot.slane %v9454_v1, 2 }
 0x779   :  { %v9456_v24 = vadd.f32 %v9455_v14, %v9454_v1 }
 0x77b   :  { %v9457_v2 = vrot.slane %v9456_v24, 1 }
 0x77d   :  { %v9458_v63 = vadd.f32 %v9457_v2, %v9456_v24 }
 0x77f   :  { %10961 = vpush %v9458_v63 }
 0x7b0   :  { %s10962_s1 = spop %10961 }
 0x7b1   :  { %9461 = sst [smem:[#allocation10]] %s10962_s1 }
 0x7b2   :  { %11211 = shalt.err (!%p11208_p6)
}
 0x7b3   :  { %s11229_s24 = smov [#allocation10]  }
 0x7b4   :  { %9471 = dma.smem_to_hbm %s11229_s24, 16, %s12026_s9, [#allocation4]  }
 0x7b5   :  { %11218 = dma.done.wait [#allocation4], 16  }
 0x7b6   :  { %11219 = vsyncadd [#allocation4], 4294967280 }
 0x7b7   :  { %9477 = sfence }
 0x7b8   :  { %9478 = vsyncpa [#allocation3], 1 }
 0x7b9   :  { %9479 = vsyncpa [#allocation6], 1 }
 0x7ba   :  { %9480 = vsyncpa [#allocation9], 1 }
 0x7bb   :  { %9481 = vsyncpa [#allocation4], 1 }

</bundles_post_ra>
